<compile_context>
chip_gen: v7x
topology: tpu7x:2x2x1
jax: 0.10.0
libtpu: 0.0.40
codegen_flags: <defaults>
</compile_context>

<pallas_src>
import functools

import jax
import jax.numpy as jnp
from jax import lax
from jax.experimental import pallas as pl
from jax.experimental.pallas import tpu as pltpu


_TILE_M = 256  # row tile for the generic linear/FFN path (kicks in at big M)


# ----------------------------------------------------------------------------
# Generic fused linear kernels (optional bias / LeakyReLU / LayerNorm epilogue)
# ----------------------------------------------------------------------------
def _leaky(x, slope):
    if slope is None:
        return x
    return jnp.where(x >= 0.0, x, jnp.float32(slope) * x)


def _linear_kernel(x_ref, w_ref, o_ref, *, slope):
    acc = jnp.dot(x_ref[...], w_ref[...], preferred_element_type=jnp.float32)
    o_ref[...] = _leaky(acc, slope)


def _linear_bias_kernel(x_ref, w_ref, b_ref, o_ref, *, slope):
    acc = jnp.dot(x_ref[...], w_ref[...], preferred_element_type=jnp.float32)
    acc = acc + b_ref[...]
    o_ref[...] = _leaky(acc, slope)


def _linear_ln_kernel(x_ref, w_ref, g_ref, b_ref, o_ref, *, slope, eps):
    acc = jnp.dot(x_ref[...], w_ref[...], preferred_element_type=jnp.float32)
    acc = _leaky(acc, slope)
    mu = jnp.mean(acc, axis=-1, keepdims=True)
    xc = acc - mu
    var = jnp.mean(xc * xc, axis=-1, keepdims=True)
    o_ref[...] = xc * lax.rsqrt(var + eps) * g_ref[...] + b_ref[...]


def _ffn_kernel(x_ref, w1_ref, w2_ref, o_ref, *, slope):
    h = jnp.dot(x_ref[...], w1_ref[...], preferred_element_type=jnp.float32)
    h = jnp.where(h >= 0.0, h, jnp.float32(slope) * h)
    o = jnp.dot(h, w2_ref[...], preferred_element_type=jnp.float32)
    o_ref[...] = jnp.where(o >= 0.0, o, jnp.float32(slope) * o)


def _row_tiled_call(kernel, x2d, extra_inputs, n_out):
    """Run kernel(x_tile, *extras, o_tile); tile over rows when M is large."""
    M, K = x2d.shape
    out_shape = jax.ShapeDtypeStruct((M, n_out), jnp.float32)
    if M > _TILE_M and M % _TILE_M == 0:
        in_specs = [pl.BlockSpec((_TILE_M, K), lambda i: (i, 0))]
        for e in extra_inputs:
            in_specs.append(
                pl.BlockSpec(e.shape, lambda i, nd=len(e.shape): (0,) * nd))
        return pl.pallas_call(
            kernel,
            grid=(M // _TILE_M,),
            in_specs=in_specs,
            out_specs=pl.BlockSpec((_TILE_M, n_out), lambda i: (i, 0)),
            out_shape=out_shape,
            compiler_params=pltpu.CompilerParams(
                dimension_semantics=("parallel",),
                vmem_limit_bytes=32 * 1024 * 1024),
        )(x2d, *extra_inputs)
    # small problems: single block, no grid overhead
    return pl.pallas_call(kernel, out_shape=out_shape)(x2d, *extra_inputs)


def linear(x2d, w, bias=None, slope=None):
    """y = leaky_relu(x @ w (+ b), slope).  Skips the bias path when bias is None."""
    x2d = x2d.astype(jnp.float32)
    w = w.astype(jnp.float32)
    N = w.shape[1]
    if bias is None:
        return _row_tiled_call(functools.partial(_linear_kernel, slope=slope),
                               x2d, [w], N)
    b2d = bias.reshape(1, N).astype(jnp.float32)
    return _row_tiled_call(functools.partial(_linear_bias_kernel, slope=slope),
                           x2d, [w, b2d], N)


def linear_ln(x2d, w, gamma, beta, slope, eps=1e-5):
    """y = layer_norm(leaky_relu(x @ w, slope)) -- fused epilogue."""
    N = w.shape[1]
    return _row_tiled_call(
        functools.partial(_linear_ln_kernel, slope=slope, eps=eps),
        x2d.astype(jnp.float32),
        [w.astype(jnp.float32),
         gamma.reshape(1, N).astype(jnp.float32),
         beta.reshape(1, N).astype(jnp.float32)], N)


def ffn(x2d, w1, w2, slope=0.2):
    """Position-wise FFN: leaky(leaky(x@w1)@w2), fully fused."""
    return _row_tiled_call(functools.partial(_ffn_kernel, slope=slope),
                           x2d.astype(jnp.float32),
                           [w1.astype(jnp.float32), w2.astype(jnp.float32)],
                           w2.shape[1])


# ----------------------------------------------------------------------------
# ClusterBlock kernels
# ----------------------------------------------------------------------------
def _cluster_softmax_kernel(x_ref, w_ref, bd_ref, o_ref):
    # logits for all graphs at once; softmax within each k_cluster group.
    logits = jnp.dot(x_ref[...], w_ref[...], preferred_element_type=jnp.float32)
    m = jnp.max(logits, axis=-1, keepdims=True)   # per-row max: constant per group
    p = jnp.exp(logits - m)
    denom = jnp.dot(p, bd_ref[...], preferred_element_type=jnp.float32)
    o_ref[...] = p * pl.reciprocal(denom, approx=True)


def cluster_softmax(xv, w_all, num_graph, k_cluster):
    M = xv.shape[0]
    gk = num_graph * k_cluster
    bd = jnp.kron(jnp.eye(num_graph, dtype=jnp.float32),
                  jnp.ones((k_cluster, k_cluster), jnp.float32))
    return pl.pallas_call(
        _cluster_softmax_kernel,
        out_shape=jax.ShapeDtypeStruct((M, gk), jnp.float32),
    )(xv.astype(jnp.float32), w_all.astype(jnp.float32), bd)


def _cgat_ht_kernel(h_ref, wt_ref, o_ref):
    # ht[v, c] = sum_{b,t} h[v, b*t, c] * Wt[branch(c), t] / b   (VPU reduce)
    o_ref[...] = jnp.sum(h_ref[...] * wt_ref[...][None, :, :], axis=1)


def cgat_ht(h3, wt_bt):
    v, _, C = h3.shape
    return pl.pallas_call(
        _cgat_ht_kernel,
        out_shape=jax.ShapeDtypeStruct((v, C), jnp.float32),
    )(h3, wt_bt)


def _cgat_mix_kernel(h_ref, ht_ref, s1_ref, s2_ref, sel_ref, ok_ref, cw_ref,
                     g_ref, b_ref, o_ref, *, slope, num_branch, f1, eps):
    """All 12 CGAT branch attentions + atrous mask + mix + cluster combine + LN.

    Shapes (lane axis = C = num_branch * f1):
      h   : (v, b*t, C)   ht : (v, C)
      s1/s2 : (C, C) block-diagonal a-vector expansions
      sel/ok: (v, v, C)   atrous-column / adjacency masks per branch
      cw  : (v, b*t, C)   cluster weights / num_graph per branch
      out : (v, b*t, f1)
    """
    ht = ht_ref[...]
    e_row = jnp.dot(ht, s2_ref[...], preferred_element_type=jnp.float32)  # a[f1:] side (row i)
    e_col = jnp.dot(ht, s1_ref[...], preferred_element_type=jnp.float32)  # a[:f1] side (col j)
    e = e_row[:, None, :] + e_col[None, :, :]                  # (v, v, C)
    e = jnp.where(e >= 0.0, e, jnp.float32(slope) * e)
    # adjacency mask exactly as reference (-9e15), atrous-excluded columns get
    # -inf so they contribute exactly zero probability (matches the reference's
    # softmax over the atrous subset, including the "all masked" corner case).
    e = jnp.where(ok_ref[...] > 0.0, e, jnp.float32(-9e15))
    e = jnp.where(sel_ref[...] > 0.0, e, -jnp.inf)
    m = jnp.max(e, axis=1, keepdims=True)                      # (v, 1, C)
    p = jnp.exp(e - m)
    denom = jnp.sum(p, axis=1, keepdims=True)
    attn = p * pl.reciprocal(denom, approx=True)               # (v, v, C)

    h = h_ref[...]                                             # (v, bt, C)
    v = h.shape[0]
    hp = attn[:, 0:1, :] * h[0:1, :, :]
    for j in range(1, v):                                      # static unroll (v small)
        hp = hp + attn[:, j:j + 1, :] * h[j:j + 1, :, :]
    hp = jnp.where(hp >= 0.0, hp, jnp.float32(slope) * hp)     # CGAT output leaky
    wsum = hp * cw_ref[...]                                    # cluster-weighted (/G folded in)
    gc = wsum[:, :, 0:f1]
    for q in range(1, num_branch):                             # segment sum over branches
        gc = gc + wsum[:, :, q * f1:(q + 1) * f1]
    mu = jnp.mean(gc, axis=-1, keepdims=True)
    xc = gc - mu
    var = jnp.mean(xc * xc, axis=-1, keepdims=True)
    o_ref[...] = xc * lax.rsqrt(var + eps) * g_ref[...] + b_ref[...]


def cgat_mix(h3, ht, s1, s2, sel, ok, cw, gamma, beta, slope, num_branch, f1):
    v, bt, _ = h3.shape
    return pl.pallas_call(
        functools.partial(_cgat_mix_kernel, slope=slope, num_branch=num_branch,
                          f1=f1, eps=1e-5),
        out_shape=jax.ShapeDtypeStruct((v, bt, f1), jnp.float32),
    )(h3, ht, s1, s2, sel, ok, cw,
      gamma.reshape(1, 1, f1).astype(jnp.float32),
      beta.reshape(1, 1, f1).astype(jnp.float32))


# ----------------------------------------------------------------------------
# Scaled dot-product attention (single batched kernel, no unused attn output)
# ----------------------------------------------------------------------------
def _sdp_kernel(q_ref, k_ref, vr_ref, o_ref, *, temp):
    s = jnp.einsum('bqd,bkd->bqk', q_ref[...], k_ref[...],
                   preferred_element_type=jnp.float32) / temp
    m = jnp.max(s, axis=-1, keepdims=True)
    p = jnp.exp(s - m)
    attn = p * pl.reciprocal(jnp.sum(p, axis=-1, keepdims=True), approx=True)
    o_ref[...] = jnp.einsum('bqk,bkd->bqd', attn, vr_ref[...],
                            preferred_element_type=jnp.float32)


def sdp_attention(q, k, vr, temp):
    b, t, _ = q.shape
    nf = vr.shape[-1]
    # TODO(synk): at long sequence lengths, tile over (batch, q-block) with a
    # 'parallel' grid and an online-softmax accumulator; a single block is the
    # right call at these shapes.
    return pl.pallas_call(
        functools.partial(_sdp_kernel, temp=temp),
        out_shape=jax.ShapeDtypeStruct((b, t, nf), jnp.float32),
    )(q.astype(jnp.float32), k.astype(jnp.float32), vr.astype(jnp.float32))


# ----------------------------------------------------------------------------
# Module forward passes (plain-JAX glue around the Pallas kernels)
# ----------------------------------------------------------------------------
def cluster_block_forward(x, graphs, p, k_cluster, num_graph, atrous_k):
    b, v, t, f0 = x.shape
    f1 = p['cgat'][0][0][0]['W'].shape[1]
    nb = atrous_k * num_graph * k_cluster
    C = nb * f1
    slope = float(v)   # CGAT(f0, f1, t, v, ...): positional v becomes alpha (ref quirk)

    # ---- cluster assignment: one fused linear + grouped-softmax kernel -----
    xv = x.reshape(b * v, t * f0)
    w_cl = jnp.concatenate([p['cluster_w'][g] for g in range(num_graph)], axis=1)
    cl = cluster_softmax(xv, w_cl, num_graph, k_cluster)
    cl4 = cl.reshape(b, v, num_graph, k_cluster)
    cluster = [cl4[:, :, g, :] for g in range(num_graph)]

    # ---- stacked CGAT projection: all branches in one lane-dense matmul ----
    branches = [(ak, g, j) for ak in range(atrous_k)
                for g in range(num_graph) for j in range(k_cluster)]
    w_all = jnp.concatenate([p['cgat'][ak][g][j]['W'] for ak, g, j in branches],
                            axis=1)                                   # (f0, C)
    wb_all = jnp.concatenate([p['cgat'][ak][g][j]['Wb'] for ak, g, j in branches],
                             axis=0)                                  # (C,)
    xvbt = jnp.transpose(x, (1, 0, 2, 3)).reshape(v * b * t, f0)      # vertex-major
    h = linear(xvbt, w_all, bias=wb_all, slope=slope)                 # (v*b*t, C)
    h3 = h.reshape(v, b * t, C)

    # ---- ht: batch/time weighted reduce (replaces 12 degenerate N=1 matmuls)
    wt_all = jnp.stack([p['cgat'][ak][g][j]['Wt'] for ak, g, j in branches],
                       axis=0)                                        # (nb, t)
    wt_tc = jnp.repeat(jnp.transpose(wt_all), f1, axis=1)             # (t, C)
    wt_bt = jnp.tile(wt_tc, (b, 1)) / float(b)                        # (b*t, C)
    ht = cgat_ht(h3, wt_bt)                                           # (v, C)

    # ---- per-branch attention + mix + cluster combine + LN: one kernel -----
    a_all = jnp.stack([p['cgat'][ak][g][j]['a'] for ak, g, j in branches], axis=0)
    a1 = a_all[:, :f1].reshape(C)      # pairs with the atrous (column) side
    a2 = a_all[:, f1:].reshape(C)      # pairs with the full (row) side
    blk = jnp.kron(jnp.eye(nb, dtype=jnp.float32),
                   jnp.ones((f1, f1), jnp.float32))                   # (C, C)
    s1 = blk * a1[:, None]
    s2 = blk * a2[:, None]

    col = jnp.arange(v)
    sel_l, ok_l, cw_l = [], [], []
    for ak, g, j in branches:
        sel_l.append(jnp.broadcast_to(
            (col % atrous_k == ak).astype(jnp.float32)[None, :], (v, v)))
        ok_l.append((graphs[g] > 0).astype(jnp.float32))
        cw_l.append(jnp.transpose(cluster[g][:, :, j]))               # (v, b)
    sel = jnp.repeat(jnp.stack(sel_l, axis=-1), f1, axis=-1)          # (v, v, C)
    ok = jnp.repeat(jnp.stack(ok_l, axis=-1), f1, axis=-1)            # (v, v, C)
    cw_nb = jnp.stack(cw_l, axis=-1) / float(num_graph)               # (v, b, nb)
    cw = jnp.repeat(cw_nb, f1, axis=-1)                               # (v, b, C)
    cw = jnp.broadcast_to(cw[:, :, None, :], (v, b, t, C)).reshape(v, b * t, C)

    out = cgat_mix(h3, ht, s1, s2, sel, ok, cw,
                   p['ln_g'], p['ln_b'], slope, nb, f1)               # (v, b*t, f1)
    out = out.reshape(v, b, t, f1).transpose(1, 0, 2, 3)              # (b, v, t, f1)
    return out, cluster


def mha_forward(q, k, v4, p, alpha=0.2):
    b, t, f0 = q.shape
    _, n, t_v, fv = v4.shape
    qh = p['w_qs'].shape[1]
    vh = p['w_vs'].shape[1]
    f1 = p['fc'].shape[1]
    # q and k share the same input slab -> one fused projection
    w_qk = jnp.concatenate([p['w_qs'], p['w_ks']], axis=1)            # (f0, 2*qh)
    qk = linear(q.reshape(b * t, f0), w_qk)
    qs = qk[:, :qh].reshape(b, t, qh)
    ks = qk[:, qh:].reshape(b, t, qh)
    vs = linear(v4.reshape(b * n * t_v, fv), p['w_vs']).reshape(b, n, t_v, vh)
    vr = jnp.transpose(vs, (0, 2, 3, 1)).reshape(b, t_v, vh * n)      # f-major, n-minor
    temp = float(qh) ** 0.5
    out_flat = sdp_attention(qs, ks, vr, temp)                        # (b, t, vh*n)
    out = out_flat.reshape(b, t, vh, n).transpose(0, 3, 1, 2)         # (b, n, t, vh)
    out = linear_ln(out.reshape(b * n * t, vh), p['fc'],
                    p['ln_g'], p['ln_b'], slope=alpha)                # fc+leaky+LN fused
    return out.reshape(b, n, t, f1)


def encoder_forward(x_d, x_pe, graphs, params, *, io_list, k_cluster, pe_dim,
                    num_graph, atrous_k):
    b, v, t, f = x_d.shape
    inputs = jnp.tile(x_d, (1, 1, 1, pe_dim))        # (b, v, t, f*pe_dim)
    inputs = inputs + x_pe[:, None, :, :]            # broadcast over v
    enc_output = inputs
    cluster_mat = []
    for i, _io in enumerate(io_list):
        lp = params[i]
        enc_output, cluster = cluster_block_forward(
            enc_output, graphs, lp['cb'], k_cluster, num_graph, atrous_k)
        cluster_mat.append(cluster)
        enc_flat = jnp.mean(enc_output, axis=1)      # (b, t, f1)
        enc_output = mha_forward(enc_flat, enc_flat, enc_output, lp['mha'])
        d_out = lp['ffn']['w2'].shape[1]
        enc_output = ffn(enc_output.reshape(-1, enc_output.shape[-1]),
                         lp['ffn']['w1'], lp['ffn']['w2']
                         ).reshape(enc_output.shape[:-1] + (d_out,))
    return enc_output, cluster_mat


# ----------------------------------------------------------------------------
# Deterministic parameter init (weights stored transposed: (in, out))
# ----------------------------------------------------------------------------
def init_params(key, v, t, k_cluster, io_list, num_graph=3, atrous_k=2):
    keys = iter(jax.random.split(key, 512))

    def nrm(shape, scale=0.3):
        return scale * jax.random.normal(next(keys), shape, jnp.float32)

    params = []
    for io in io_list:
        f0, f1, f_hid, f_out = io
        cb = {
            'cluster_w': [nrm((t * f0, k_cluster)) for _ in range(num_graph)],
            'cgat': [[[{'W': nrm((f0, f1)),
                        'Wb': nrm((f1,)),
                        'Wt': nrm((t,)),
                        'a': nrm((2 * f1,))}
                       for _ in range(k_cluster)]
                      for _ in range(num_graph)]
                     for _ in range(atrous_k)],
            'ln_g': jnp.ones((f1,), jnp.float32),
            'ln_b': jnp.zeros((f1,), jnp.float32),
        }
        mha = {
            'w_qs': nrm((f1, f_hid)),
            'w_ks': nrm((f1, f_hid)),
            'w_vs': nrm((f1, f_hid)),
            'fc': nrm((f_hid, f_out)),
            'ln_g': jnp.ones((f_out,), jnp.float32),
            'ln_b': jnp.zeros((f_out,), jnp.float32),
        }
        ffn_p = {'w1': nrm((f_out, 2 * f_out)), 'w2': nrm((2 * f_out, f_out))}
        params.append({'cb': cb, 'mha': mha, 'ffn': ffn_p})
    return params


# ----------------------------------------------------------------------------
if __name__ == "__main__":
    b, v, t = 2, 4, 8
    pe_dim = 5
    k_cluster = 2
    io_list = [[5, 8, 8, 8], [8, 8, 8, 8]]   # toy config from the module docstring
    num_graph, atrous_k = 3, 2

    key = jax.random.PRNGKey(0)
    k1, k2, k3, kp = jax.random.split(key, 4)
    x_d = jax.random.normal(k1, (b, v, t, 1), jnp.float32)
    x_pe = jax.random.normal(k2, (b, t, pe_dim), jnp.float32)
    gkeys = jax.random.split(k3, num_graph)
    graphs = []
    for g in range(num_graph):
        adj = (jax.random.uniform(gkeys[g], (v, v)) > 0.4).astype(jnp.float32)
        adj = jnp.maximum(adj, jnp.eye(v, dtype=jnp.float32))
        graphs.append(adj)

    params = init_params(kp, v, t, k_cluster, io_list, num_graph, atrous_k)

    fwd = jax.jit(functools.partial(
        encoder_forward, io_list=io_list, k_cluster=k_cluster, pe_dim=pe_dim,
        num_graph=num_graph, atrous_k=atrous_k))

    enc_out, cluster_mat = fwd(x_d, x_pe, graphs, params)
    enc_out = jax.block_until_ready(enc_out)
    assert enc_out.shape == (b, v, t, io_list[-1][-1])
    assert len(cluster_mat) == len(io_list)
    assert cluster_mat[0][0].shape == (b, v, k_cluster)
    print("KERNEL_OK")
</pallas_src>

<mosaic_0001>
module attributes {stable_mosaic.version = 11 : i64} {
  func.func @_linear_bias_kernel(%arg0: memref<64x5xf32, #tpu.memory_space<vmem>>, %arg1: memref<5x96xf32, #tpu.memory_space<vmem>>, %arg2: memref<1x96xf32, #tpu.memory_space<vmem>>, %arg3: memref<64x96xf32, #tpu.memory_space<vmem>>) attributes {dimension_semantics = [], scalar_prefetch = 0 : i64, scratch_operands = 0 : i64, tpu.core_type = #tpu.core_type<tc>} {
    %c0 = arith.constant 0 : index
    %c0_0 = arith.constant 0 : index
    %0 = vector.load %arg0[%c0, %c0_0] : memref<64x5xf32, #tpu.memory_space<vmem>>, vector<64x5xf32>
    %c0_1 = arith.constant 0 : index
    %c0_2 = arith.constant 0 : index
    %1 = vector.load %arg1[%c0_1, %c0_2] : memref<5x96xf32, #tpu.memory_space<vmem>>, vector<5x96xf32>
    %cst = arith.constant dense<0.000000e+00> : vector<64x96xf32>
    %2 = tpu.matmul %0, %1, %cst {dimension_numbers = #tpu.dot_dimension_numbers<[1], [0], [0], [1], [0, 0, 1, 1], [], []>} : vector<64x5xf32>, vector<5x96xf32>, vector<64x96xf32> -> vector<64x96xf32>
    %c0_3 = arith.constant 0 : index
    %c0_4 = arith.constant 0 : index
    %3 = vector.load %arg2[%c0_3, %c0_4] : memref<1x96xf32, #tpu.memory_space<vmem>>, vector<1x96xf32>
    %4 = vector.broadcast %3 : vector<1x96xf32> to vector<64x96xf32>
    %5 = arith.addf %2, %4 : vector<64x96xf32>
    %cst_5 = arith.constant 0.000000e+00 : f32
    %6 = vector.broadcast %cst_5 : f32 to vector<64x96xf32>
    %7 = arith.cmpf oge, %5, %6 : vector<64x96xf32>
    %cst_6 = arith.constant 4.000000e+00 : f32
    %8 = vector.broadcast %cst_6 : f32 to vector<64x96xf32>
    %9 = arith.mulf %8, %5 : vector<64x96xf32>
    %10 = arith.select %7, %5, %9 : vector<64x96xi1>, vector<64x96xf32>
    %c0_7 = arith.constant 0 : index
    %c0_8 = arith.constant 0 : index
    %11 = vector.load %arg3[%c0_7, %c0_8] : memref<64x96xf32, #tpu.memory_space<vmem>>, vector<64x96xf32>
    tpu.vector_store %arg3[%c0_7, %c0_8], %10 {strides = array<i32>} : memref<64x96xf32, #tpu.memory_space<vmem>>, vector<64x96xf32>,
    return
  }
}

module attributes {stable_mosaic.version = 11 : i64} {
  func.func @_cgat_ht_kernel(%arg0: memref<4x16x96xf32, #tpu.memory_space<vmem>>, %arg1: memref<16x96xf32, #tpu.memory_space<vmem>>, %arg2: memref<4x96xf32, #tpu.memory_space<vmem>>) attributes {dimension_semantics = [], scalar_prefetch = 0 : i64, scratch_operands = 0 : i64, tpu.core_type = #tpu.core_type<tc>} {
    %c0 = arith.constant 0 : index
    %c0_0 = arith.constant 0 : index
    %c0_1 = arith.constant 0 : index
    %0 = vector.load %arg0[%c0, %c0_0, %c0_1] : memref<4x16x96xf32, #tpu.memory_space<vmem>>, vector<4x16x96xf32>
    %c0_2 = arith.constant 0 : index
    %c0_3 = arith.constant 0 : index
    %1 = vector.load %arg1[%c0_2, %c0_3] : memref<16x96xf32, #tpu.memory_space<vmem>>, vector<16x96xf32>
    %2 = vector.shape_cast %1 : vector<16x96xf32> to vector<1x16x96xf32>
    %3 = vector.broadcast %2 : vector<1x16x96xf32> to vector<4x16x96xf32>
    %4 = arith.mulf %0, %3 : vector<4x16x96xf32>
    %cst = arith.constant dense<0.000000e+00> : vector<4x96xf32>
    %5 = vector.multi_reduction <add>, %4, %cst [1] : vector<4x16x96xf32> to vector<4x96xf32>
    %c0_4 = arith.constant 0 : index
    %c0_5 = arith.constant 0 : index
    %6 = vector.load %arg2[%c0_4, %c0_5] : memref<4x96xf32, #tpu.memory_space<vmem>>, vector<4x96xf32>
    tpu.vector_store %arg2[%c0_4, %c0_5], %5 {strides = array<i32>} : memref<4x96xf32, #tpu.memory_space<vmem>>, vector<4x96xf32>,
    return
  }
}

module attributes {stable_mosaic.version = 11 : i64} {
  func.func @_cluster_softmax_kernel(%arg0: memref<8x40xf32, #tpu.memory_space<vmem>>, %arg1: memref<40x6xf32, #tpu.memory_space<vmem>>, %arg2: memref<6x6xf32, #tpu.memory_space<vmem>>, %arg3: memref<8x6xf32, #tpu.memory_space<vmem>>) attributes {dimension_semantics = [], scalar_prefetch = 0 : i64, scratch_operands = 0 : i64, tpu.core_type = #tpu.core_type<tc>} {
    %c0 = arith.constant 0 : index
    %c0_0 = arith.constant 0 : index
    %0 = vector.load %arg0[%c0, %c0_0] : memref<8x40xf32, #tpu.memory_space<vmem>>, vector<8x40xf32>
    %c0_1 = arith.constant 0 : index
    %c0_2 = arith.constant 0 : index
    %1 = vector.load %arg1[%c0_1, %c0_2] : memref<40x6xf32, #tpu.memory_space<vmem>>, vector<40x6xf32>
    %cst = arith.constant dense<0.000000e+00> : vector<8x6xf32>
    %2 = tpu.matmul %0, %1, %cst {dimension_numbers = #tpu.dot_dimension_numbers<[1], [0], [0], [1], [0, 0, 1, 1], [], []>} : vector<8x40xf32>, vector<40x6xf32>, vector<8x6xf32> -> vector<8x6xf32>
    %cst_3 = arith.constant dense<0xFF800000> : vector<8xf32>
    %3 = vector.multi_reduction <maximumf>, %2, %cst_3 [1] : vector<8x6xf32> to vector<8xf32>
    %4 = vector.shape_cast %3 : vector<8xf32> to vector<8x1xf32>
    %5 = vector.broadcast %4 : vector<8x1xf32> to vector<8x6xf32>
    %6 = arith.subf %2, %5 : vector<8x6xf32>
    %7 = math.exp %6 : vector<8x6xf32>
    %c0_4 = arith.constant 0 : index
    %c0_5 = arith.constant 0 : index
    %8 = vector.load %arg2[%c0_4, %c0_5] : memref<6x6xf32, #tpu.memory_space<vmem>>, vector<6x6xf32>
    %cst_6 = arith.constant dense<0.000000e+00> : vector<8x6xf32>
    %9 = tpu.matmul %7, %8, %cst_6 {dimension_numbers = #tpu.dot_dimension_numbers<[1], [0], [0], [1], [0, 0, 1, 1], [], []>} : vector<8x6xf32>, vector<6x6xf32>, vector<8x6xf32> -> vector<8x6xf32>
    %10 = tpu.reciprocal %9 {approx = true} : vector<8x6xf32> -> vector<8x6xf32>
    %11 = arith.mulf %7, %10 : vector<8x6xf32>
    %c0_7 = arith.constant 0 : index
    %c0_8 = arith.constant 0 : index
    %12 = vector.load %arg3[%c0_7, %c0_8] : memref<8x6xf32, #tpu.memory_space<vmem>>, vector<8x6xf32>
    tpu.vector_store %arg3[%c0_7, %c0_8], %11 {strides = array<i32>} : memref<8x6xf32, #tpu.memory_space<vmem>>, vector<8x6xf32>,
    return
  }
}

module attributes {stable_mosaic.version = 11 : i64} {
  func.func @_cgat_mix_kernel(%arg0: memref<4x16x96xf32, #tpu.memory_space<vmem>>, %arg1: memref<4x96xf32, #tpu.memory_space<vmem>>, %arg2: memref<96x96xf32, #tpu.memory_space<vmem>>, %arg3: memref<96x96xf32, #tpu.memory_space<vmem>>, %arg4: memref<4x4x96xf32, #tpu.memory_space<vmem>>, %arg5: memref<4x4x96xf32, #tpu.memory_space<vmem>>, %arg6: memref<4x16x96xf32, #tpu.memory_space<vmem>>, %arg7: memref<1x1x8xf32, #tpu.memory_space<vmem>>, %arg8: memref<1x1x8xf32, #tpu.memory_space<vmem>>, %arg9: memref<4x16x8xf32, #tpu.memory_space<vmem>>) attributes {dimension_semantics = [], scalar_prefetch = 0 : i64, scratch_operands = 0 : i64, tpu.core_type = #tpu.core_type<tc>} {
    %c0 = arith.constant 0 : index
    %c0_0 = arith.constant 0 : index
    %0 = vector.load %arg1[%c0, %c0_0] : memref<4x96xf32, #tpu.memory_space<vmem>>, vector<4x96xf32>
    %c0_1 = arith.constant 0 : index
    %c0_2 = arith.constant 0 : index
    %1 = vector.load %arg3[%c0_1, %c0_2] : memref<96x96xf32, #tpu.memory_space<vmem>>, vector<96x96xf32>
    %cst = arith.constant dense<0.000000e+00> : vector<4x96xf32>
    %2 = tpu.matmul %0, %1, %cst {dimension_numbers = #tpu.dot_dimension_numbers<[1], [0], [0], [1], [0, 0, 1, 1], [], []>} : vector<4x96xf32>, vector<96x96xf32>, vector<4x96xf32> -> vector<4x96xf32>
    %c0_3 = arith.constant 0 : index
    %c0_4 = arith.constant 0 : index
    %3 = vector.load %arg2[%c0_3, %c0_4] : memref<96x96xf32, #tpu.memory_space<vmem>>, vector<96x96xf32>
    %cst_5 = arith.constant dense<0.000000e+00> : vector<4x96xf32>
    %4 = tpu.matmul %0, %3, %cst_5 {dimension_numbers = #tpu.dot_dimension_numbers<[1], [0], [0], [1], [0, 0, 1, 1], [], []>} : vector<4x96xf32>, vector<96x96xf32>, vector<4x96xf32> -> vector<4x96xf32>
    %5 = vector.shape_cast %2 : vector<4x96xf32> to vector<4x1x96xf32>
    %6 = vector.shape_cast %4 : vector<4x96xf32> to vector<1x4x96xf32>
    %7 = vector.broadcast %5 : vector<4x1x96xf32> to vector<4x4x96xf32>
    %8 = vector.broadcast %6 : vector<1x4x96xf32> to vector<4x4x96xf32>
    %9 = arith.addf %7, %8 : vector<4x4x96xf32>
    %cst_6 = arith.constant 0.000000e+00 : f32
    %10 = vector.broadcast %cst_6 : f32 to vector<4x4x96xf32>
    %11 = arith.cmpf oge, %9, %10 : vector<4x4x96xf32>
    %cst_7 = arith.constant 4.000000e+00 : f32
    %12 = vector.broadcast %cst_7 : f32 to vector<4x4x96xf32>
    %13 = arith.mulf %12, %9 : vector<4x4x96xf32>
    %14 = arith.select %11, %9, %13 : vector<4x4x96xi1>, vector<4x4x96xf32>
    %c0_8 = arith.constant 0 : index
    %c0_9 = arith.constant 0 : index
    %c0_10 = arith.constant 0 : index
    %15 = vector.load %arg5[%c0_8, %c0_9, %c0_10] : memref<4x4x96xf32, #tpu.memory_space<vmem>>, vector<4x4x96xf32>
    %cst_11 = arith.constant 0.000000e+00 : f32
    %16 = vector.broadcast %cst_11 : f32 to vector<4x4x96xf32>
    %17 = arith.cmpf ogt, %15, %16 : vector<4x4x96xf32>
    %cst_12 = arith.constant -9.000000e+15 : f32
    %18 = vector.broadcast %cst_12 : f32 to vector<4x4x96xf32>
    %19 = arith.select %17, %14, %18 : vector<4x4x96xi1>, vector<4x4x96xf32>
    %c0_13 = arith.constant 0 : index
    %c0_14 = arith.constant 0 : index
    %c0_15 = arith.constant 0 : index
    %20 = vector.load %arg4[%c0_13, %c0_14, %c0_15] : memref<4x4x96xf32, #tpu.memory_space<vmem>>, vector<4x4x96xf32>
    %cst_16 = arith.constant 0.000000e+00 : f32
    %21 = vector.broadcast %cst_16 : f32 to vector<4x4x96xf32>
    %22 = arith.cmpf ogt, %20, %21 : vector<4x4x96xf32>
    %cst_17 = arith.constant 0xFF800000 : f32
    %23 = vector.broadcast %cst_17 : f32 to vector<4x4x96xf32>
    %24 = arith.select %22, %19, %23 : vector<4x4x96xi1>, vector<4x4x96xf32>
    %cst_18 = arith.constant dense<0xFF800000> : vector<4x96xf32>
    %25 = vector.multi_reduction <maximumf>, %24, %cst_18 [1] : vector<4x4x96xf32> to vector<4x96xf32>
    %26 = vector.shape_cast %25 : vector<4x96xf32> to vector<4x1x96xf32>
    %27 = vector.broadcast %26 : vector<4x1x96xf32> to vector<4x4x96xf32>
    %28 = arith.subf %24, %27 : vector<4x4x96xf32>
    %29 = math.exp %28 : vector<4x4x96xf32>
    %cst_19 = arith.constant dense<0.000000e+00> : vector<4x96xf32>
    %30 = vector.multi_reduction <add>, %29, %cst_19 [1] : vector<4x4x96xf32> to vector<4x96xf32>
    %31 = vector.shape_cast %30 : vector<4x96xf32> to vector<4x1x96xf32>
    %32 = tpu.reciprocal %31 {approx = true} : vector<4x1x96xf32> -> vector<4x1x96xf32>
    %33 = vector.broadcast %32 : vector<4x1x96xf32> to vector<4x4x96xf32>
    %34 = arith.mulf %29, %33 : vector<4x4x96xf32>
    %c0_20 = arith.constant 0 : index
    %c0_21 = arith.constant 0 : index
    %c0_22 = arith.constant 0 : index
    %35 = vector.load %arg0[%c0_20, %c0_21, %c0_22] : memref<4x16x96xf32, #tpu.memory_space<vmem>>, vector<4x16x96xf32>
    %36 = vector.extract_strided_slice %34 {offsets = [0, 0, 0], sizes = [4, 1, 96], strides = [1, 1, 1]} : vector<4x4x96xf32> to vector<4x1x96xf32>
    %37 = vector.extract_strided_slice %35 {offsets = [0, 0, 0], sizes = [1, 16, 96], strides = [1, 1, 1]} : vector<4x16x96xf32> to vector<1x16x96xf32>
    %38 = vector.broadcast %36 : vector<4x1x96xf32> to vector<4x16x96xf32>
    %39 = vector.broadcast %37 : vector<1x16x96xf32> to vector<4x16x96xf32>
    %40 = arith.mulf %38, %39 : vector<4x16x96xf32>
    %41 = vector.extract_strided_slice %34 {offsets = [0, 1, 0], sizes = [4, 1, 96], strides = [1, 1, 1]} : vector<4x4x96xf32> to vector<4x1x96xf32>
    %42 = vector.extract_strided_slice %35 {offsets = [1, 0, 0], sizes = [1, 16, 96], strides = [1, 1, 1]} : vector<4x16x96xf32> to vector<1x16x96xf32>
    %43 = vector.broadcast %41 : vector<4x1x96xf32> to vector<4x16x96xf32>
    %44 = vector.broadcast %42 : vector<1x16x96xf32> to vector<4x16x96xf32>
    %45 = arith.mulf %43, %44 : vector<4x16x96xf32>
    %46 = arith.addf %40, %45 : vector<4x16x96xf32>
    %47 = vector.extract_strided_slice %34 {offsets = [0, 2, 0], sizes = [4, 1, 96], strides = [1, 1, 1]} : vector<4x4x96xf32> to vector<4x1x96xf32>
    %48 = vector.extract_strided_slice %35 {offsets = [2, 0, 0], sizes = [1, 16, 96], strides = [1, 1, 1]} : vector<4x16x96xf32> to vector<1x16x96xf32>
    %49 = vector.broadcast %47 : vector<4x1x96xf32> to vector<4x16x96xf32>
    %50 = vector.broadcast %48 : vector<1x16x96xf32> to vector<4x16x96xf32>
    %51 = arith.mulf %49, %50 : vector<4x16x96xf32>
    %52 = arith.addf %46, %51 : vector<4x16x96xf32>
    %53 = vector.extract_strided_slice %34 {offsets = [0, 3, 0], sizes = [4, 1, 96], strides = [1, 1, 1]} : vector<4x4x96xf32> to vector<4x1x96xf32>
    %54 = vector.extract_strided_slice %35 {offsets = [3, 0, 0], sizes = [1, 16, 96], strides = [1, 1, 1]} : vector<4x16x96xf32> to vector<1x16x96xf32>
    %55 = vector.broadcast %53 : vector<4x1x96xf32> to vector<4x16x96xf32>
    %56 = vector.broadcast %54 : vector<1x16x96xf32> to vector<4x16x96xf32>
    %57 = arith.mulf %55, %56 : vector<4x16x96xf32>
    %58 = arith.addf %52, %57 : vector<4x16x96xf32>
    %cst_23 = arith.constant 0.000000e+00 : f32
    %59 = vector.broadcast %cst_23 : f32 to vector<4x16x96xf32>
    %60 = arith.cmpf oge, %58, %59 : vector<4x16x96xf32>
    %cst_24 = arith.constant 4.000000e+00 : f32
    %61 = vector.broadcast %cst_24 : f32 to vector<4x16x96xf32>
    %62 = arith.mulf %61, %58 : vector<4x16x96xf32>
    %63 = arith.select %60, %58, %62 : vector<4x16x96xi1>, vector<4x16x96xf32>
    %c0_25 = arith.constant 0 : index
    %c0_26 = arith.constant 0 : index
    %c0_27 = arith.constant 0 : index
    %64 = vector.load %arg6[%c0_25, %c0_26, %c0_27] : memref<4x16x96xf32, #tpu.memory_space<vmem>>, vector<4x16x96xf32>
    %65 = arith.mulf %63, %64 : vector<4x16x96xf32>
    %66 = vector.extract_strided_slice %65 {offsets = [0, 0, 0], sizes = [4, 16, 8], strides = [1, 1, 1]} : vector<4x16x96xf32> to vector<4x16x8xf32>
    %67 = vector.extract_strided_slice %65 {offsets = [0, 0, 8], sizes = [4, 16, 8], strides = [1, 1, 1]} : vector<4x16x96xf32> to vector<4x16x8xf32>
    %68 = arith.addf %66, %67 : vector<4x16x8xf32>
    %69 = vector.extract_strided_slice %65 {offsets = [0, 0, 16], sizes = [4, 16, 8], strides = [1, 1, 1]} : vector<4x16x96xf32> to vector<4x16x8xf32>
    %70 = arith.addf %68, %69 : vector<4x16x8xf32>
    %71 = vector.extract_strided_slice %65 {offsets = [0, 0, 24], sizes = [4, 16, 8], strides = [1, 1, 1]} : vector<4x16x96xf32> to vector<4x16x8xf32>
    %72 = arith.addf %70, %71 : vector<4x16x8xf32>
    %73 = vector.extract_strided_slice %65 {offsets = [0, 0, 32], sizes = [4, 16, 8], strides = [1, 1, 1]} : vector<4x16x96xf32> to vector<4x16x8xf32>
    %74 = arith.addf %72, %73 : vector<4x16x8xf32>
    %75 = vector.extract_strided_slice %65 {offsets = [0, 0, 40], sizes = [4, 16, 8], strides = [1, 1, 1]} : vector<4x16x96xf32> to vector<4x16x8xf32>
    %76 = arith.addf %74, %75 : vector<4x16x8xf32>
    %77 = vector.extract_strided_slice %65 {offsets = [0, 0, 48], sizes = [4, 16, 8], strides = [1, 1, 1]} : vector<4x16x96xf32> to vector<4x16x8xf32>
    %78 = arith.addf %76, %77 : vector<4x16x8xf32>
    %79 = vector.extract_strided_slice %65 {offsets = [0, 0, 56], sizes = [4, 16, 8], strides = [1, 1, 1]} : vector<4x16x96xf32> to vector<4x16x8xf32>
    %80 = arith.addf %78, %79 : vector<4x16x8xf32>
    %81 = vector.extract_strided_slice %65 {offsets = [0, 0, 64], sizes = [4, 16, 8], strides = [1, 1, 1]} : vector<4x16x96xf32> to vector<4x16x8xf32>
    %82 = arith.addf %80, %81 : vector<4x16x8xf32>
    %83 = vector.extract_strided_slice %65 {offsets = [0, 0, 72], sizes = [4, 16, 8], strides = [1, 1, 1]} : vector<4x16x96xf32> to vector<4x16x8xf32>
    %84 = arith.addf %82, %83 : vector<4x16x8xf32>
    %85 = vector.extract_strided_slice %65 {offsets = [0, 0, 80], sizes = [4, 16, 8], strides = [1, 1, 1]} : vector<4x16x96xf32> to vector<4x16x8xf32>
    %86 = arith.addf %84, %85 : vector<4x16x8xf32>
    %87 = vector.extract_strided_slice %65 {offsets = [0, 0, 88], sizes = [4, 16, 8], strides = [1, 1, 1]} : vector<4x16x96xf32> to vector<4x16x8xf32>
    %88 = arith.addf %86, %87 : vector<4x16x8xf32>
    %cst_28 = arith.constant dense<0.000000e+00> : vector<4x16xf32>
    %89 = vector.multi_reduction <add>, %88, %cst_28 [2] : vector<4x16x8xf32> to vector<4x16xf32>
    %90 = vector.shape_cast %89 : vector<4x16xf32> to vector<4x16x1xf32>
    %cst_29 = arith.constant 8.000000e+00 : f32
    %91 = vector.broadcast %cst_29 : f32 to vector<4x16x1xf32>
    %92 = arith.divf %90, %91 : vector<4x16x1xf32>
    %93 = vector.broadcast %92 : vector<4x16x1xf32> to vector<4x16x8xf32>
    %94 = arith.subf %88, %93 : vector<4x16x8xf32>
    %95 = arith.mulf %94, %94 : vector<4x16x8xf32>
    %cst_30 = arith.constant dense<0.000000e+00> : vector<4x16xf32>
    %96 = vector.multi_reduction <add>, %95, %cst_30 [2] : vector<4x16x8xf32> to vector<4x16xf32>
    %97 = vector.shape_cast %96 : vector<4x16xf32> to vector<4x16x1xf32>
    %cst_31 = arith.constant 8.000000e+00 : f32
    %98 = vector.broadcast %cst_31 : f32 to vector<4x16x1xf32>
    %99 = arith.divf %97, %98 : vector<4x16x1xf32>
    %cst_32 = arith.constant 9.99999974E-6 : f32
    %100 = vector.broadcast %cst_32 : f32 to vector<4x16x1xf32>
    %101 = arith.addf %99, %100 : vector<4x16x1xf32>
    %102 = math.rsqrt %101 : vector<4x16x1xf32>
    %103 = vector.broadcast %102 : vector<4x16x1xf32> to vector<4x16x8xf32>
    %104 = arith.mulf %94, %103 : vector<4x16x8xf32>
    %c0_33 = arith.constant 0 : index
    %c0_34 = arith.constant 0 : index
    %c0_35 = arith.constant 0 : index
    %105 = vector.load %arg7[%c0_33, %c0_34, %c0_35] : memref<1x1x8xf32, #tpu.memory_space<vmem>>, vector<1x1x8xf32>
    %106 = vector.broadcast %105 : vector<1x1x8xf32> to vector<4x16x8xf32>
    %107 = arith.mulf %104, %106 : vector<4x16x8xf32>
    %c0_36 = arith.constant 0 : index
    %c0_37 = arith.constant 0 : index
    %c0_38 = arith.constant 0 : index
    %108 = vector.load %arg8[%c0_36, %c0_37, %c0_38] : memref<1x1x8xf32, #tpu.memory_space<vmem>>, vector<1x1x8xf32>
    %109 = vector.broadcast %108 : vector<1x1x8xf32> to vector<4x16x8xf32>
    %110 = arith.addf %107, %109 : vector<4x16x8xf32>
    %c0_39 = arith.constant 0 : index
    %c0_40 = arith.constant 0 : index
    %c0_41 = arith.constant 0 : index
    %111 = vector.load %arg9[%c0_39, %c0_40, %c0_41] : memref<4x16x8xf32, #tpu.memory_space<vmem>>, vector<4x16x8xf32>
    tpu.vector_store %arg9[%c0_39, %c0_40, %c0_41], %110 {strides = array<i32>} : memref<4x16x8xf32, #tpu.memory_space<vmem>>, vector<4x16x8xf32>,
    return
  }
}

module attributes {stable_mosaic.version = 11 : i64} {
  func.func @_linear_kernel(%arg0: memref<16x8xf32, #tpu.memory_space<vmem>>, %arg1: memref<8x16xf32, #tpu.memory_space<vmem>>, %arg2: memref<16x16xf32, #tpu.memory_space<vmem>>) attributes {dimension_semantics = [], scalar_prefetch = 0 : i64, scratch_operands = 0 : i64, tpu.core_type = #tpu.core_type<tc>} {
    %c0 = arith.constant 0 : index
    %c0_0 = arith.constant 0 : index
    %0 = vector.load %arg0[%c0, %c0_0] : memref<16x8xf32, #tpu.memory_space<vmem>>, vector<16x8xf32>
    %c0_1 = arith.constant 0 : index
    %c0_2 = arith.constant 0 : index
    %1 = vector.load %arg1[%c0_1, %c0_2] : memref<8x16xf32, #tpu.memory_space<vmem>>, vector<8x16xf32>
    %cst = arith.constant dense<0.000000e+00> : vector<16x16xf32>
    %2 = tpu.matmul %0, %1, %cst {dimension_numbers = #tpu.dot_dimension_numbers<[1], [0], [0], [1], [0, 0, 1, 1], [], []>} : vector<16x8xf32>, vector<8x16xf32>, vector<16x16xf32> -> vector<16x16xf32>
    %c0_3 = arith.constant 0 : index
    %c0_4 = arith.constant 0 : index
    %3 = vector.load %arg2[%c0_3, %c0_4] : memref<16x16xf32, #tpu.memory_space<vmem>>, vector<16x16xf32>
    tpu.vector_store %arg2[%c0_3, %c0_4], %2 {strides = array<i32>} : memref<16x16xf32, #tpu.memory_space<vmem>>, vector<16x16xf32>,
    return
  }
}

module attributes {stable_mosaic.version = 11 : i64} {
  func.func @_linear_kernel(%arg0: memref<64x8xf32, #tpu.memory_space<vmem>>, %arg1: memref<8x8xf32, #tpu.memory_space<vmem>>, %arg2: memref<64x8xf32, #tpu.memory_space<vmem>>) attributes {dimension_semantics = [], scalar_prefetch = 0 : i64, scratch_operands = 0 : i64, tpu.core_type = #tpu.core_type<tc>} {
    %c0 = arith.constant 0 : index
    %c0_0 = arith.constant 0 : index
    %0 = vector.load %arg0[%c0, %c0_0] : memref<64x8xf32, #tpu.memory_space<vmem>>, vector<64x8xf32>
    %c0_1 = arith.constant 0 : index
    %c0_2 = arith.constant 0 : index
    %1 = vector.load %arg1[%c0_1, %c0_2] : memref<8x8xf32, #tpu.memory_space<vmem>>, vector<8x8xf32>
    %cst = arith.constant dense<0.000000e+00> : vector<64x8xf32>
    %2 = tpu.matmul %0, %1, %cst {dimension_numbers = #tpu.dot_dimension_numbers<[1], [0], [0], [1], [0, 0, 1, 1], [], []>} : vector<64x8xf32>, vector<8x8xf32>, vector<64x8xf32> -> vector<64x8xf32>
    %c0_3 = arith.constant 0 : index
    %c0_4 = arith.constant 0 : index
    %3 = vector.load %arg2[%c0_3, %c0_4] : memref<64x8xf32, #tpu.memory_space<vmem>>, vector<64x8xf32>
    tpu.vector_store %arg2[%c0_3, %c0_4], %2 {strides = array<i32>} : memref<64x8xf32, #tpu.memory_space<vmem>>, vector<64x8xf32>,
    return
  }
}

module attributes {stable_mosaic.version = 11 : i64} {
  func.func @_sdp_kernel(%arg0: memref<2x8x8xf32, #tpu.memory_space<vmem>>, %arg1: memref<2x8x8xf32, #tpu.memory_space<vmem>>, %arg2: memref<2x8x32xf32, #tpu.memory_space<vmem>>, %arg3: memref<2x8x32xf32, #tpu.memory_space<vmem>>) attributes {dimension_semantics = [], scalar_prefetch = 0 : i64, scratch_operands = 0 : i64, tpu.core_type = #tpu.core_type<tc>} {
    %c0 = arith.constant 0 : index
    %c0_0 = arith.constant 0 : index
    %c0_1 = arith.constant 0 : index
    %0 = vector.load %arg0[%c0, %c0_0, %c0_1] : memref<2x8x8xf32, #tpu.memory_space<vmem>>, vector<2x8x8xf32>
    %c0_2 = arith.constant 0 : index
    %c0_3 = arith.constant 0 : index
    %c0_4 = arith.constant 0 : index
    %1 = vector.load %arg1[%c0_2, %c0_3, %c0_4] : memref<2x8x8xf32, #tpu.memory_space<vmem>>, vector<2x8x8xf32>
    "tpu.trace_start"() <{level = 10 : i32, message = "bqd,bkd->bqk"}> : () -> ()
    %cst = arith.constant dense<0.000000e+00> : vector<2x8x8xf32>
    %2 = tpu.matmul %0, %1, %cst {dimension_numbers = #tpu.dot_dimension_numbers<[2], [2], [1], [1], [0, 0, 0, 1, 1, 1], [0], [0]>} : vector<2x8x8xf32>, vector<2x8x8xf32>, vector<2x8x8xf32> -> vector<2x8x8xf32>
    "tpu.trace_stop"() : () -> ()
    %cst_5 = arith.constant 2.82842708 : f32
    %3 = vector.broadcast %cst_5 : f32 to vector<2x8x8xf32>
    %4 = arith.divf %2, %3 : vector<2x8x8xf32>
    %cst_6 = arith.constant dense<0xFF800000> : vector<2x8xf32>
    %5 = vector.multi_reduction <maximumf>, %4, %cst_6 [2] : vector<2x8x8xf32> to vector<2x8xf32>
    %6 = vector.shape_cast %5 : vector<2x8xf32> to vector<2x8x1xf32>
    %7 = vector.broadcast %6 : vector<2x8x1xf32> to vector<2x8x8xf32>
    %8 = arith.subf %4, %7 : vector<2x8x8xf32>
    %9 = math.exp %8 : vector<2x8x8xf32>
    %cst_7 = arith.constant dense<0.000000e+00> : vector<2x8xf32>
    %10 = vector.multi_reduction <add>, %9, %cst_7 [2] : vector<2x8x8xf32> to vector<2x8xf32>
    %11 = vector.shape_cast %10 : vector<2x8xf32> to vector<2x8x1xf32>
    %12 = tpu.reciprocal %11 {approx = true} : vector<2x8x1xf32> -> vector<2x8x1xf32>
    %13 = vector.broadcast %12 : vector<2x8x1xf32> to vector<2x8x8xf32>
    %14 = arith.mulf %9, %13 : vector<2x8x8xf32>
    %c0_8 = arith.constant 0 : index
    %c0_9 = arith.constant 0 : index
    %c0_10 = arith.constant 0 : index
    %15 = vector.load %arg2[%c0_8, %c0_9, %c0_10] : memref<2x8x32xf32, #tpu.memory_space<vmem>>, vector<2x8x32xf32>
    "tpu.trace_start"() <{level = 10 : i32, message = "bqk,bkd->bqd"}> : () -> ()
    %cst_11 = arith.constant dense<0.000000e+00> : vector<2x8x32xf32>
    %16 = tpu.matmul %14, %15, %cst_11 {dimension_numbers = #tpu.dot_dimension_numbers<[2], [1], [1], [2], [0, 0, 0, 1, 1, 2], [0], [0]>} : vector<2x8x8xf32>, vector<2x8x32xf32>, vector<2x8x32xf32> -> vector<2x8x32xf32>
    "tpu.trace_stop"() : () -> ()
    %c0_12 = arith.constant 0 : index
    %c0_13 = arith.constant 0 : index
    %c0_14 = arith.constant 0 : index
    %17 = vector.load %arg3[%c0_12, %c0_13, %c0_14] : memref<2x8x32xf32, #tpu.memory_space<vmem>>, vector<2x8x32xf32>
    tpu.vector_store %arg3[%c0_12, %c0_13, %c0_14], %16 {strides = array<i32>} : memref<2x8x32xf32, #tpu.memory_space<vmem>>, vector<2x8x32xf32>,
    return
  }
}

module attributes {stable_mosaic.version = 11 : i64} {
  func.func @_linear_ln_kernel(%arg0: memref<64x8xf32, #tpu.memory_space<vmem>>, %arg1: memref<8x8xf32, #tpu.memory_space<vmem>>, %arg2: memref<1x8xf32, #tpu.memory_space<vmem>>, %arg3: memref<1x8xf32, #tpu.memory_space<vmem>>, %arg4: memref<64x8xf32, #tpu.memory_space<vmem>>) attributes {dimension_semantics = [], scalar_prefetch = 0 : i64, scratch_operands = 0 : i64, tpu.core_type = #tpu.core_type<tc>} {
    %c0 = arith.constant 0 : index
    %c0_0 = arith.constant 0 : index
    %0 = vector.load %arg0[%c0, %c0_0] : memref<64x8xf32, #tpu.memory_space<vmem>>, vector<64x8xf32>
    %c0_1 = arith.constant 0 : index
    %c0_2 = arith.constant 0 : index
    %1 = vector.load %arg1[%c0_1, %c0_2] : memref<8x8xf32, #tpu.memory_space<vmem>>, vector<8x8xf32>
    %cst = arith.constant dense<0.000000e+00> : vector<64x8xf32>
    %2 = tpu.matmul %0, %1, %cst {dimension_numbers = #tpu.dot_dimension_numbers<[1], [0], [0], [1], [0, 0, 1, 1], [], []>} : vector<64x8xf32>, vector<8x8xf32>, vector<64x8xf32> -> vector<64x8xf32>
    %cst_3 = arith.constant 0.000000e+00 : f32
    %3 = vector.broadcast %cst_3 : f32 to vector<64x8xf32>
    %4 = arith.cmpf oge, %2, %3 : vector<64x8xf32>
    %cst_4 = arith.constant 2.000000e-01 : f32
    %5 = vector.broadcast %cst_4 : f32 to vector<64x8xf32>
    %6 = arith.mulf %5, %2 : vector<64x8xf32>
    %7 = arith.select %4, %2, %6 : vector<64x8xi1>, vector<64x8xf32>
    %cst_5 = arith.constant dense<0.000000e+00> : vector<64xf32>
    %8 = vector.multi_reduction <add>, %7, %cst_5 [1] : vector<64x8xf32> to vector<64xf32>
    %9 = vector.shape_cast %8 : vector<64xf32> to vector<64x1xf32>
    %cst_6 = arith.constant 8.000000e+00 : f32
    %10 = vector.broadcast %cst_6 : f32 to vector<64x1xf32>
    %11 = arith.divf %9, %10 : vector<64x1xf32>
    %12 = vector.broadcast %11 : vector<64x1xf32> to vector<64x8xf32>
    %13 = arith.subf %7, %12 : vector<64x8xf32>
    %14 = arith.mulf %13, %13 : vector<64x8xf32>
    %cst_7 = arith.constant dense<0.000000e+00> : vector<64xf32>
    %15 = vector.multi_reduction <add>, %14, %cst_7 [1] : vector<64x8xf32> to vector<64xf32>
    %16 = vector.shape_cast %15 : vector<64xf32> to vector<64x1xf32>
    %cst_8 = arith.constant 8.000000e+00 : f32
    %17 = vector.broadcast %cst_8 : f32 to vector<64x1xf32>
    %18 = arith.divf %16, %17 : vector<64x1xf32>
    %cst_9 = arith.constant 9.99999974E-6 : f32
    %19 = vector.broadcast %cst_9 : f32 to vector<64x1xf32>
    %20 = arith.addf %18, %19 : vector<64x1xf32>
    %21 = math.rsqrt %20 : vector<64x1xf32>
    %22 = vector.broadcast %21 : vector<64x1xf32> to vector<64x8xf32>
    %23 = arith.mulf %13, %22 : vector<64x8xf32>
    %c0_10 = arith.constant 0 : index
    %c0_11 = arith.constant 0 : index
    %24 = vector.load %arg2[%c0_10, %c0_11] : memref<1x8xf32, #tpu.memory_space<vmem>>, vector<1x8xf32>
    %25 = vector.broadcast %24 : vector<1x8xf32> to vector<64x8xf32>
    %26 = arith.mulf %23, %25 : vector<64x8xf32>
    %c0_12 = arith.constant 0 : index
    %c0_13 = arith.constant 0 : index
    %27 = vector.load %arg3[%c0_12, %c0_13] : memref<1x8xf32, #tpu.memory_space<vmem>>, vector<1x8xf32>
    %28 = vector.broadcast %27 : vector<1x8xf32> to vector<64x8xf32>
    %29 = arith.addf %26, %28 : vector<64x8xf32>
    %c0_14 = arith.constant 0 : index
    %c0_15 = arith.constant 0 : index
    %30 = vector.load %arg4[%c0_14, %c0_15] : memref<64x8xf32, #tpu.memory_space<vmem>>, vector<64x8xf32>
    tpu.vector_store %arg4[%c0_14, %c0_15], %29 {strides = array<i32>} : memref<64x8xf32, #tpu.memory_space<vmem>>, vector<64x8xf32>,
    return
  }
}

module attributes {stable_mosaic.version = 11 : i64} {
  func.func @_ffn_kernel(%arg0: memref<64x8xf32, #tpu.memory_space<vmem>>, %arg1: memref<8x16xf32, #tpu.memory_space<vmem>>, %arg2: memref<16x8xf32, #tpu.memory_space<vmem>>, %arg3: memref<64x8xf32, #tpu.memory_space<vmem>>) attributes {dimension_semantics = [], scalar_prefetch = 0 : i64, scratch_operands = 0 : i64, tpu.core_type = #tpu.core_type<tc>} {
    %c0 = arith.constant 0 : index
    %c0_0 = arith.constant 0 : index
    %0 = vector.load %arg0[%c0, %c0_0] : memref<64x8xf32, #tpu.memory_space<vmem>>, vector<64x8xf32>
    %c0_1 = arith.constant 0 : index
    %c0_2 = arith.constant 0 : index
    %1 = vector.load %arg1[%c0_1, %c0_2] : memref<8x16xf32, #tpu.memory_space<vmem>>, vector<8x16xf32>
    %cst = arith.constant dense<0.000000e+00> : vector<64x16xf32>
    %2 = tpu.matmul %0, %1, %cst {dimension_numbers = #tpu.dot_dimension_numbers<[1], [0], [0], [1], [0, 0, 1, 1], [], []>} : vector<64x8xf32>, vector<8x16xf32>, vector<64x16xf32> -> vector<64x16xf32>
    %cst_3 = arith.constant 0.000000e+00 : f32
    %3 = vector.broadcast %cst_3 : f32 to vector<64x16xf32>
    %4 = arith.cmpf oge, %2, %3 : vector<64x16xf32>
    %cst_4 = arith.constant 2.000000e-01 : f32
    %5 = vector.broadcast %cst_4 : f32 to vector<64x16xf32>
    %6 = arith.mulf %5, %2 : vector<64x16xf32>
    %7 = arith.select %4, %2, %6 : vector<64x16xi1>, vector<64x16xf32>
    %c0_5 = arith.constant 0 : index
    %c0_6 = arith.constant 0 : index
    %8 = vector.load %arg2[%c0_5, %c0_6] : memref<16x8xf32, #tpu.memory_space<vmem>>, vector<16x8xf32>
    %cst_7 = arith.constant dense<0.000000e+00> : vector<64x8xf32>
    %9 = tpu.matmul %7, %8, %cst_7 {dimension_numbers = #tpu.dot_dimension_numbers<[1], [0], [0], [1], [0, 0, 1, 1], [], []>} : vector<64x16xf32>, vector<16x8xf32>, vector<64x8xf32> -> vector<64x8xf32>
    %cst_8 = arith.constant 0.000000e+00 : f32
    %10 = vector.broadcast %cst_8 : f32 to vector<64x8xf32>
    %11 = arith.cmpf oge, %9, %10 : vector<64x8xf32>
    %cst_9 = arith.constant 2.000000e-01 : f32
    %12 = vector.broadcast %cst_9 : f32 to vector<64x8xf32>
    %13 = arith.mulf %12, %9 : vector<64x8xf32>
    %14 = arith.select %11, %9, %13 : vector<64x8xi1>, vector<64x8xf32>
    %c0_10 = arith.constant 0 : index
    %c0_11 = arith.constant 0 : index
    %15 = vector.load %arg3[%c0_10, %c0_11] : memref<64x8xf32, #tpu.memory_space<vmem>>, vector<64x8xf32>
    tpu.vector_store %arg3[%c0_10, %c0_11], %14 {strides = array<i32>} : memref<64x8xf32, #tpu.memory_space<vmem>>, vector<64x8xf32>,
    return
  }
}

module attributes {stable_mosaic.version = 11 : i64} {
  func.func @_linear_bias_kernel(%arg0: memref<64x8xf32, #tpu.memory_space<vmem>>, %arg1: memref<8x96xf32, #tpu.memory_space<vmem>>, %arg2: memref<1x96xf32, #tpu.memory_space<vmem>>, %arg3: memref<64x96xf32, #tpu.memory_space<vmem>>) attributes {dimension_semantics = [], scalar_prefetch = 0 : i64, scratch_operands = 0 : i64, tpu.core_type = #tpu.core_type<tc>} {
    %c0 = arith.constant 0 : index
    %c0_0 = arith.constant 0 : index
    %0 = vector.load %arg0[%c0, %c0_0] : memref<64x8xf32, #tpu.memory_space<vmem>>, vector<64x8xf32>
    %c0_1 = arith.constant 0 : index
    %c0_2 = arith.constant 0 : index
    %1 = vector.load %arg1[%c0_1, %c0_2] : memref<8x96xf32, #tpu.memory_space<vmem>>, vector<8x96xf32>
    %cst = arith.constant dense<0.000000e+00> : vector<64x96xf32>
    %2 = tpu.matmul %0, %1, %cst {dimension_numbers = #tpu.dot_dimension_numbers<[1], [0], [0], [1], [0, 0, 1, 1], [], []>} : vector<64x8xf32>, vector<8x96xf32>, vector<64x96xf32> -> vector<64x96xf32>
    %c0_3 = arith.constant 0 : index
    %c0_4 = arith.constant 0 : index
    %3 = vector.load %arg2[%c0_3, %c0_4] : memref<1x96xf32, #tpu.memory_space<vmem>>, vector<1x96xf32>
    %4 = vector.broadcast %3 : vector<1x96xf32> to vector<64x96xf32>
    %5 = arith.addf %2, %4 : vector<64x96xf32>
    %cst_5 = arith.constant 0.000000e+00 : f32
    %6 = vector.broadcast %cst_5 : f32 to vector<64x96xf32>
    %7 = arith.cmpf oge, %5, %6 : vector<64x96xf32>
    %cst_6 = arith.constant 4.000000e+00 : f32
    %8 = vector.broadcast %cst_6 : f32 to vector<64x96xf32>
    %9 = arith.mulf %8, %5 : vector<64x96xf32>
    %10 = arith.select %7, %5, %9 : vector<64x96xi1>, vector<64x96xf32>
    %c0_7 = arith.constant 0 : index
    %c0_8 = arith.constant 0 : index
    %11 = vector.load %arg3[%c0_7, %c0_8] : memref<64x96xf32, #tpu.memory_space<vmem>>, vector<64x96xf32>
    tpu.vector_store %arg3[%c0_7, %c0_8], %10 {strides = array<i32>} : memref<64x96xf32, #tpu.memory_space<vmem>>, vector<64x96xf32>,
    return
  }
}

module attributes {stable_mosaic.version = 11 : i64} {
  func.func @_cluster_softmax_kernel(%arg0: memref<8x64xf32, #tpu.memory_space<vmem>>, %arg1: memref<64x6xf32, #tpu.memory_space<vmem>>, %arg2: memref<6x6xf32, #tpu.memory_space<vmem>>, %arg3: memref<8x6xf32, #tpu.memory_space<vmem>>) attributes {dimension_semantics = [], scalar_prefetch = 0 : i64, scratch_operands = 0 : i64, tpu.core_type = #tpu.core_type<tc>} {
    %c0 = arith.constant 0 : index
    %c0_0 = arith.constant 0 : index
    %0 = vector.load %arg0[%c0, %c0_0] : memref<8x64xf32, #tpu.memory_space<vmem>>, vector<8x64xf32>
    %c0_1 = arith.constant 0 : index
    %c0_2 = arith.constant 0 : index
    %1 = vector.load %arg1[%c0_1, %c0_2] : memref<64x6xf32, #tpu.memory_space<vmem>>, vector<64x6xf32>
    %cst = arith.constant dense<0.000000e+00> : vector<8x6xf32>
    %2 = tpu.matmul %0, %1, %cst {dimension_numbers = #tpu.dot_dimension_numbers<[1], [0], [0], [1], [0, 0, 1, 1], [], []>} : vector<8x64xf32>, vector<64x6xf32>, vector<8x6xf32> -> vector<8x6xf32>
    %cst_3 = arith.constant dense<0xFF800000> : vector<8xf32>
    %3 = vector.multi_reduction <maximumf>, %2, %cst_3 [1] : vector<8x6xf32> to vector<8xf32>
    %4 = vector.shape_cast %3 : vector<8xf32> to vector<8x1xf32>
    %5 = vector.broadcast %4 : vector<8x1xf32> to vector<8x6xf32>
    %6 = arith.subf %2, %5 : vector<8x6xf32>
    %7 = math.exp %6 : vector<8x6xf32>
    %c0_4 = arith.constant 0 : index
    %c0_5 = arith.constant 0 : index
    %8 = vector.load %arg2[%c0_4, %c0_5] : memref<6x6xf32, #tpu.memory_space<vmem>>, vector<6x6xf32>
    %cst_6 = arith.constant dense<0.000000e+00> : vector<8x6xf32>
    %9 = tpu.matmul %7, %8, %cst_6 {dimension_numbers = #tpu.dot_dimension_numbers<[1], [0], [0], [1], [0, 0, 1, 1], [], []>} : vector<8x6xf32>, vector<6x6xf32>, vector<8x6xf32> -> vector<8x6xf32>
    %10 = tpu.reciprocal %9 {approx = true} : vector<8x6xf32> -> vector<8x6xf32>
    %11 = arith.mulf %7, %10 : vector<8x6xf32>
    %c0_7 = arith.constant 0 : index
    %c0_8 = arith.constant 0 : index
    %12 = vector.load %arg3[%c0_7, %c0_8] : memref<8x6xf32, #tpu.memory_space<vmem>>, vector<8x6xf32>
    tpu.vector_store %arg3[%c0_7, %c0_8], %11 {strides = array<i32>} : memref<8x6xf32, #tpu.memory_space<vmem>>, vector<8x6xf32>,
    return
  }
}

module attributes {stable_mosaic.version = 11 : i64} {
  func.func @_ffn_kernel(%arg0: memref<64x8xf32, #tpu.memory_space<vmem>>, %arg1: memref<8x16xf32, #tpu.memory_space<vmem>>, %arg2: memref<16x8xf32, #tpu.memory_space<vmem>>, %arg3: memref<64x8xf32, #tpu.memory_space<vmem>>) attributes {dimension_semantics = [], scalar_prefetch = 0 : i64, scratch_operands = 0 : i64, tpu.core_type = #tpu.core_type<tc>} {
    %c0 = arith.constant 0 : index
    %c0_0 = arith.constant 0 : index
    %0 = vector.load %arg0[%c0, %c0_0] : memref<64x8xf32, #tpu.memory_space<vmem>>, vector<64x8xf32>
    %c0_1 = arith.constant 0 : index
    %c0_2 = arith.constant 0 : index
    %1 = vector.load %arg1[%c0_1, %c0_2] : memref<8x16xf32, #tpu.memory_space<vmem>>, vector<8x16xf32>
    %cst = arith.constant dense<0.000000e+00> : vector<64x16xf32>
    %2 = tpu.matmul %0, %1, %cst {dimension_numbers = #tpu.dot_dimension_numbers<[1], [0], [0], [1], [0, 0, 1, 1], [], []>} : vector<64x8xf32>, vector<8x16xf32>, vector<64x16xf32> -> vector<64x16xf32>
    %cst_3 = arith.constant 0.000000e+00 : f32
    %3 = vector.broadcast %cst_3 : f32 to vector<64x16xf32>
    %4 = arith.cmpf oge, %2, %3 : vector<64x16xf32>
    %cst_4 = arith.constant 2.000000e-01 : f32
    %5 = vector.broadcast %cst_4 : f32 to vector<64x16xf32>
    %6 = arith.mulf %5, %2 : vector<64x16xf32>
    %7 = arith.select %4, %2, %6 : vector<64x16xi1>, vector<64x16xf32>
    %c0_5 = arith.constant 0 : index
    %c0_6 = arith.constant 0 : index
    %8 = vector.load %arg2[%c0_5, %c0_6] : memref<16x8xf32, #tpu.memory_space<vmem>>, vector<16x8xf32>
    %cst_7 = arith.constant dense<0.000000e+00> : vector<64x8xf32>
    %9 = tpu.matmul %7, %8, %cst_7 {dimension_numbers = #tpu.dot_dimension_numbers<[1], [0], [0], [1], [0, 0, 1, 1], [], []>} : vector<64x16xf32>, vector<16x8xf32>, vector<64x8xf32> -> vector<64x8xf32>
    %cst_8 = arith.constant 0.000000e+00 : f32
    %10 = vector.broadcast %cst_8 : f32 to vector<64x8xf32>
    %11 = arith.cmpf oge, %9, %10 : vector<64x8xf32>
    %cst_9 = arith.constant 2.000000e-01 : f32
    %12 = vector.broadcast %cst_9 : f32 to vector<64x8xf32>
    %13 = arith.mulf %12, %9 : vector<64x8xf32>
    %14 = arith.select %11, %9, %13 : vector<64x8xi1>, vector<64x8xf32>
    %c0_10 = arith.constant 0 : index
    %c0_11 = arith.constant 0 : index
    %15 = vector.load %arg3[%c0_10, %c0_11] : memref<64x8xf32, #tpu.memory_space<vmem>>, vector<64x8xf32>
    tpu.vector_store %arg3[%c0_10, %c0_11], %14 {strides = array<i32>} : memref<64x8xf32, #tpu.memory_space<vmem>>, vector<64x8xf32>,
    return
  }
}

</mosaic_0001>

<bundles_post_ra>
// kernel: mul.57
= control target key start
LH: loop header
LB: loop body
LE: loop exit
PB: predicated region body
PF: predicated region fallthrough
CT: control target
= control target key end

     0   :  { %s99_s10 = smov 88   ;;  %s100_s11 = smov 72   ;;  %vm3_vm0 = vcmask 64512   ;;  %vm9_vm1 = vcmask 786112   ;;  %vm15_vm2 = vcmask 720512   ;;  %vm21_vm3 = vcmask 654912   ;;  %s159_s0 = inlined_call_operand.vmem [shape: f32[12,8], index: 0, kind: input, shape index: {}]   ;;  %s160_s1 = inlined_call_operand.vmem [shape: f32[96], index: 1, kind: output, shape index: {}]  }
   0x1   :  { %v77_v0 = vld [vmem:[%s159_s0 + $0xb] sm:$0x1]   ;;  %v79_v1 = vld [vmem:[%s159_s0 + $0x9] sm:$0x1]   ;;  %v78_v2 = vld [vmem:[%s159_s0 + $0xa] sm:$0x1]  }
   0x2   :  { %7 = vrot.lane.b32.xlu0 %v77_v0, %s99_s10  ;;  %19 = vrot.lane.b32.xlu1 %v79_v1, %s100_s11  ;;  %v80_v3 = vld [vmem:[%s159_s0 + $0x8] sm:$0x1]   ;;  %s101_s16 = smov 80   ;;  %s102_s17 = smov 64   ;;  %v81_v4 = vld [vmem:[%s159_s0 + $0x7] sm:$0x1]  }
   0x3   :  { %v2_v5 = vld [vmem:[%s159_s0] sm:$0x1]   ;;  %v82_v6 = vld [vmem:[%s159_s0 + $0x6] sm:$0x1]   ;;  %s103_s24 = smov 56   ;;  %s104_s25 = smov 48  }
   0x4   :  { %4 = vst.msk [vmem:[#allocation0] sm:$0x1] %vm3_vm0, %v2_v5   ;;  %v83_v7 = vld [vmem:[%s159_s0 + $0x5] sm:$0x1]   ;;  %v84_v8 = vld [vmem:[%s159_s0 + $0x4] sm:$0x1]  }
   0x5   :  { %s105_s30 = smov 40   ;;  %s106_s2 = smov 32   ;;  %v85_v9 = vld [vmem:[%s159_s0 + $0x3] sm:$0x1]   ;;  %v86_v10 = vld [vmem:[%s159_s0 + $0x2] sm:$0x1]  }
   0x6   :  { %13 = vrot.lane.b32.xlu0 %v78_v2, %s101_s16  ;;  %25 = vrot.lane.b32.xlu1 %v80_v3, %s102_s17  ;;  %s107_s7 = smov 24   ;;  %s108_s8 = smov 16   ;;  %v87_v11 = vld [vmem:[%s159_s0 + $0x1] sm:$0x1]   ;;  %vm27_vm4 = vcmask 589312   ;;  %vm33_vm5 = vcmask 523712  }
   0x7   :  { %s109_s0 = smov 8   ;;  %vm39_vm6 = vcmask 458112   ;;  %vm45_vm7 = vcmask 392512   ;;  %vm51_vm8 = vcmask 326912   ;;  %vm57_vm9 = vcmask 261312  }
   0x8   :  { %vm63_vm10 = vcmask 195712   ;;  %vm69_vm11 = vcmask 130112  }
   0xa   :  { %31 = vrot.lane.b32.xlu0 %v81_v4, %s103_s24  ;;  %37 = vrot.lane.b32.xlu1 %v82_v6, %s104_s25 }
   0xe   :  { %43 = vrot.lane.b32.xlu0 %v83_v7, %s105_s30  ;;  %49 = vrot.lane.b32.xlu1 %v84_v8, %s106_s2 }
  0x12   :  { %55 = vrot.lane.b32.xlu0 %v85_v9, %s107_s7  ;;  %61 = vrot.lane.b32.xlu1 %v86_v10, %s108_s8 }
  0x16   :  { %67 = vrot.lane.b32.xlu0 %v87_v11, %s109_s0 }
  0x74   :  { %v8_v12 = vpop.permute.xlu0 %7   ;;  %v20_v13 = vpop.permute.xlu1 %19  }
  0x75   :  { %10 = vst.msk [vmem:[#allocation0] sm:$0x1] %vm9_vm1, %v8_v12  }
  0x78   :  { %v14_v14 = vpop.permute.xlu0 %13   ;;  %v26_v15 = vpop.permute.xlu1 %25  }
  0x79   :  { %16 = vst.msk [vmem:[#allocation0] sm:$0x1] %vm15_vm2, %v14_v14  }
  0x7a   :  { %22 = vst.msk [vmem:[#allocation0] sm:$0x1] %vm21_vm3, %v20_v13  }
  0x7b   :  { %28 = vst.msk [vmem:[#allocation0] sm:$0x1] %vm27_vm4, %v26_v15  }
  0x7c   :  { %v32_v16 = vpop.permute.xlu0 %31   ;;  %v38_v17 = vpop.permute.xlu1 %37  }
  0x7d   :  { %34 = vst.msk [vmem:[#allocation0] sm:$0x1] %vm33_vm5, %v32_v16  }
  0x7e   :  { %40 = vst.msk [vmem:[#allocation0] sm:$0x1] %vm39_vm6, %v38_v17  }
  0x80   :  { %v44_v18 = vpop.permute.xlu0 %43   ;;  %v50_v19 = vpop.permute.xlu1 %49  }
  0x81   :  { %46 = vst.msk [vmem:[#allocation0] sm:$0x1] %vm45_vm7, %v44_v18  }
  0x82   :  { %52 = vst.msk [vmem:[#allocation0] sm:$0x1] %vm51_vm8, %v50_v19  }
  0x84   :  { %v56_v20 = vpop.permute.xlu0 %55   ;;  %v62_v21 = vpop.permute.xlu1 %61  }
  0x85   :  { %58 = vst.msk [vmem:[#allocation0] sm:$0x1] %vm57_vm9, %v56_v20  }
  0x86   :  { %64 = vst.msk [vmem:[#allocation0] sm:$0x1] %vm63_vm10, %v62_v21  }
  0x88   :  { %v68_v22 = vpop.permute.xlu0 %67  }
  0x89   :  { %70 = vst.msk [vmem:[#allocation0] sm:$0x1] %vm69_vm11, %v68_v22  }
  0x90   :  { %v74_v23 = vld [vmem:[#allocation0] sm:$0x1] }
  0x91   :  { %76 = vst [vmem:[%s160_s1] sm:$0x1] %v74_v23 }

// kernel: encoder_forward.20
= control target key start
LH: loop header
LB: loop body
LE: loop exit
PB: predicated region body
PF: predicated region fallthrough
CT: control target
= control target key end

     0   :  { %vm29_vm0 = vcmask 785408   ;;  %vm70_vm1 = vcmask 1041409   ;;  %vm72_vm2 = vcmask 1042434   ;;  %vm74_vm3 = vcmask 1043459   ;;  %s139_s0 = inlined_call_operand.vmem [shape: f32[4,16,96], index: 0, kind: input, shape index: {}]   ;;  %s140_s1 = inlined_call_operand.vmem [shape: f32[16,96], index: 1, kind: input, shape index: {}]   ;;  %s141_s2 = inlined_call_operand.vmem [shape: f32[4,96], index: 2, kind: output, shape index: {}]  }
   0x1   :  { %v11_v0 = vld [vmem:[%s139_s0] sm:$0xff]  ;;  %v12_v1 = vld [vmem:[%s139_s0 + $0x8] sm:$0xff]  ;;  %v13_v2 = vld [vmem:[%s139_s0 + $0x10] sm:$0xff]  ;;  %vm77_vm4 = vcmask 781312  }
   0x2   :  { %v14_v3 = vld [vmem:[%s139_s0 + $0x18] sm:$0xff]  ;;  %v15_v4 = vld [vmem:[%s139_s0 + $0x20] sm:$0xff]  ;;  %v16_v5 = vld [vmem:[%s139_s0 + $0x28] sm:$0xff] }
   0x3   :  { %v17_v6 = vld [vmem:[%s139_s0 + $0x30] sm:$0xff]  ;;  %v18_v7 = vld [vmem:[%s139_s0 + $0x38] sm:$0xff]  ;;  %v19_v8 = vld [vmem:[%s140_s1] sm:$0xff] }
   0x4   :  { %v20_v9 = vld [vmem:[%s140_s1 + $0x8] sm:$0xff]  ;;  %v21_v10 = vmul.f32 %v19_v8, %v11_v0  ;;  %v23_v11 = vmul.f32 %v19_v8, %v13_v2  ;;  %v25_v12 = vmul.f32 %v19_v8, %v15_v4  ;;  %v27_v13 = vmul.f32 %v19_v8, %v17_v6 }
   0x5   :  { %v22_v14 = vmul.f32 %v20_v9, %v12_v1  ;;  %v24_v15 = vmul.f32 %v20_v9, %v14_v3  ;;  %v26_v16 = vmul.f32 %v20_v9, %v16_v5  ;;  %v28_v17 = vmul.f32 %v20_v9, %v18_v7 }
   0x6   :  { %v30_v18 = vsel %vm29_vm0, %v21_v10, 0.0  ;;  %v39_v19 = vsel %vm29_vm0, %v23_v11, 0.0  ;;  %v48_v20 = vsel %vm29_vm0, %v25_v12, 0.0  ;;  %v57_v21 = vsel %vm29_vm0, %v27_v13, 0.0 }
   0x7   :  { %v31_v22 = vsel %vm29_vm0, %v22_v14, 0.0  ;;  %v40_v23 = vsel %vm29_vm0, %v24_v15, 0.0  ;;  %v49_v24 = vsel %vm29_vm0, %v26_v16, 0.0  ;;  %v58_v25 = vsel %vm29_vm0, %v28_v17, 0.0 }
   0x8   :  { %v32_v26 = vadd.f32 %v31_v22, %v30_v18  ;;  %v41_v27 = vadd.f32 %v40_v23, %v39_v19  ;;  %v50_v28 = vadd.f32 %v49_v24, %v48_v20  ;;  %v59_v29 = vadd.f32 %v58_v25, %v57_v21 }
   0xa   :  { %v33_v30 = vrot.slane %v32_v26, 4  ;;  %v42_v31 = vrot.slane %v41_v27, 4  ;;  %v51_v32 = vrot.slane %v50_v28, 4  ;;  %v60_v33 = vrot.slane %v59_v29, 4 }
   0xc   :  { %v34_v34 = vadd.f32 %v33_v30, %v32_v26  ;;  %v43_v35 = vadd.f32 %v42_v31, %v41_v27  ;;  %v52_v36 = vadd.f32 %v51_v32, %v50_v28  ;;  %v61_v37 = vadd.f32 %v60_v33, %v59_v29 }
   0xe   :  { %v35_v38 = vrot.slane %v34_v34, 2  ;;  %v44_v39 = vrot.slane %v43_v35, 2  ;;  %v53_v40 = vrot.slane %v52_v36, 2  ;;  %v62_v41 = vrot.slane %v61_v37, 2 }
  0x10   :  { %v36_v42 = vadd.f32 %v35_v38, %v34_v34  ;;  %v45_v43 = vadd.f32 %v44_v39, %v43_v35  ;;  %v54_v44 = vadd.f32 %v53_v40, %v52_v36  ;;  %v63_v45 = vadd.f32 %v62_v41, %v61_v37 }
  0x12   :  { %v37_v46 = vrot.slane %v36_v42, 1  ;;  %v46_v47 = vrot.slane %v45_v43, 1  ;;  %v55_v48 = vrot.slane %v54_v44, 1  ;;  %v64_v49 = vrot.slane %v63_v45, 1 }
  0x14   :  { %v38_v50 = vadd.f32 %v37_v46, %v36_v42  ;;  %v47_v51 = vadd.f32 %v46_v47, %v45_v43  ;;  %v56_v52 = vadd.f32 %v55_v48, %v54_v44  ;;  %v65_v53 = vadd.f32 %v64_v49, %v63_v45 }
  0x16   :  { %v71_v54 = vsel %vm70_vm1, %v47_v51, %v38_v50 }
  0x17   :  { %v73_v55 = vsel %vm72_vm2, %v56_v52, %v71_v54 }
  0x18   :  { %v75_v56 = vsel %vm74_vm3, %v65_v53, %v73_v55 }
  0x19   :  { %78 = vst.msk [vmem:[%s141_s2] sm:$0xf] %vm77_vm4, %v75_v56 }

// kernel: encoder_forward.19
= control target key start
LH: loop header
LB: loop body
LE: loop exit
PB: predicated region body
PF: predicated region fallthrough
CT: control target
= control target key end

     0   :  { %vm55_vm0 = vcmask 1044480   ;;  %vm30_vm1 = vcmask 39936   ;;  %vm188_vm2 = vcmask 785408   ;;  %s326_s1 = inlined_call_operand.vmem [shape: f32[5,96], index: 1, kind: input, shape index: {}]   ;;  %s327_s0 = inlined_call_operand.vmem [shape: f32[64,5], index: 0, kind: input, shape index: {}]   ;;  %s328_s2 = inlined_call_operand.vmem [shape: f32[1,96], index: 2, kind: input, shape index: {}]   ;;  %s329_s3 = inlined_call_operand.vmem [shape: f32[64,96], index: 3, kind: output, shape index: {}]  }
   0x1   :  { %v22_v0 = vld [vmem:[%s326_s1] sm:$0x1f]  ;;  %v15_v3 = vld [vmem:[%s327_s0 + $0x8] sm:$0xff]  ;;  %v16_v5 = vld [vmem:[%s327_s0 + $0x10] sm:$0xff] }
   0x2   :  { %v14_v1 = vld [vmem:[%s327_s0] sm:$0xff]  ;;  %220 = vmatprep.subr.msk.mxu0 %vm55_vm0, %v22_v0  ;;  %234 = vmatprep.subr.msk.mxu1 %vm55_vm0, %v22_v0  ;;  %v19_v4 = vld [vmem:[%s327_s0 + $0x28] sm:$0xff]  ;;  %v20_v6 = vld [vmem:[%s327_s0 + $0x30] sm:$0xff] }
   0x3   :  { %v18_v2 = vld [vmem:[%s327_s0 + $0x20] sm:$0xff]  ;;  %221 = vmatpush3.msk.msra.mxu0 %vm55_vm0, %v22_v0  ;;  %235 = vmatpush3.msk.msra.mxu1 %vm55_vm0, %v22_v0  ;;  %v17_v7 = vld [vmem:[%s327_s0 + $0x18] sm:$0xff] }
   0x4   :  { %222 = vmatprep.mubr.msk.f32.mxu0 %vm30_vm1, %v14_v1  ;;  %228 = vmatprep.mubr.msk.f32.mxu1 %vm30_vm1, %v18_v2  ;;  %v21_v8 = vld [vmem:[%s327_s0 + $0x38] sm:$0xff]  ;;  %v201_v9 = vld [vmem:[%s328_s2] ss:$0 sm:$0xff] }
   0x5   :  { %223 = vmatmul.mubr.msk.f32.vlgmr.msra.gmra.mrb[0].mxu0 %vm30_vm1, %v15_v3  ;;  %229 = vmatmul.mubr.msk.f32.vlgmr.msra.gmra.mrb[0].mxu1 %vm30_vm1, %v19_v4 }
   0x6   :  { %225 = vmatprep.mubr.msk.f32.mxu0 %vm30_vm1, %v16_v5  ;;  %231 = vmatprep.mubr.msk.f32.mxu1 %vm30_vm1, %v20_v6 }
   0x9   :  { %226 = vmatmul.mubr.msk.f32.gmra.mrb[2].mxu0 %vm30_vm1, %v17_v7  ;;  %232 = vmatmul.mubr.msk.f32.gmra.mrb[2].mxu1 %vm30_vm1, %v21_v8 }
  0xd8   :  { %v224_v10 = vpop.f32.mrb[0].mxu0  ;;  %v230_v11 = vpop.f32.mrb[0].mxu1 }
  0xd9   :  { %v131_v12 = vadd.f32 %v224_v10, %v201_v9  ;;  %v151_v13 = vadd.f32 %v230_v11, %v201_v9  ;;  %v125_v14 = vpop.f32.mrb[1].mxu0  ;;  %v145_v15 = vpop.f32.mrb[1].mxu1 }
  0xda   :  { %v126_v16 = vadd.f32 %v201_v9, %v125_v14  ;;  %v146_v17 = vadd.f32 %v201_v9, %v145_v15 }
  0xdb   :  { %vm165_vm3 = vcmp.ge.f32.partialorder %v131_v12, 0.0  ;;  %v173_v18 = vmul.f32 4.0, %v131_v12  ;;  %vm169_vm4 = vcmp.ge.f32.partialorder %v151_v13, 0.0  ;;  %v177_v19 = vmul.f32 4.0, %v151_v13 }
  0xdc   :  { %vm164_vm5 = vcmp.ge.f32.partialorder %v126_v16, 0.0  ;;  %v172_v20 = vmul.f32 4.0, %v126_v16  ;;  %vm168_vm6 = vcmp.ge.f32.partialorder %v146_v17, 0.0  ;;  %v176_v21 = vmul.f32 4.0, %v146_v17  ;;  %v227_v22 = vpop.f32.mrb[2].mxu0  ;;  %v233_v23 = vpop.f32.mrb[2].mxu1 }
  0xdd   :  { %v181_v24 = vsel %vm165_vm3, %v131_v12, %v173_v18  ;;  %v185_v25 = vsel %vm169_vm4, %v151_v13, %v177_v19  ;;  %v141_v26 = vadd.f32 %v227_v22, %v201_v9  ;;  %v161_v27 = vadd.f32 %v233_v23, %v201_v9  ;;  %v135_v28 = vpop.f32.mrb[3].mxu0  ;;  %v155_v29 = vpop.f32.mrb[3].mxu1 }
  0xde   :  { %190 = vst.msk [vmem:[%s329_s3 + $0x8] sm:$0xff] %vm188_vm2, %v181_v24  ;;  %194 = vst.msk [vmem:[%s329_s3 + $0x28] sm:$0xff] %vm188_vm2, %v185_v25  ;;  %v180_v30 = vsel %vm164_vm5, %v126_v16, %v172_v20  ;;  %v184_v31 = vsel %vm168_vm6, %v146_v17, %v176_v21  ;;  %v136_v32 = vadd.f32 %v201_v9, %v135_v28 }
  0xdf   :  { %v156_v33 = vadd.f32 %v201_v9, %v155_v29  ;;  %189 = vst.msk [vmem:[%s329_s3] sm:$0xff] %vm188_vm2, %v180_v30  ;;  %193 = vst.msk [vmem:[%s329_s3 + $0x20] sm:$0xff] %vm188_vm2, %v184_v31  ;;  %vm167_vm7 = vcmp.ge.f32.partialorder %v141_v26, 0.0  ;;  %v175_v34 = vmul.f32 4.0, %v141_v26  ;;  %vm171_vm8 = vcmp.ge.f32.partialorder %v161_v27, 0.0 }
  0xe0   :  { %v179_v35 = vmul.f32 4.0, %v161_v27  ;;  %vm166_vm9 = vcmp.ge.f32.partialorder %v136_v32, 0.0  ;;  %v174_v36 = vmul.f32 4.0, %v136_v32 }
  0xe1   :  { %vm170_vm10 = vcmp.ge.f32.partialorder %v156_v33, 0.0  ;;  %v178_v37 = vmul.f32 4.0, %v156_v33  ;;  %v183_v38 = vsel %vm167_vm7, %v141_v26, %v175_v34 }
  0xe2   :  { %v187_v39 = vsel %vm171_vm8, %v161_v27, %v179_v35  ;;  %192 = vst.msk [vmem:[%s329_s3 + $0x18] sm:$0xff] %vm188_vm2, %v183_v38  ;;  %v182_v40 = vsel %vm166_vm9, %v136_v32, %v174_v36 }
  0xe3   :  { %196 = vst.msk [vmem:[%s329_s3 + $0x38] sm:$0xff] %vm188_vm2, %v187_v39  ;;  %v186_v41 = vsel %vm170_vm10, %v156_v33, %v178_v37  ;;  %191 = vst.msk [vmem:[%s329_s3 + $0x10] sm:$0xff] %vm188_vm2, %v182_v40 }
  0xe4   :  { %195 = vst.msk [vmem:[%s329_s3 + $0x30] sm:$0xff] %vm188_vm2, %v186_v41 }

// kernel: encoder_forward.18
= control target key start
LH: loop header
LB: loop body
LE: loop exit
PB: predicated region body
PF: predicated region fallthrough
CT: control target
= control target key end

     0   :  { %v228_v0 = vmov 0.0|0.0   ;;  %vm229_vm0 = vmmov 0   ;;  %v230_v4 = vmov 0.0   ;;  %vm20_vm1 = vcmask 326656   ;;  %s278_s1 = inlined_call_operand.vmem [shape: f32[40,6], index: 1, kind: input, shape index: {}]   ;;  %s279_s0 = inlined_call_operand.vmem [shape: f32[8,40], index: 0, kind: input, shape index: {}]   ;;  %s280_s2 = inlined_call_operand.vmem [shape: f32[6,6], index: 2, kind: input, shape index: {}]   ;;  %s281_s3 = inlined_call_operand.vmem [shape: f32[8,6], index: 3, kind: output, shape index: {}]  }
   0x1   :  { %215 = vmatprep.subr.bf16.mxu0 %v228_v0  ;;  %v15_v1 = vld [vmem:[%s278_s1] sm:$0xff]  ;;  %v16_v2 = vld [vmem:[%s278_s1 + $0x8] sm:$0xff]  ;;  %v17_v3 = vld [vmem:[%s278_s1 + $0x10] sm:$0xff]  ;;  %207 = vmatprep.mubr.msk.f32.mxu0 %vm229_vm0, %v230_v4  ;;  %vm94_vm2 = vcmask 48128   ;;  %vm105_vm3 = vcmask 1045504  }
   0x2   :  { %v216_v5 = vpack.c.bf16 %v16_v2, %v15_v1  ;;  %v18_v6 = vld [vmem:[%s278_s1 + $0x18] sm:$0xff]  ;;  %210 = vmatprep.subr.mxu1 %v230_v4  ;;  %212 = vmatprep.mubr.msk.f32.mxu1 %vm229_vm0, %v230_v4  ;;  %v19_v8 = vld [vmem:[%s278_s1 + $0x20] sm:$0xff] }
   0x3   :  { %v219_v7 = vpack.c.bf16 %v18_v6, %v17_v3  ;;  %v14_v9 = vld [vmem:[%s279_s0] sm:$0xff] }
   0x4   :  { %217 = vmatpush3.bf16.msra.mxu0 %v216_v5  ;;  %v101_v13 = vld [vmem:[%s280_s2] sm:$0x3f] }
   0x5   :  { %218 = vmatprep.subr.bf16.mxu0 %v228_v0  ;;  %211 = vmatpush3.msk.msra.mxu1 %vm105_vm3, %v101_v13 }
   0x8   :  { %220 = vmatpush3.bf16.msra.mxu0 %v219_v7 }
   0x9   :  { %205 = vmatprep.subr.mxu0 %v230_v4 }
   0xc   :  { %206 = vmatpush3.msra.mxu0 %v19_v8 }
   0xd   :  { %208 = vmatmul.mubr.msk.f32.vlgmr.msra.gmra.mrb[0].mxu0 %vm20_vm1, %v14_v9 }
  0xe0   :  { %v90_v10 = vpop.f32.mrb[0].mxu0 }
  0xe1   :  { %v209_v11 = vpop.f32.mrb[1].mxu0  ;;  %v95_v12 = vsel %vm94_vm2, %v90_v10, -inf }
  0xe2   :  { %96 = vmax.xlane.f32.xlu0 %v95_v12 }
 0x16f   :  { %v97_v14 = vpop.xlane.xlu0 %96 }
 0x170   :  { %v98_v15 = vsub.f32 %v90_v10, %v97_v14 }
 0x172   :  { %v99_v16 = vmul.f32 1.442695, %v98_v15 }
 0x174   :  { %224 = vpow2.f32 %v99_v16 }
 0x17e   :  { %v225_v17 = vpop.eup %224 }
 0x17f   :  { %213 = vmatmul.mubr.msk.f32.vlgmr.msra.gmra.mrb[0].mxu1 %vm94_vm2, %v225_v17 }
 0x252   :  { %v175_v18 = vpop.f32.mrb[0].mxu1 }
 0x253   :  { %226 = vrcp.f32 %v175_v18  ;;  %v214_v19 = vpop.f32.mrb[1].mxu1 }
 0x25d   :  { %v227_v20 = vpop.eup %226 }
 0x25e   :  { %v180_v21 = vmul.f32 %v227_v20, %v225_v17 }
 0x260   :  { %181 = vst.msk [vmem:[%s281_s3] sm:$0xff] %vm94_vm2, %v180_v21 }

// kernel: encoder_forward.22
= control target key start
LH: loop header
LB: loop body
LE: loop exit
PB: predicated region body
PF: predicated region fallthrough
CT: control target
= control target key end

     0   :  { %vm14_vm0 = vcmask 64512   ;;  %vm96_vm1 = vcmask 130048   ;;  %s143_s1 = inlined_call_operand.vmem [shape: f32[8,16], index: 1, kind: input, shape index: {}]   ;;  %s144_s0 = inlined_call_operand.vmem [shape: f32[16,8], index: 0, kind: input, shape index: {}]   ;;  %s145_s2 = inlined_call_operand.vmem [shape: f32[16,16], index: 2, kind: output, shape index: {}]  }
   0x1   :  { %v13_v0 = vld [vmem:[%s143_s1] sm:$0xff]  ;;  %v12_v2 = vld [vmem:[%s144_s0 + $0x8] sm:$0xff] }
   0x2   :  { %v11_v1 = vld [vmem:[%s144_s0] sm:$0xff]  ;;  %108 = vmatprep.subr.mxu0 %v13_v0 }
   0x3   :  { %110 = vmatprep.mubr.msk.f32.mxu0 %vm14_vm0, %v11_v1  ;;  %109 = vmatpush3.msra.mxu0 %v13_v0 }
   0x4   :  { %111 = vmatmul.mubr.msk.f32.vlgmr.msra.gmra.mrb[0].mxu0 %vm14_vm0, %v12_v2 }
  0xd7   :  { %v112_v3 = vpop.f32.mrb[0].mxu0 }
  0xd8   :  { %98 = vst.msk [vmem:[%s145_s2 + $0x8] sm:$0xff] %vm96_vm1, %v112_v3  ;;  %v87_v4 = vpop.f32.mrb[1].mxu0 }
  0xd9   :  { %97 = vst.msk [vmem:[%s145_s2] sm:$0xff] %vm96_vm1, %v87_v4 }

// kernel: encoder_forward.23
= control target key start
LH: loop header
LB: loop body
LE: loop exit
PB: predicated region body
PF: predicated region fallthrough
CT: control target
= control target key end

     0   :  { %vm20_vm0 = vcmask 64512   ;;  %s277_s1 = inlined_call_operand.vmem [shape: f32[8,8], index: 1, kind: input, shape index: {}]   ;;  %s278_s0 = inlined_call_operand.vmem [shape: f32[64,8], index: 0, kind: input, shape index: {}]   ;;  %s279_s2 = inlined_call_operand.vmem [shape: f32[64,8], index: 2, kind: output, shape index: {}]  }
   0x1   :  { %v19_v0 = vld [vmem:[%s277_s1] sm:$0xff]  ;;  %v12_v3 = vld [vmem:[%s278_s0 + $0x8] sm:$0xff]  ;;  %v13_v5 = vld [vmem:[%s278_s0 + $0x10] sm:$0xff] }
   0x2   :  { %v11_v1 = vld [vmem:[%s278_s0] sm:$0xff]  ;;  %179 = vmatprep.subr.mxu0 %v19_v0  ;;  %193 = vmatprep.subr.mxu1 %v19_v0  ;;  %v16_v4 = vld [vmem:[%s278_s0 + $0x28] sm:$0xff]  ;;  %v17_v6 = vld [vmem:[%s278_s0 + $0x30] sm:$0xff] }
   0x3   :  { %v15_v2 = vld [vmem:[%s278_s0 + $0x20] sm:$0xff]  ;;  %180 = vmatpush3.msra.mxu0 %v19_v0  ;;  %194 = vmatpush3.msra.mxu1 %v19_v0  ;;  %v14_v7 = vld [vmem:[%s278_s0 + $0x18] sm:$0xff] }
   0x4   :  { %181 = vmatprep.mubr.msk.f32.mxu0 %vm20_vm0, %v11_v1  ;;  %187 = vmatprep.mubr.msk.f32.mxu1 %vm20_vm0, %v15_v2  ;;  %v18_v8 = vld [vmem:[%s278_s0 + $0x38] sm:$0xff] }
   0x5   :  { %182 = vmatmul.mubr.msk.f32.vlgmr.msra.gmra.mrb[0].mxu0 %vm20_vm0, %v12_v3  ;;  %188 = vmatmul.mubr.msk.f32.vlgmr.msra.gmra.mrb[0].mxu1 %vm20_vm0, %v16_v4 }
   0x6   :  { %184 = vmatprep.mubr.msk.f32.mxu0 %vm20_vm0, %v13_v5  ;;  %190 = vmatprep.mubr.msk.f32.mxu1 %vm20_vm0, %v17_v6 }
   0x9   :  { %185 = vmatmul.mubr.msk.f32.gmra.mrb[2].mxu0 %vm20_vm0, %v14_v7  ;;  %191 = vmatmul.mubr.msk.f32.gmra.mrb[2].mxu1 %vm20_vm0, %v18_v8 }
  0xd8   :  { %v183_v9 = vpop.f32.mrb[0].mxu0  ;;  %v189_v10 = vpop.f32.mrb[0].mxu1 }
  0xd9   :  { %151 = vst.msk [vmem:[%s279_s2 + $0x8] sm:$0xff] %vm20_vm0, %v183_v9  ;;  %155 = vst.msk [vmem:[%s279_s2 + $0x28] sm:$0xff] %vm20_vm0, %v189_v10  ;;  %v111_v11 = vpop.f32.mrb[1].mxu0  ;;  %v131_v12 = vpop.f32.mrb[1].mxu1 }
  0xda   :  { %150 = vst.msk [vmem:[%s279_s2] sm:$0xff] %vm20_vm0, %v111_v11  ;;  %154 = vst.msk [vmem:[%s279_s2 + $0x20] sm:$0xff] %vm20_vm0, %v131_v12 }
  0xdc   :  { %v186_v13 = vpop.f32.mrb[2].mxu0  ;;  %v192_v14 = vpop.f32.mrb[2].mxu1 }
  0xdd   :  { %153 = vst.msk [vmem:[%s279_s2 + $0x18] sm:$0xff] %vm20_vm0, %v186_v13  ;;  %157 = vst.msk [vmem:[%s279_s2 + $0x38] sm:$0xff] %vm20_vm0, %v192_v14  ;;  %v121_v15 = vpop.f32.mrb[3].mxu0  ;;  %v141_v16 = vpop.f32.mrb[3].mxu1 }
  0xde   :  { %152 = vst.msk [vmem:[%s279_s2 + $0x10] sm:$0xff] %vm20_vm0, %v121_v15  ;;  %156 = vst.msk [vmem:[%s279_s2 + $0x30] sm:$0xff] %vm20_vm0, %v141_v16 }

// kernel: encoder_forward.24
= control target key start
LH: loop header
LB: loop body
LE: loop exit
PB: predicated region body
PF: predicated region fallthrough
CT: control target
= control target key end

     0   :  { %vm18_vm0 = vcmask 64512   ;;  %v395_v0 = vmov 0.0   ;;  %vm396_vm1 = vmmov 0   ;;  %vm344_vm2 = vcmask 261120   ;;  %s451_s1 = inlined_call_operand.vmem [shape: f32[2,8,8], index: 1, kind: input, shape index: {}]   ;;  %s452_s0 = inlined_call_operand.vmem [shape: f32[2,8,8], index: 0, kind: input, shape index: {}]   ;;  %s453_s2 = inlined_call_operand.vmem [shape: f32[2,8,32], index: 2, kind: input, shape index: {}]   ;;  %s454_s3 = inlined_call_operand.vmem [shape: f32[2,8,32], index: 3, kind: output, shape index: {}]  }
   0x1   :  { %365 = vmatprep.subr.mxu0 %v395_v0  ;;  %v16_v1 = vld [vmem:[%s451_s1] sm:$0xff]  ;;  %367 = vmatprep.mubr.msk.f32.mxu0 %vm396_vm1, %v395_v0  ;;  %v17_v2 = vld [vmem:[%s451_s1 + $0x8] sm:$0xff] }
   0x2   :  { %366 = vmatpush3.xpose.msk.msra.mxu0 %vm18_vm0, %v16_v1  ;;  %370 = vmatprep.subr.mxu1 %v395_v0  ;;  %v14_v3 = vld [vmem:[%s452_s0] sm:$0xff]  ;;  %v15_v4 = vld [vmem:[%s452_s0 + $0x8] sm:$0xff] }
   0x3   :  { %371 = vmatpush3.xpose.msk.msra.mxu1 %vm18_vm0, %v17_v2  ;;  %372 = vmatprep.mubr.msk.f32.mxu1 %vm396_vm1, %v395_v0  ;;  %v196_v23 = vld [vmem:[%s453_s2] sm:$0xff]  ;;  %v197_v24 = vld [vmem:[%s453_s2 + $0x8] sm:$0xff] }
   0x4   :  { %375 = vmatprep.subr.mxu0 %v395_v0  ;;  %380 = vmatprep.subr.mxu1 %v395_v0 }
   0x5   :  { %368 = vmatmul.mubr.msk.f32.vlgmr.msra.gmra.mrb[0].mxu0 %vm18_vm0, %v14_v3 }
   0x6   :  { %373 = vmatmul.mubr.msk.f32.vlgmr.msra.gmra.mrb[0].mxu1 %vm18_vm0, %v15_v4  ;;  %377 = vmatprep.mubr.msk.f32.mxu0 %vm396_vm1, %v395_v0 }
   0x7   :  { %382 = vmatprep.mubr.msk.f32.mxu1 %vm396_vm1, %v395_v0  ;;  %376 = vmatpush3.msra.mxu0 %v196_v23 }
   0x8   :  { %381 = vmatpush3.msra.mxu1 %v197_v24 }
  0xd8   :  { %v91_v5 = vpop.f32.mrb[0].mxu0 }
  0xd9   :  { %v172_v6 = vmul.f32 0.35355338, %v91_v5  ;;  %v369_v7 = vpop.f32.mrb[1].mxu0  ;;  %v167_v8 = vpop.f32.mrb[0].mxu1 }
  0xda   :  { %v173_v9 = vmul.f32 0.35355338, %v167_v8  ;;  %v374_v10 = vpop.f32.mrb[1].mxu1 }
  0xdb   :  { %v174_v11 = vsel %vm18_vm0, %v172_v6, -inf }
  0xdc   :  { %175 = vmax.xlane.f32.xlu0 %v174_v11  ;;  %v177_v12 = vsel %vm18_vm0, %v173_v9, -inf }
  0xe0   :  { %178 = vmax.xlane.f32.xlu0 %v177_v12 }
 0x169   :  { %v176_v13 = vpop.xlane.xlu0 %175 }
 0x16a   :  { %v180_v14 = vsub.f32 %v172_v6, %v176_v13 }
 0x16c   :  { %v182_v15 = vmul.f32 1.442695, %v180_v14 }
 0x16d   :  { %v179_v16 = vpop.xlane.xlu0 %178 }
 0x16e   :  { %387 = vpow2.f32 %v182_v15  ;;  %v181_v17 = vsub.f32 %v173_v9, %v179_v16 }
 0x170   :  { %v184_v18 = vmul.f32 1.442695, %v181_v17 }
 0x172   :  { %389 = vpow2.f32 %v184_v18 }
 0x178   :  { %v388_v19 = vpop.eup %387 }
 0x179   :  { %v186_v20 = vsel %vm18_vm0, %v388_v19, 0.0 }
 0x17a   :  { %187 = vadd.xlane.f32.xlu1 %v186_v20 }
 0x17c   :  { %v390_v21 = vpop.eup %389 }
 0x17d   :  { %v189_v22 = vsel %vm18_vm0, %v390_v21, 0.0 }
 0x17e   :  { %190 = vadd.xlane.f32.xlu1 %v189_v22 }
 0x207   :  { %v188_v25 = vpop.xlane.xlu1 %187 }
 0x208   :  { %391 = vrcp.f32 %v188_v25 }
 0x20b   :  { %v191_v26 = vpop.xlane.xlu1 %190 }
 0x20c   :  { %393 = vrcp.f32 %v191_v26 }
 0x212   :  { %v392_v27 = vpop.eup %391 }
 0x213   :  { %v194_v28 = vmul.f32 %v392_v27, %v388_v19 }
 0x215   :  { %378 = vmatmul.mubr.msk.f32.vlgmr.msra.gmra.mrb[2].mxu0 %vm18_vm0, %v194_v28 }
 0x216   :  { %v394_v29 = vpop.eup %393 }
 0x217   :  { %v195_v30 = vmul.f32 %v394_v29, %v390_v21 }
 0x219   :  { %383 = vmatmul.mubr.msk.f32.vlgmr.msra.gmra.mrb[2].mxu1 %vm18_vm0, %v195_v30 }
 0x2e8   :  { %v267_v31 = vpop.f32.mrb[2].mxu0 }
 0x2e9   :  { %345 = vst.msk [vmem:[%s454_s3] sm:$0xff] %vm344_vm2, %v267_v31  ;;  %v379_v32 = vpop.f32.mrb[3].mxu0 }
 0x2ec   :  { %v340_v33 = vpop.f32.mrb[2].mxu1 }
 0x2ed   :  { %346 = vst.msk [vmem:[%s454_s3 + $0x8] sm:$0xff] %vm344_vm2, %v340_v33  ;;  %v384_v34 = vpop.f32.mrb[3].mxu1 }

// kernel: encoder_forward.21
= control target key start
LH: loop header
LB: loop body
LE: loop exit
PB: predicated region body
PF: predicated region fallthrough
CT: control target
= control target key end

     0   :  { %v1206_v0 = vmov 0.0|0.0   ;;  %vm1207_vm0 = vmmov 0   ;;  %v1208_v8 = vmov 0.0   ;;  %vm45_vm1 = vcmask 785408   ;;  %s1210_s27 = smov 112   ;;  %s1211_s28 = smov 120   ;;  %s1805_s3 = inlined_call_operand.vmem [shape: f32[96,96], index: 3, kind: input, shape index: {}]   ;;  %s1806_s2 = inlined_call_operand.vmem [shape: f32[96,96], index: 2, kind: input, shape index: {}]   ;;  %s1807_s1 = inlined_call_operand.vmem [shape: f32[4,96], index: 1, kind: input, shape index: {}]   ;;  %s1808_s4 = inlined_call_operand.vmem [shape: f32[4,4,96], index: 4, kind: input, shape index: {}]   ;;  %s1809_s5 = inlined_call_operand.vmem [shape: f32[4,4,96], index: 5, kind: input, shape index: {}]   ;;  %s1810_s0 = inlined_call_operand.vmem [shape: f32[4,16,96], index: 0, kind: input, shape index: {}]   ;;  %s1811_s6 = inlined_call_operand.vmem [shape: f32[4,16,96], index: 6, kind: input, shape index: {}]   ;;  %s1812_s7 = inlined_call_operand.vmem [shape: f32[1,1,8], index: 7, kind: input, shape index: {}]   ;;  %s1813_s8 = inlined_call_operand.vmem [shape: f32[1,1,8], index: 8, kind: input, shape index: {}]   ;;  %s1814_s9 = inlined_call_operand.vmem [shape: f32[4,16,8], index: 9, kind: output, shape index: {}]  }
   0x1   :  { %1123 = vmatprep.subr.bf16.mxu0 %v1206_v0  ;;  %v33_v1 = vld [vmem:[%s1805_s3] sm:$0xff]  ;;  %v34_v2 = vld [vmem:[%s1805_s3 + $0x8] sm:$0xff]  ;;  %v35_v3 = vld [vmem:[%s1805_s3 + $0x10] sm:$0xff]  ;;  %1141 = vmatprep.subr.bf16.mxu1 %v1206_v0  ;;  %v1209_v39 = vmov 1966171168   ;;  %v205_v41 = vlaneseq  ;;  %vm286_vm12 = vcmask 781312  }
   0x2   :  { %v1124_v4 = vpack.c.bf16 %v34_v2, %v33_v1  ;;  %v36_v5 = vld [vmem:[%s1805_s3 + $0x18] sm:$0xff]  ;;  %v119_v6 = vld [vmem:[%s1806_s2] sm:$0xff]  ;;  %v120_v7 = vld [vmem:[%s1806_s2 + $0x8] sm:$0xff]  ;;  %1093 = vmatprep.mubr.msk.f32.mxu0 %vm1207_vm0, %v1208_v8  ;;  %1120 = vmatprep.mubr.msk.f32.mxu1 %vm1207_vm0, %v1208_v8  ;;  %v203_v40 = vunpack.c.l.s4 %v1209_v39  ;;  %s1212_s29 = smov 104   ;;  %s1215_s30 = smov 80  }
   0x3   :  { %v1142_v9 = vpack.c.bf16 %v120_v7, %v119_v6  ;;  %v121_v10 = vld [vmem:[%s1806_s2 + $0x10] sm:$0xff]  ;;  %v1127_v11 = vpack.c.bf16 %v36_v5, %v35_v3  ;;  %v122_v12 = vld [vmem:[%s1806_s2 + $0x18] sm:$0xff]  ;;  %v37_v13 = vld [vmem:[%s1805_s3 + $0x20] sm:$0xff]  ;;  %v1358_v43 = vshrl.u32 %v205_v41, 7  ;;  %s1216_s10 = smov 72   ;;  %s1217_s11 = smov 64  }
   0x4   :  { %1125 = vmatpush3.bf16.msra.mxu0 %v1124_v4  ;;  %v38_v14 = vld [vmem:[%s1805_s3 + $0x28] sm:$0xff]  ;;  %v1145_v15 = vpack.c.bf16 %v122_v12, %v121_v10  ;;  %v123_v16 = vld [vmem:[%s1806_s2 + $0x20] sm:$0xff]  ;;  %v39_v19 = vld [vmem:[%s1805_s3 + $0x30] sm:$0xff]  ;;  %v204_v42 = vunpack.c.0.s8 %v203_v40  ;;  %s1218_s12 = smov 56   ;;  %s1219_s13 = smov 48  }
   0x5   :  { %1126 = vmatprep.subr.bf16.mxu0 %v1206_v0  ;;  %1143 = vmatpush3.bf16.msra.mxu1 %v1142_v9  ;;  %v124_v17 = vld [vmem:[%s1806_s2 + $0x28] sm:$0xff]  ;;  %v1130_v18 = vpack.c.bf16 %v38_v14, %v37_v13  ;;  %v40_v20 = vld [vmem:[%s1805_s3 + $0x38] sm:$0xff]  ;;  %v125_v22 = vld [vmem:[%s1806_s2 + $0x30] sm:$0xff]  ;;  %v1362_v47 = vsub.s32 0, %v1358_v43  ;;  %s1220_s15 = smov 40  }
   0x6   :  { %1144 = vmatprep.subr.bf16.mxu1 %v1206_v0  ;;  %v1148_v21 = vpack.c.bf16 %v124_v17, %v123_v16  ;;  %v126_v23 = vld [vmem:[%s1806_s2 + $0x38] sm:$0xff]  ;;  %v1133_v24 = vpack.c.bf16 %v40_v20, %v39_v19  ;;  %v41_v25 = vld [vmem:[%s1805_s3 + $0x40] sm:$0xff]  ;;  %v42_v26 = vld [vmem:[%s1805_s3 + $0x48] sm:$0xff]  ;;  %v207_v44 = vsub.s32 %v204_v42, %v1358_v43 }
   0x7   :  { %v1151_v27 = vpack.c.bf16 %v126_v23, %v125_v22  ;;  %v127_v28 = vld [vmem:[%s1806_s2 + $0x40] sm:$0xff]  ;;  %v128_v29 = vld [vmem:[%s1806_s2 + $0x48] sm:$0xff]  ;;  %v1136_v30 = vpack.c.bf16 %v42_v26, %v41_v25  ;;  %v43_v31 = vld [vmem:[%s1805_s3 + $0x50] sm:$0xff] }
   0x8   :  { %1128 = vmatpush3.bf16.msra.mxu0 %v1127_v11  ;;  %v44_v32 = vld [vmem:[%s1805_s3 + $0x58] sm:$0xff]  ;;  %v1154_v33 = vpack.c.bf16 %v128_v29, %v127_v28  ;;  %v129_v34 = vld [vmem:[%s1806_s2 + $0x50] sm:$0xff]  ;;  %v32_v38 = vld [vmem:[%s1807_s1] sm:$0xf] }
   0x9   :  { %1129 = vmatprep.subr.bf16.mxu0 %v1206_v0  ;;  %1146 = vmatpush3.bf16.msra.mxu1 %v1145_v15  ;;  %v130_v35 = vld [vmem:[%s1806_s2 + $0x58] sm:$0xff]  ;;  %v1139_v36 = vpack.c.bf16 %v44_v32, %v43_v31  ;;  %v262_v56 = vld [vmem:[%s1809_s5] sm:$0xf]  ;;  %v263_v57 = vld [vmem:[%s1809_s5 + $0x4] sm:$0xf] }
   0xa   :  { %1147 = vmatprep.subr.bf16.mxu1 %v1206_v0  ;;  %v1157_v37 = vpack.c.bf16 %v130_v35, %v129_v34  ;;  %v274_v58 = vld [vmem:[%s1808_s4] sm:$0xf]  ;;  %v264_v63 = vld [vmem:[%s1809_s5 + $0x8] sm:$0xf]  ;;  %vm266_vm2 = vcmp.gt.f32.partialorder %v262_v56, 0.0  ;;  %vm267_vm3 = vcmp.gt.f32.partialorder %v263_v57, 0.0 }
   0xb   :  { %v276_v1 = vld [vmem:[%s1808_s4 + $0x8] sm:$0xf]  ;;  %vm278_vm4 = vcmp.gt.f32.partialorder %v274_v58, 0.0  ;;  %v265_v5 = vld [vmem:[%s1809_s5 + $0xc] sm:$0xf]  ;;  %vm268_vm6 = vcmp.gt.f32.partialorder %v264_v63, 0.0 }
   0xc   :  { %1131 = vmatpush3.bf16.msra.mxu0 %v1130_v18  ;;  %vm280_vm8 = vcmp.gt.f32.partialorder %v276_v1, 0.0  ;;  %v277_v9 = vld [vmem:[%s1808_s4 + $0xc] sm:$0xf]  ;;  %vm269_vm11 = vcmp.gt.f32.partialorder %v265_v5, 0.0  ;;  %s1214_s5 = smov 88  }
   0xd   :  { %1132 = vmatprep.subr.bf16.mxu0 %v1206_v0  ;;  %1149 = vmatpush3.bf16.msra.mxu1 %v1148_v21  ;;  %vm281_vm14 = vcmp.gt.f32.partialorder %v277_v9, 0.0 }
   0xe   :  { %1150 = vmatprep.subr.bf16.mxu1 %v1206_v0 }
  0x10   :  { %1134 = vmatpush3.bf16.msra.mxu0 %v1133_v24 }
  0x11   :  { %1135 = vmatprep.subr.bf16.mxu0 %v1206_v0  ;;  %1152 = vmatpush3.bf16.msra.mxu1 %v1151_v27 }
  0x12   :  { %1153 = vmatprep.subr.bf16.mxu1 %v1206_v0 }
  0x14   :  { %1137 = vmatpush3.bf16.msra.mxu0 %v1136_v30 }
  0x15   :  { %1138 = vmatprep.subr.bf16.mxu0 %v1206_v0  ;;  %1155 = vmatpush3.bf16.msra.mxu1 %v1154_v33 }
  0x16   :  { %1156 = vmatprep.subr.bf16.mxu1 %v1206_v0  ;;  %v275_v0 = vld [vmem:[%s1808_s4 + $0x4] sm:$0xf]  ;;  %s1213_s4 = smov 96  }
  0x17   :  { %vm279_vm7 = vcmp.gt.f32.partialorder %v275_v0, 0.0 }
  0x18   :  { %1140 = vmatpush3.bf16.msra.mxu0 %v1139_v36 }
  0x19   :  { %1158 = vmatpush3.bf16.msra.mxu1 %v1157_v37 }
  0x1b   :  { %1094 = vmatmul.mubr.msk.f32.vlgmr.msra.gmra.mrb[0].mxu0 %vm45_vm1, %v32_v38 }
  0x1c   :  { %1121 = vmatmul.mubr.msk.f32.vlgmr.msra.gmra.mrb[0].mxu1 %vm45_vm1, %v32_v38 }
  0xee   :  { %v115_v45 = vpop.f32.mrb[0].mxu0 }
  0xef   :  { %v208_v46 = vrot.slane %v115_v45, %v207_v44  ;;  %v1095_v48 = vpop.f32.mrb[1].mxu0  ;;  %v197_v49 = vpop.f32.mrb[0].mxu1 }
  0xf0   :  { %v1122_v50 = vpop.f32.mrb[1].mxu1 }
  0xf1   :  { %v209_v51 = vcombine.high %v208_v46, %v208_v46  ;;  %v216_v52 = vrot.slane %v208_v46, %v207_v44 }
  0xf3   :  { %v223_v53 = vrot.slane %v209_v51, %v207_v44  ;;  %v224_v54 = vcombine.high %v216_v52, %v216_v52  ;;  %v229_v55 = vrot.slane %v216_v52, %v1362_v47 }
  0xf5   :  { %v225_v59 = vcombine.high %v223_v53, %v223_v53  ;;  %v233_v60 = vrot.slane %v223_v53, %v1362_v47  ;;  %v237_v61 = vrot.slane %v224_v54, %v1362_v47  ;;  %v246_v62 = vadd.f32 %v229_v55, %v197_v49 }
  0xf7   :  { %v241_v2 = vrot.slane %v225_v59, %v1362_v47  ;;  %v247_v3 = vadd.f32 %v233_v60, %v197_v49  ;;  %v248_v4 = vadd.f32 %v237_v61, %v197_v49  ;;  %vm250_vm5 = vcmp.ge.f32.partialorder %v246_v62, 0.0 }
  0xf8   :  { %v254_v6 = vmul.f32 4.0, %v246_v62 }
  0xf9   :  { %v249_v7 = vadd.f32 %v241_v2, %v197_v49  ;;  %vm251_vm9 = vcmp.ge.f32.partialorder %v247_v3, 0.0  ;;  %vm252_vm10 = vcmp.ge.f32.partialorder %v248_v4, 0.0  ;;  %v255_v8 = vmul.f32 4.0, %v247_v3 }
  0xfa   :  { %v256_v10 = vmul.f32 4.0, %v248_v4  ;;  %v258_v11 = vsel %vm250_vm5, %v246_v62, %v254_v6 }
  0xfb   :  { %vm253_vm13 = vcmp.ge.f32.partialorder %v249_v7, 0.0  ;;  %v257_v12 = vmul.f32 4.0, %v249_v7  ;;  %v259_v13 = vsel %vm251_vm9, %v247_v3, %v255_v8  ;;  %v270_v14 = vsel %vm266_vm2, %v258_v11, -9e+15 }
  0xfc   :  { %v260_v15 = vsel %vm252_vm10, %v248_v4, %v256_v10  ;;  %v271_v16 = vsel %vm267_vm3, %v259_v13, -9e+15  ;;  %v282_v17 = vsel %vm278_vm4, %v270_v14, -inf }
  0xfd   :  { %v261_v18 = vsel %vm253_vm13, %v249_v7, %v257_v12  ;;  %v272_v19 = vsel %vm268_vm6, %v260_v15, -9e+15  ;;  %v283_v20 = vsel %vm279_vm7, %v271_v16, -inf  ;;  %v287_v21 = vsel %vm286_vm12, %v282_v17, -inf }
  0xfe   :  { %v273_v22 = vsel %vm269_vm11, %v261_v18, -9e+15  ;;  %v284_v23 = vsel %vm280_vm8, %v272_v19, -inf  ;;  %v288_v24 = vrot.slane %v287_v21, 4  ;;  %v294_v25 = vsel %vm286_vm12, %v283_v20, -inf }
  0xff   :  { %v285_v26 = vsel %vm281_vm14, %v273_v22, -inf  ;;  %v295_v27 = vrot.slane %v294_v25, 4  ;;  %v301_v28 = vsel %vm286_vm12, %v284_v23, -inf  ;;  %vm891_vm7 = vcmask 64512  }
 0x100   :  { %v289_v29 = vmax.f32 %v287_v21, %v288_v24  ;;  %v302_v30 = vrot.slane %v301_v28, 4  ;;  %v308_v31 = vsel %vm286_vm12, %v285_v26, -inf }
 0x101   :  { %v296_v32 = vmax.f32 %v294_v25, %v295_v27  ;;  %v309_v33 = vrot.slane %v308_v31, 4 }
 0x102   :  { %v290_v34 = vrot.slane %v289_v29, 2  ;;  %v303_v35 = vmax.f32 %v301_v28, %v302_v30  ;;  %v397_v30 = vsub.s32 1, %v1358_v43 }
 0x103   :  { %v297_v36 = vrot.slane %v296_v32, 2  ;;  %v310_v37 = vmax.f32 %v308_v31, %v309_v33  ;;  %v429_v31 = vsub.s32 2, %v1358_v43 }
 0x104   :  { %v291_v38 = vmax.f32 %v289_v29, %v290_v34  ;;  %v304_v39 = vrot.slane %v303_v35, 2 }
 0x105   :  { %v298_v40 = vmax.f32 %v296_v32, %v297_v36  ;;  %v311_v41 = vrot.slane %v310_v37, 2  ;;  %v1409_v36 = vsub.s32 3, %v1358_v43  ;;  %v365_v43 = vld [vmem:[%s1810_s0 + $0x10] sm:$0xff] }
 0x106   :  { %v292_v42 = vrot.slane %v291_v38, 1  ;;  %v305_v44 = vmax.f32 %v303_v35, %v304_v39  ;;  %v364_v39 = vld [vmem:[%s1810_s0 + $0x8] sm:$0xff] }
 0x107   :  { %v299_v45 = vrot.slane %v298_v40, 1  ;;  %v312_v46 = vmax.f32 %v310_v37, %v311_v41 }
 0x108   :  { %v293_v48 = vmax.f32 %v291_v38, %v292_v42  ;;  %v306_v49 = vrot.slane %v305_v44, 1  ;;  %v363_v38 = vld [vmem:[%s1810_s0] sm:$0xff] }
 0x109   :  { %v300_v50 = vmax.f32 %v298_v40, %v299_v45  ;;  %v313_v51 = vrot.slane %v312_v46, 1 }
 0x10a   :  { %v307_v52 = vmax.f32 %v305_v44, %v306_v49  ;;  %v315_v53 = vsub.f32 %v282_v17, %v293_v48  ;;  %v366_v48 = vld [vmem:[%s1810_s0 + $0x18] sm:$0xff] }
 0x10b   :  { %v314_v54 = vmax.f32 %v312_v46, %v313_v51  ;;  %v316_v55 = vsub.f32 %v283_v20, %v300_v50 }
 0x10c   :  { %v317_v56 = vsub.f32 %v284_v23, %v307_v52  ;;  %v319_v57 = vmul.f32 1.442695, %v315_v53 }
 0x10d   :  { %v318_v58 = vsub.f32 %v285_v26, %v314_v54  ;;  %v321_v59 = vmul.f32 1.442695, %v316_v55 }
 0x10e   :  { %1174 = vpow2.f32 %v319_v57  ;;  %v323_v60 = vmul.f32 1.442695, %v317_v56 }
 0x10f   :  { %1176 = vpow2.f32 %v321_v59  ;;  %v325_v61 = vmul.f32 1.442695, %v318_v58 }
 0x110   :  { %1178 = vpow2.f32 %v323_v60 }
 0x111   :  { %1180 = vpow2.f32 %v325_v61 }
 0x118   :  { %v1175_v62 = vpop.eup %1174 }
 0x119   :  { %v1177_v63 = vpop.eup %1176  ;;  %v327_v0 = vsel %vm286_vm12, %v1175_v62, 0.0 }
 0x11a   :  { %v1179_v1 = vpop.eup %1178  ;;  %v328_v2 = vrot.slane %v327_v0, 4  ;;  %v334_v3 = vsel %vm286_vm12, %v1177_v63, 0.0 }
 0x11b   :  { %v1181_v4 = vpop.eup %1180  ;;  %v335_v5 = vrot.slane %v334_v3, 4  ;;  %v341_v6 = vsel %vm286_vm12, %v1179_v1, 0.0 }
 0x11c   :  { %v329_v7 = vadd.f32 %v328_v2, %v327_v0  ;;  %v342_v8 = vrot.slane %v341_v6, 4  ;;  %v348_v9 = vsel %vm286_vm12, %v1181_v4, 0.0 }
 0x11d   :  { %v336_v10 = vadd.f32 %v335_v5, %v334_v3  ;;  %v349_v11 = vrot.slane %v348_v9, 4  ;;  %v368_v5 = vld [vmem:[%s1810_s0 + $0x28] sm:$0xff] }
 0x11e   :  { %v330_v12 = vrot.slane %v329_v7, 2  ;;  %v343_v13 = vadd.f32 %v342_v8, %v341_v6 }
 0x11f   :  { %v337_v14 = vrot.slane %v336_v10, 2  ;;  %v350_v15 = vadd.f32 %v349_v11, %v348_v9 }
 0x120   :  { %v331_v16 = vadd.f32 %v330_v12, %v329_v7  ;;  %v344_v17 = vrot.slane %v343_v13, 2 }
 0x121   :  { %v338_v18 = vadd.f32 %v337_v14, %v336_v10  ;;  %v351_v19 = vrot.slane %v350_v15, 2 }
 0x122   :  { %v332_v20 = vrot.slane %v331_v16, 1  ;;  %v345_v21 = vadd.f32 %v344_v17, %v343_v13 }
 0x123   :  { %v339_v22 = vrot.slane %v338_v18, 1  ;;  %v352_v23 = vadd.f32 %v351_v19, %v350_v15 }
 0x124   :  { %v333_v24 = vadd.f32 %v332_v20, %v331_v16  ;;  %v346_v25 = vrot.slane %v345_v21, 1 }
 0x125   :  { %v340_v26 = vadd.f32 %v339_v22, %v338_v18  ;;  %v353_v27 = vrot.slane %v352_v23, 1 }
 0x126   :  { %v347_v28 = vadd.f32 %v346_v25, %v345_v21  ;;  %1182 = vrcp.f32 %v333_v24 }
 0x127   :  { %v354_v29 = vadd.f32 %v353_v27, %v352_v23  ;;  %1184 = vrcp.f32 %v340_v26 }
 0x128   :  { %1186 = vrcp.f32 %v347_v28 }
 0x129   :  { %1188 = vrcp.f32 %v354_v29  ;;  %v369_v29 = vld [vmem:[%s1810_s0 + $0x30] sm:$0xff] }
 0x130   :  { %v1183_v32 = vpop.eup %1182 }
 0x131   :  { %v1185_v33 = vpop.eup %1184  ;;  %v359_v34 = vmul.f32 %v1183_v32, %v1175_v62 }
 0x132   :  { %v1187_v35 = vpop.eup %1186  ;;  %v360_v37 = vmul.f32 %v1185_v33, %v1177_v63 }
 0x133   :  { %v1189_v40 = vpop.eup %1188  ;;  %v361_v41 = vmul.f32 %v1187_v35, %v1179_v1  ;;  %v374_v42 = vrot.slane %v359_v34, %v1362_v47  ;;  %v398_v44 = vrot.slane %v359_v34, %v397_v30  ;;  %v430_v45 = vrot.slane %v359_v34, %v429_v31 }
 0x134   :  { %v362_v46 = vmul.f32 %v1189_v40, %v1181_v4  ;;  %v378_v49 = vrot.slane %v360_v37, %v1362_v47  ;;  %v402_v50 = vrot.slane %v360_v37, %v397_v30  ;;  %v434_v51 = vrot.slane %v360_v37, %v429_v31  ;;  %v367_v4 = vld [vmem:[%s1810_s0 + $0x20] sm:$0xff] }
 0x135   :  { %v382_v52 = vrot.slane %v361_v41, %v1362_v47  ;;  %v387_v53 = vmul.f32 %v374_v42, %v363_v38  ;;  %v388_v54 = vmul.f32 %v374_v42, %v364_v39  ;;  %v406_v55 = vrot.slane %v361_v41, %v397_v30 }
 0x136   :  { %v386_v56 = vrot.slane %v362_v46, %v1362_v47  ;;  %v389_v57 = vmul.f32 %v378_v49, %v363_v38  ;;  %v390_v58 = vmul.f32 %v378_v49, %v364_v39  ;;  %v410_v59 = vrot.slane %v362_v46, %v397_v30  ;;  %v370_v30 = vld [vmem:[%s1810_s0 + $0x38] sm:$0xff] }
 0x137   :  { %v391_v60 = vmul.f32 %v382_v52, %v363_v38  ;;  %v392_v61 = vmul.f32 %v382_v52, %v364_v39  ;;  %v411_v62 = vmul.f32 %v398_v44, %v365_v43  ;;  %v412_v63 = vmul.f32 %v398_v44, %v366_v48 }
 0x138   :  { %v393_v0 = vmul.f32 %v386_v56, %v363_v38  ;;  %v394_v1 = vmul.f32 %v386_v56, %v364_v39  ;;  %v413_v2 = vmul.f32 %v402_v50, %v365_v43  ;;  %v414_v3 = vmul.f32 %v402_v50, %v366_v48 }
 0x139   :  { %v415_v47 = vmul.f32 %v406_v55, %v365_v43  ;;  %v416_v6 = vmul.f32 %v406_v55, %v366_v48  ;;  %v417_v7 = vmul.f32 %v410_v59, %v365_v43  ;;  %v418_v8 = vmul.f32 %v410_v59, %v366_v48 }
 0x13a   :  { %v419_v9 = vadd.f32 %v411_v62, %v387_v53  ;;  %v420_v10 = vadd.f32 %v412_v63, %v388_v54  ;;  %v421_v11 = vadd.f32 %v413_v2, %v389_v57  ;;  %v422_v12 = vadd.f32 %v414_v3, %v390_v58  ;;  %v515_v62 = vld [vmem:[%s1811_s6] sm:$0xff]  ;;  %v516_v63 = vld [vmem:[%s1811_s6 + $0x8] sm:$0xff]  ;;  %v521_v2 = vld [vmem:[%s1811_s6 + $0x30] sm:$0xff] }
 0x13b   :  { %v423_v13 = vadd.f32 %v415_v47, %v391_v60  ;;  %v424_v14 = vadd.f32 %v416_v6, %v392_v61  ;;  %v425_v15 = vadd.f32 %v417_v7, %v393_v0  ;;  %v426_v16 = vadd.f32 %v418_v8, %v394_v1  ;;  %v522_v3 = vld [vmem:[%s1811_s6 + $0x38] sm:$0xff] }
 0x13c   :  { %v438_v17 = vrot.slane %v361_v41, %v429_v31  ;;  %v442_v18 = vrot.slane %v362_v46, %v429_v31  ;;  %v443_v19 = vmul.f32 %v430_v45, %v367_v4  ;;  %v444_v20 = vmul.f32 %v430_v45, %v368_v5 }
 0x13d   :  { %v445_v21 = vmul.f32 %v434_v51, %v367_v4  ;;  %v446_v22 = vmul.f32 %v434_v51, %v368_v5  ;;  %v462_v23 = vrot.slane %v359_v34, %v1409_v36  ;;  %v466_v24 = vrot.slane %v360_v37, %v1409_v36 }
 0x13e   :  { %v447_v25 = vmul.f32 %v438_v17, %v367_v4  ;;  %v448_v26 = vmul.f32 %v438_v17, %v368_v5  ;;  %v449_v27 = vmul.f32 %v442_v18, %v367_v4  ;;  %v450_v28 = vmul.f32 %v442_v18, %v368_v5  ;;  %v518_v17 = vld [vmem:[%s1811_s6 + $0x18] sm:$0xff] }
 0x13f   :  { %v451_v31 = vadd.f32 %v443_v19, %v419_v9  ;;  %v452_v32 = vadd.f32 %v444_v20, %v420_v10  ;;  %v453_v33 = vadd.f32 %v445_v21, %v421_v11  ;;  %v454_v35 = vadd.f32 %v446_v22, %v422_v12  ;;  %v517_v12 = vld [vmem:[%s1811_s6 + $0x10] sm:$0xff]  ;;  %v519_v21 = vld [vmem:[%s1811_s6 + $0x20] sm:$0xff]  ;;  %v520_v22 = vld [vmem:[%s1811_s6 + $0x28] sm:$0xff] }
 0x140   :  { %v455_v38 = vadd.f32 %v447_v25, %v423_v13  ;;  %v456_v34 = vadd.f32 %v448_v26, %v424_v14  ;;  %v457_v39 = vadd.f32 %v449_v27, %v425_v15  ;;  %v458_v37 = vadd.f32 %v450_v28, %v426_v16 }
 0x141   :  { %v470_v40 = vrot.slane %v361_v41, %v1409_v36  ;;  %v474_v42 = vrot.slane %v362_v46, %v1409_v36  ;;  %v475_v44 = vmul.f32 %v462_v23, %v369_v29  ;;  %v476_v45 = vmul.f32 %v462_v23, %v370_v30 }
 0x142   :  { %v477_v43 = vmul.f32 %v466_v24, %v369_v29  ;;  %v478_v48 = vmul.f32 %v466_v24, %v370_v30 }
 0x143   :  { %v479_v49 = vmul.f32 %v470_v40, %v369_v29  ;;  %v480_v50 = vmul.f32 %v470_v40, %v370_v30  ;;  %v481_v51 = vmul.f32 %v474_v42, %v369_v29  ;;  %v482_v52 = vmul.f32 %v474_v42, %v370_v30 }
 0x144   :  { %v483_v53 = vadd.f32 %v475_v44, %v451_v31  ;;  %v484_v54 = vadd.f32 %v476_v45, %v452_v32  ;;  %v485_v55 = vadd.f32 %v477_v43, %v453_v33  ;;  %v1443_v56 = vadd.f32 %v478_v48, %v454_v35 }
 0x145   :  { %v1445_v57 = vadd.f32 %v479_v49, %v455_v38  ;;  %v1447_v58 = vadd.f32 %v480_v50, %v456_v34  ;;  %v489_v41 = vadd.f32 %v481_v51, %v457_v39  ;;  %v490_v59 = vadd.f32 %v482_v52, %v458_v37 }
 0x146   :  { %vm491_vm15 = vcmp.ge.f32.partialorder %v483_v53, 0.0  ;;  %vm492_vm0 = vcmp.ge.f32.partialorder %v484_v54, 0.0  ;;  %v499_v36 = vmul.f32 4.0, %v483_v53  ;;  %v500_v46 = vmul.f32 4.0, %v484_v54 }
 0x147   :  { %vm497_vm1 = vcmp.ge.f32.partialorder %v489_v41, 0.0  ;;  %vm498_vm2 = vcmp.ge.f32.partialorder %v490_v59, 0.0  ;;  %v505_v60 = vmul.f32 4.0, %v489_v41  ;;  %v506_v61 = vmul.f32 4.0, %v490_v59 }
 0x148   :  { %v507_v0 = vsel %vm491_vm15, %v483_v53, %v499_v36  ;;  %v508_v1 = vsel %vm492_vm0, %v484_v54, %v500_v46  ;;  %v501_v9 = vmul.f32 4.0, %v485_v55  ;;  %vm493_vm3 = vcmp.ge.f32.partialorder %v485_v55, 0.0 }
 0x149   :  { %v513_v4 = vsel %vm497_vm1, %v489_v41, %v505_v60  ;;  %v514_v5 = vsel %vm498_vm2, %v490_v59, %v506_v61  ;;  %v1461_v47 = vmul.f32 %v515_v62, %v507_v0  ;;  %v1463_v6 = vmul.f32 %v516_v63, %v508_v1 }
 0x14a   :  { %v1465_v7 = vmul.f32 %v521_v2, %v513_v4  ;;  %v1467_v8 = vmul.f32 %v522_v3, %v514_v5  ;;  %v502_v10 = vmul.f32 4.0, %v1443_v56  ;;  %v509_v11 = vsel %vm493_vm3, %v485_v55, %v501_v9 }
 0x14b   :  { %573 = vrot.lane.b32.xlu1 %v1463_v6, %s1210_s27  ;;  %539 = vrot.lane.b32.xlu0 %v1461_v47, %s1211_s28  ;;  %vm494_vm4 = vcmp.ge.f32.partialorder %v1443_v56, 0.0  ;;  %v1514_v13 = vmul.f32 %v517_v12, %v509_v11  ;;  %v503_v14 = vmul.f32 4.0, %v1445_v57  ;;  %v504_v15 = vmul.f32 4.0, %v1447_v58 }
 0x14c   :  { %v510_v16 = vsel %vm494_vm4, %v1443_v56, %v502_v10  ;;  %vm495_vm5 = vcmp.ge.f32.partialorder %v1445_v57, 0.0  ;;  %vm496_vm6 = vcmp.ge.f32.partialorder %v1447_v58, 0.0 }
 0x14d   :  { %v1528_v18 = vmul.f32 %v518_v17, %v510_v16  ;;  %v511_v19 = vsel %vm495_vm5, %v1445_v57, %v503_v14  ;;  %v512_v20 = vsel %vm496_vm6, %v1447_v58, %v504_v15 }
 0x14e   :  { %v1542_v23 = vmul.f32 %v519_v21, %v511_v19  ;;  %v1544_v24 = vmul.f32 %v520_v22, %v512_v20 }
 0x14f   :  { %605 = vrot.lane.b32.xlu1 %v1463_v6, %s1212_s29  ;;  %541 = vrot.lane.b32.xlu0 %v1463_v6, %s1211_s28 }
 0x153   :  { %637 = vrot.lane.b32.xlu1 %v1463_v6, %s1213_s4  ;;  %571 = vrot.lane.b32.xlu0 %v1461_v47, %s1210_s27 }
 0x157   :  { %669 = vrot.lane.b32.xlu1 %v1463_v6, %s1214_s5  ;;  %603 = vrot.lane.b32.xlu0 %v1461_v47, %s1212_s29 }
 0x15b   :  { %701 = vrot.lane.b32.xlu1 %v1463_v6, %s1215_s30  ;;  %635 = vrot.lane.b32.xlu0 %v1461_v47, %s1213_s4 }
 0x15f   :  { %733 = vrot.lane.b32.xlu1 %v1463_v6, %s1216_s10  ;;  %667 = vrot.lane.b32.xlu0 %v1461_v47, %s1214_s5 }
 0x163   :  { %765 = vrot.lane.b32.xlu1 %v1463_v6, %s1217_s11  ;;  %699 = vrot.lane.b32.xlu0 %v1461_v47, %s1215_s30 }
 0x167   :  { %797 = vrot.lane.b32.xlu1 %v1463_v6, %s1218_s12  ;;  %731 = vrot.lane.b32.xlu0 %v1461_v47, %s1216_s10 }
 0x16b   :  { %829 = vrot.lane.b32.xlu1 %v1463_v6, %s1219_s13  ;;  %763 = vrot.lane.b32.xlu0 %v1461_v47, %s1217_s11 }
 0x16f   :  { %861 = vrot.lane.b32.xlu1 %v1463_v6, %s1220_s15  ;;  %795 = vrot.lane.b32.xlu0 %v1461_v47, %s1218_s12 }
 0x173   :  { %543 = vrot.lane.b32.xlu1 %v1514_v13, %s1211_s28  ;;  %827 = vrot.lane.b32.xlu0 %v1461_v47, %s1219_s13 }
 0x177   :  { %545 = vrot.lane.b32.xlu1 %v1528_v18, %s1211_s28  ;;  %859 = vrot.lane.b32.xlu0 %v1461_v47, %s1220_s15 }
 0x17b   :  { %549 = vrot.lane.b32.xlu1 %v1544_v24, %s1211_s28  ;;  %547 = vrot.lane.b32.xlu0 %v1542_v23, %s1211_s28 }
 0x17f   :  { %577 = vrot.lane.b32.xlu1 %v1528_v18, %s1210_s27  ;;  %575 = vrot.lane.b32.xlu0 %v1514_v13, %s1210_s27 }
 0x183   :  { %581 = vrot.lane.b32.xlu1 %v1544_v24, %s1210_s27  ;;  %579 = vrot.lane.b32.xlu0 %v1542_v23, %s1210_s27 }
 0x187   :  { %609 = vrot.lane.b32.xlu1 %v1528_v18, %s1212_s29  ;;  %607 = vrot.lane.b32.xlu0 %v1514_v13, %s1212_s29 }
 0x18b   :  { %613 = vrot.lane.b32.xlu1 %v1544_v24, %s1212_s29  ;;  %611 = vrot.lane.b32.xlu0 %v1542_v23, %s1212_s29 }
 0x18f   :  { %641 = vrot.lane.b32.xlu1 %v1528_v18, %s1213_s4  ;;  %639 = vrot.lane.b32.xlu0 %v1514_v13, %s1213_s4 }
 0x193   :  { %645 = vrot.lane.b32.xlu1 %v1544_v24, %s1213_s4  ;;  %643 = vrot.lane.b32.xlu0 %v1542_v23, %s1213_s4 }
 0x197   :  { %673 = vrot.lane.b32.xlu1 %v1528_v18, %s1214_s5  ;;  %671 = vrot.lane.b32.xlu0 %v1514_v13, %s1214_s5 }
 0x19b   :  { %677 = vrot.lane.b32.xlu1 %v1544_v24, %s1214_s5  ;;  %675 = vrot.lane.b32.xlu0 %v1542_v23, %s1214_s5 }
 0x19f   :  { %705 = vrot.lane.b32.xlu1 %v1528_v18, %s1215_s30  ;;  %703 = vrot.lane.b32.xlu0 %v1514_v13, %s1215_s30 }
 0x1a3   :  { %709 = vrot.lane.b32.xlu1 %v1544_v24, %s1215_s30  ;;  %707 = vrot.lane.b32.xlu0 %v1542_v23, %s1215_s30 }
 0x1a7   :  { %737 = vrot.lane.b32.xlu1 %v1528_v18, %s1216_s10  ;;  %735 = vrot.lane.b32.xlu0 %v1514_v13, %s1216_s10 }
 0x1ab   :  { %741 = vrot.lane.b32.xlu1 %v1544_v24, %s1216_s10  ;;  %739 = vrot.lane.b32.xlu0 %v1542_v23, %s1216_s10 }
 0x1af   :  { %769 = vrot.lane.b32.xlu1 %v1528_v18, %s1217_s11  ;;  %767 = vrot.lane.b32.xlu0 %v1514_v13, %s1217_s11 }
 0x1b3   :  { %773 = vrot.lane.b32.xlu1 %v1544_v24, %s1217_s11  ;;  %771 = vrot.lane.b32.xlu0 %v1542_v23, %s1217_s11 }
 0x1b7   :  { %801 = vrot.lane.b32.xlu1 %v1528_v18, %s1218_s12  ;;  %799 = vrot.lane.b32.xlu0 %v1514_v13, %s1218_s12 }
 0x1bb   :  { %805 = vrot.lane.b32.xlu1 %v1544_v24, %s1218_s12  ;;  %803 = vrot.lane.b32.xlu0 %v1542_v23, %s1218_s12 }
 0x1bd   :  { %v574_v25 = vpop.permute.xlu1 %573  ;;  %v1614_v26 = vpop.permute.xlu0 %539 }
 0x1be   :  { %v563_v0 = vadd.f32 %v1614_v26, %v1461_v47 }
 0x1bf   :  { %833 = vrot.lane.b32.xlu1 %v1528_v18, %s1219_s13  ;;  %831 = vrot.lane.b32.xlu0 %v1514_v13, %s1219_s13 }
 0x1c1   :  { %v606_v27 = vpop.permute.xlu1 %605  ;;  %v542_v28 = vpop.permute.xlu0 %541 }
 0x1c2   :  { %v564_v29 = vadd.f32 %v542_v28, %v1463_v6 }
 0x1c3   :  { %837 = vrot.lane.b32.xlu1 %v1544_v24, %s1219_s13  ;;  %835 = vrot.lane.b32.xlu0 %v1542_v23, %s1219_s13 }
 0x1c4   :  { %v596_v30 = vadd.f32 %v574_v25, %v564_v29 }
 0x1c5   :  { %v638_v31 = vpop.permute.xlu1 %637  ;;  %v572_v32 = vpop.permute.xlu0 %571 }
 0x1c6   :  { %v628_v33 = vadd.f32 %v606_v27, %v596_v30  ;;  %v595_v3 = vadd.f32 %v572_v32, %v563_v0 }
 0x1c7   :  { %865 = vrot.lane.b32.xlu1 %v1528_v18, %s1220_s15  ;;  %863 = vrot.lane.b32.xlu0 %v1514_v13, %s1220_s15 }
 0x1c8   :  { %v660_v35 = vadd.f32 %v638_v31, %v628_v33 }
 0x1c9   :  { %v670_v38 = vpop.permute.xlu1 %669  ;;  %v604_v34 = vpop.permute.xlu0 %603 }
 0x1ca   :  { %v692_v39 = vadd.f32 %v670_v38, %v660_v35  ;;  %v627_v4 = vadd.f32 %v604_v34, %v595_v3 }
 0x1cb   :  { %869 = vrot.lane.b32.xlu1 %v1544_v24, %s1220_s15  ;;  %867 = vrot.lane.b32.xlu0 %v1542_v23, %s1220_s15 }
 0x1cd   :  { %v702_v37 = vpop.permute.xlu1 %701  ;;  %v636_v40 = vpop.permute.xlu0 %635 }
 0x1ce   :  { %v1633_v42 = vadd.f32 %v702_v37, %v692_v39  ;;  %v659_v9 = vadd.f32 %v636_v40, %v627_v4 }
 0x1cf   :  { %553 = vrot.lane.b32.xlu1 %v1467_v8, %s1211_s28  ;;  %551 = vrot.lane.b32.xlu0 %v1465_v7, %s1211_s28 }
 0x1d1   :  { %v734_v44 = vpop.permute.xlu1 %733  ;;  %v668_v45 = vpop.permute.xlu0 %667 }
 0x1d2   :  { %v691_v10 = vadd.f32 %v668_v45, %v659_v9  ;;  %v756_v47 = vadd.f32 %v734_v44, %v1633_v42 }
 0x1d3   :  { %585 = vrot.lane.b32.xlu1 %v1467_v8, %s1210_s27  ;;  %583 = vrot.lane.b32.xlu0 %v1465_v7, %s1210_s27 }
 0x1d5   :  { %v766_v43 = vpop.permute.xlu1 %765  ;;  %v700_v48 = vpop.permute.xlu0 %699 }
 0x1d6   :  { %v723_v14 = vadd.f32 %v700_v48, %v691_v10  ;;  %v788_v26 = vadd.f32 %v766_v43, %v756_v47 }
 0x1d7   :  { %617 = vrot.lane.b32.xlu1 %v1467_v8, %s1212_s29  ;;  %615 = vrot.lane.b32.xlu0 %v1465_v7, %s1212_s29 }
 0x1d9   :  { %v798_v49 = vpop.permute.xlu1 %797  ;;  %v732_v50 = vpop.permute.xlu0 %731 }
 0x1da   :  { %v755_v15 = vadd.f32 %v732_v50, %v723_v14  ;;  %v820_v30 = vadd.f32 %v798_v49, %v788_v26 }
 0x1db   :  { %649 = vrot.lane.b32.xlu1 %v1467_v8, %s1213_s4  ;;  %647 = vrot.lane.b32.xlu0 %v1465_v7, %s1213_s4 }
 0x1dd   :  { %v830_v51 = vpop.permute.xlu1 %829  ;;  %v764_v52 = vpop.permute.xlu0 %763 }
 0x1de   :  { %v787_v19 = vadd.f32 %v764_v52, %v755_v15  ;;  %v852_v31 = vadd.f32 %v830_v51, %v820_v30 }
 0x1df   :  { %681 = vrot.lane.b32.xlu1 %v1467_v8, %s1214_s5  ;;  %679 = vrot.lane.b32.xlu0 %v1465_v7, %s1214_s5 }
 0x1e1   :  { %v862_v53 = vpop.permute.xlu1 %861  ;;  %v796_v54 = vpop.permute.xlu0 %795 }
 0x1e2   :  { %v819_v20 = vadd.f32 %v796_v54, %v787_v19  ;;  %v1692_v38 = vadd.f32 %v862_v53, %v852_v31 }
 0x1e3   :  { %713 = vrot.lane.b32.xlu1 %v1467_v8, %s1215_s30  ;;  %711 = vrot.lane.b32.xlu0 %v1465_v7, %s1215_s30 }
 0x1e4   :  { %v895_v37 = vsel %vm891_vm7, %v1692_v38, 0.0 }
 0x1e5   :  { %v1659_v55 = vpop.permute.xlu1 %543  ;;  %v828_v56 = vpop.permute.xlu0 %827 }
 0x1e6   :  { %v851_v25 = vadd.f32 %v828_v56, %v819_v20  ;;  %v565_v49 = vadd.f32 %v1659_v55, %v1514_v13 }
 0x1e7   :  { %745 = vrot.lane.b32.xlu1 %v1467_v8, %s1216_s10  ;;  %743 = vrot.lane.b32.xlu0 %v1465_v7, %s1216_s10 }
 0x1e9   :  { %v546_v57 = vpop.permute.xlu1 %545  ;;  %v860_v58 = vpop.permute.xlu0 %859 }
 0x1ea   :  { %v1688_v27 = vadd.f32 %v860_v58, %v851_v25  ;;  %v566_v50 = vadd.f32 %v546_v57, %v1528_v18 }
 0x1eb   :  { %777 = vrot.lane.b32.xlu1 %v1467_v8, %s1217_s11  ;;  %775 = vrot.lane.b32.xlu0 %v1465_v7, %s1217_s11 }
 0x1ec   :  { %v892_v35 = vsel %vm891_vm7, %v1688_v27, 0.0 }
 0x1ed   :  { %v1669_v41 = vpop.permute.xlu1 %549  ;;  %v548_v59 = vpop.permute.xlu0 %547 }
 0x1ee   :  { %v567_v54 = vadd.f32 %v548_v59, %v1542_v23  ;;  %v568_v0 = vadd.f32 %v1669_v41, %v1544_v24 }
 0x1ef   :  { %809 = vrot.lane.b32.xlu1 %v1467_v8, %s1218_s12  ;;  %807 = vrot.lane.b32.xlu0 %v1465_v7, %s1218_s12 }
 0x1f1   :  { %v578_v36 = vpop.permute.xlu1 %577  ;;  %v576_v46 = vpop.permute.xlu0 %575 }
 0x1f2   :  { %v597_v51 = vadd.f32 %v576_v46, %v565_v49  ;;  %v598_v56 = vadd.f32 %v578_v36, %v566_v50 }
 0x1f3   :  { %841 = vrot.lane.b32.xlu1 %v1467_v8, %s1219_s13  ;;  %839 = vrot.lane.b32.xlu0 %v1465_v7, %s1219_s13 }
 0x1f5   :  { %v1679_v60 = vpop.permute.xlu1 %581  ;;  %v580_v61 = vpop.permute.xlu0 %579 }
 0x1f6   :  { %v599_v3 = vadd.f32 %v580_v61, %v567_v54  ;;  %v600_v15 = vadd.f32 %v1679_v60, %v568_v0 }
 0x1f7   :  { %873 = vrot.lane.b32.xlu1 %v1467_v8, %s1220_s15  ;;  %871 = vrot.lane.b32.xlu0 %v1465_v7, %s1220_s15 }
 0x1f9   :  { %v610_v62 = vpop.permute.xlu1 %609  ;;  %v608_v63 = vpop.permute.xlu0 %607 }
 0x1fa   :  { %v629_v58 = vadd.f32 %v608_v63, %v597_v51  ;;  %v630_v4 = vadd.f32 %v610_v62, %v598_v56 }
 0x1fd   :  { %v614_v1 = vpop.permute.xlu1 %613  ;;  %v612_v2 = vpop.permute.xlu0 %611 }
 0x1fe   :  { %v631_v13 = vadd.f32 %v612_v2, %v599_v3  ;;  %v632_v57 = vadd.f32 %v614_v1, %v600_v15 }
 0x201   :  { %v642_v5 = vpop.permute.xlu1 %641  ;;  %v640_v6 = vpop.permute.xlu0 %639 }
 0x202   :  { %v661_v9 = vadd.f32 %v640_v6, %v629_v58  ;;  %v662_v55 = vadd.f32 %v642_v5, %v630_v4 }
 0x205   :  { %v646_v11 = vpop.permute.xlu1 %645  ;;  %v644_v12 = vpop.permute.xlu0 %643 }
 0x206   :  { %v663_v46 = vadd.f32 %v644_v12, %v631_v13  ;;  %v664_v36 = vadd.f32 %v646_v11, %v632_v57 }
 0x209   :  { %v674_v16 = vpop.permute.xlu1 %673  ;;  %v672_v17 = vpop.permute.xlu0 %671 }
 0x20a   :  { %v693_v18 = vadd.f32 %v672_v17, %v661_v9  ;;  %v694_v19 = vadd.f32 %v674_v16, %v662_v55 }
 0x20d   :  { %v678_v21 = vpop.permute.xlu1 %677  ;;  %v676_v22 = vpop.permute.xlu0 %675 }
 0x20e   :  { %v695_v63 = vadd.f32 %v676_v22, %v663_v46  ;;  %v696_v41 = vadd.f32 %v678_v21, %v664_v36 }
 0x211   :  { %v706_v28 = vpop.permute.xlu1 %705  ;;  %v704_v29 = vpop.permute.xlu0 %703 }
 0x212   :  { %v725_v20 = vadd.f32 %v704_v29, %v693_v18  ;;  %v726_v47 = vadd.f32 %v706_v28, %v694_v19 }
 0x215   :  { %v710_v32 = vpop.permute.xlu1 %709  ;;  %v708_v33 = vpop.permute.xlu0 %707 }
 0x216   :  { %893 = vadd.xlane.f32.xlu0 %v892_v35  ;;  %v727_v61 = vadd.f32 %v708_v33, %v695_v63  ;;  %v728_v60 = vadd.f32 %v710_v32, %v696_v41 }
 0x219   :  { %v738_v34 = vpop.permute.xlu1 %737  ;;  %v736_v39 = vpop.permute.xlu0 %735 }
 0x21a   :  { %v757_v24 = vadd.f32 %v736_v39, %v725_v20  ;;  %v758_v62 = vadd.f32 %v738_v34, %v726_v47 }
 0x21b   :  { %896 = vadd.xlane.f32.xlu1 %v895_v37 }
 0x21d   :  { %v742_v40 = vpop.permute.xlu1 %741  ;;  %v740_v42 = vpop.permute.xlu0 %739 }
 0x21e   :  { %v759_v2 = vadd.f32 %v740_v42, %v727_v61  ;;  %v760_v1 = vadd.f32 %v742_v40, %v728_v60 }
 0x221   :  { %v770_v44 = vpop.permute.xlu1 %769  ;;  %v768_v45 = vpop.permute.xlu0 %767 }
 0x222   :  { %v789_v6 = vadd.f32 %v768_v45, %v757_v24  ;;  %v790_v5 = vadd.f32 %v770_v44, %v758_v62 }
 0x225   :  { %v774_v43 = vpop.permute.xlu1 %773  ;;  %v772_v48 = vpop.permute.xlu0 %771 }
 0x226   :  { %v791_v12 = vadd.f32 %v772_v48, %v759_v2  ;;  %v792_v11 = vadd.f32 %v774_v43, %v760_v1 }
 0x229   :  { %v802_v52 = vpop.permute.xlu1 %801  ;;  %v800_v53 = vpop.permute.xlu0 %799 }
 0x22a   :  { %v821_v17 = vadd.f32 %v800_v53, %v789_v6  ;;  %v822_v16 = vadd.f32 %v802_v52, %v790_v5 }
 0x22d   :  { %v806_v10 = vpop.permute.xlu1 %805  ;;  %v804_v14 = vpop.permute.xlu0 %803 }
 0x22e   :  { %v823_v22 = vadd.f32 %v804_v14, %v791_v12  ;;  %v824_v21 = vadd.f32 %v806_v10, %v792_v11 }
 0x231   :  { %v834_v23 = vpop.permute.xlu1 %833  ;;  %v832_v59 = vpop.permute.xlu0 %831 }
 0x232   :  { %v853_v29 = vadd.f32 %v832_v59, %v821_v17  ;;  %v854_v28 = vadd.f32 %v834_v23, %v822_v16 }
 0x235   :  { %v838_v25 = vpop.permute.xlu1 %837  ;;  %v836_v26 = vpop.permute.xlu0 %835 }
 0x236   :  { %v855_v33 = vadd.f32 %v836_v26, %v823_v22  ;;  %v856_v40 = vadd.f32 %v838_v25, %v824_v21 }
 0x239   :  { %v866_v30 = vpop.permute.xlu1 %865  ;;  %v864_v31 = vpop.permute.xlu0 %863 }
 0x23a   :  { %v1703_v35 = vadd.f32 %v864_v31, %v853_v29  ;;  %v1705_v34 = vadd.f32 %v866_v30, %v854_v28 }
 0x23c   :  { %v898_v32 = vsel %vm891_vm7, %v1703_v35, 0.0  ;;  %v901_v45 = vsel %vm891_vm7, %v1705_v34, 0.0 }
 0x23d   :  { %v870_v39 = vpop.permute.xlu1 %869  ;;  %899 = vadd.xlane.f32.xlu0 %v898_v32  ;;  %v868_v37 = vpop.permute.xlu0 %867 }
 0x23e   :  { %v1709_v42 = vadd.f32 %v868_v37, %v855_v33  ;;  %v1711_v44 = vadd.f32 %v870_v39, %v856_v40 }
 0x240   :  { %v904_v43 = vsel %vm891_vm7, %v1709_v42, 0.0  ;;  %v907_v50 = vsel %vm891_vm7, %v1711_v44, 0.0 }
 0x241   :  { %v554_v48 = vpop.permute.xlu1 %553  ;;  %902 = vadd.xlane.f32.xlu0 %v901_v45  ;;  %905 = vadd.xlane.f32.xlu1 %v904_v43  ;;  %v552_v49 = vpop.permute.xlu0 %551 }
 0x242   :  { %v570_v10 = vadd.f32 %v554_v48, %v1467_v8  ;;  %v569_v14 = vadd.f32 %v552_v49, %v1465_v7 }
 0x245   :  { %v586_v51 = vpop.permute.xlu1 %585  ;;  %908 = vadd.xlane.f32.xlu0 %v907_v50  ;;  %v584_v52 = vpop.permute.xlu0 %583 }
 0x246   :  { %v602_v15 = vadd.f32 %v586_v51, %v570_v10  ;;  %v601_v13 = vadd.f32 %v584_v52, %v569_v14 }
 0x249   :  { %v618_v53 = vpop.permute.xlu1 %617  ;;  %v616_v54 = vpop.permute.xlu0 %615 }
 0x24a   :  { %v634_v57 = vadd.f32 %v618_v53, %v602_v15  ;;  %v633_v46 = vadd.f32 %v616_v54, %v601_v13 }
 0x24d   :  { %v650_v56 = vpop.permute.xlu1 %649  ;;  %v648_v58 = vpop.permute.xlu0 %647 }
 0x24e   :  { %v666_v19 = vadd.f32 %v650_v56, %v634_v57  ;;  %v665_v20 = vadd.f32 %v648_v58, %v633_v46 }
 0x251   :  { %v682_v0 = vpop.permute.xlu1 %681  ;;  %v680_v3 = vpop.permute.xlu0 %679 }
 0x252   :  { %v698_v36 = vadd.f32 %v682_v0, %v666_v19  ;;  %v697_v63 = vadd.f32 %v680_v3, %v665_v20 }
 0x255   :  { %v714_v4 = vpop.permute.xlu1 %713  ;;  %v712_v9 = vpop.permute.xlu0 %711 }
 0x256   :  { %v730_v47 = vadd.f32 %v714_v4, %v698_v36  ;;  %v729_v24 = vadd.f32 %v712_v9, %v697_v63 }
 0x259   :  { %v746_v55 = vpop.permute.xlu1 %745  ;;  %v744_v18 = vpop.permute.xlu0 %743 }
 0x25a   :  { %v762_v62 = vadd.f32 %v746_v55, %v730_v47  ;;  %v761_v8 = vadd.f32 %v744_v18, %v729_v24 }
 0x25d   :  { %v778_v23 = vpop.permute.xlu1 %777  ;;  %v776_v59 = vpop.permute.xlu0 %775 }
 0x25e   :  { %v794_v6 = vadd.f32 %v778_v23, %v762_v62  ;;  %v793_v7 = vadd.f32 %v776_v59, %v761_v8  ;;  %v1042_v8 = vld [vmem:[%s1813_s8] ss:$0 sm:$0xff] }
 0x261   :  { %v810_v41 = vpop.permute.xlu1 %809  ;;  %v808_v61 = vpop.permute.xlu0 %807 }
 0x262   :  { %v826_v60 = vadd.f32 %v810_v41, %v794_v6  ;;  %v825_v2 = vadd.f32 %v808_v61, %v793_v7  ;;  %v1041_v61 = vld [vmem:[%s1812_s7] ss:$0 sm:$0xff] }
 0x265   :  { %v842_v25 = vpop.permute.xlu1 %841  ;;  %v840_v26 = vpop.permute.xlu0 %839 }
 0x266   :  { %v858_v5 = vadd.f32 %v842_v25, %v826_v60  ;;  %v857_v17 = vadd.f32 %v840_v26, %v825_v2 }
 0x269   :  { %v874_v1 = vpop.permute.xlu1 %873  ;;  %v872_v12 = vpop.permute.xlu0 %871 }
 0x26a   :  { %v890_v16 = vadd.f32 %v874_v1, %v858_v5  ;;  %v889_v29 = vadd.f32 %v872_v12, %v857_v17 }
 0x26c   :  { %v913_v30 = vsel %vm891_vm7, %v890_v16, 0.0  ;;  %v910_v31 = vsel %vm891_vm7, %v889_v29, 0.0 }
 0x26d   :  { %914 = vadd.xlane.f32.xlu0 %v913_v30  ;;  %911 = vadd.xlane.f32.xlu1 %v910_v31 }
 0x2a3   :  { %v894_v11 = vpop.xlane.xlu0 %893 }
 0x2a4   :  { %v917_v22 = vmul.f32 0.125, %v894_v11 }
 0x2a6   :  { %v925_v28 = vsub.f32 %v1688_v27, %v917_v22 }
 0x2a8   :  { %v897_v21 = vpop.xlane.xlu1 %896  ;;  %v933_v33 = vmul.f32 %v925_v28, %v925_v28 }
 0x2a9   :  { %v918_v32 = vmul.f32 0.125, %v897_v21 }
 0x2aa   :  { %v941_v39 = vsel %vm891_vm7, %v933_v33, 0.0 }
 0x2ab   :  { %v926_v37 = vsub.f32 %v1692_v38, %v918_v32  ;;  %942 = vadd.xlane.f32.xlu1 %v941_v39 }
 0x2ad   :  { %v934_v40 = vmul.f32 %v926_v37, %v926_v37 }
 0x2af   :  { %v944_v45 = vsel %vm891_vm7, %v934_v40, 0.0 }
 0x2b0   :  { %945 = vadd.xlane.f32.xlu0 %v944_v45 }
 0x2ca   :  { %v900_v43 = vpop.xlane.xlu0 %899 }
 0x2cb   :  { %v919_v48 = vmul.f32 0.125, %v900_v43 }
 0x2cd   :  { %v1728_v49 = vsub.f32 %v1703_v35, %v919_v48 }
 0x2ce   :  { %v906_v50 = vpop.xlane.xlu1 %905  ;;  %v903_v51 = vpop.xlane.xlu0 %902 }
 0x2cf   :  { %v921_v27 = vmul.f32 0.125, %v906_v50  ;;  %v920_v52 = vmul.f32 0.125, %v903_v51  ;;  %v935_v53 = vmul.f32 %v1728_v49, %v1728_v49 }
 0x2d1   :  { %v1733_v54 = vsub.f32 %v1709_v42, %v921_v27  ;;  %v1736_v38 = vsub.f32 %v1705_v34, %v920_v52  ;;  %v947_v56 = vsel %vm891_vm7, %v935_v53, 0.0 }
 0x2d2   :  { %948 = vadd.xlane.f32.xlu1 %v947_v56  ;;  %v909_v58 = vpop.xlane.xlu0 %908 }
 0x2d3   :  { %v922_v0 = vmul.f32 0.125, %v909_v58  ;;  %v937_v35 = vmul.f32 %v1733_v54, %v1733_v54  ;;  %v936_v3 = vmul.f32 %v1736_v38, %v1736_v38 }
 0x2d5   :  { %v1744_v4 = vsub.f32 %v1711_v44, %v922_v0  ;;  %v953_v42 = vsel %vm891_vm7, %v937_v35, 0.0  ;;  %v950_v9 = vsel %vm891_vm7, %v936_v3, 0.0 }
 0x2d6   :  { %954 = vadd.xlane.f32.xlu1 %v953_v42  ;;  %951 = vadd.xlane.f32.xlu0 %v950_v9 }
 0x2d7   :  { %v938_v34 = vmul.f32 %v1744_v4, %v1744_v4 }
 0x2d9   :  { %v956_v10 = vsel %vm891_vm7, %v938_v34, 0.0 }
 0x2da   :  { %957 = vadd.xlane.f32.xlu0 %v956_v10 }
 0x2fa   :  { %v912_v14 = vpop.xlane.xlu1 %911  ;;  %v915_v15 = vpop.xlane.xlu0 %914 }
 0x2fb   :  { %v923_v13 = vmul.f32 0.125, %v912_v14  ;;  %v924_v55 = vmul.f32 0.125, %v915_v15 }
 0x2fd   :  { %v1751_v18 = vsub.f32 %v889_v29, %v923_v13  ;;  %v1753_v44 = vsub.f32 %v890_v16, %v924_v55 }
 0x2ff   :  { %v939_v57 = vmul.f32 %v1751_v18, %v1751_v18  ;;  %v940_v46 = vmul.f32 %v1753_v44, %v1753_v44 }
 0x301   :  { %v959_v19 = vsel %vm891_vm7, %v939_v57, 0.0  ;;  %v962_v20 = vsel %vm891_vm7, %v940_v46, 0.0 }
 0x302   :  { %960 = vadd.xlane.f32.xlu1 %v959_v19  ;;  %963 = vadd.xlane.f32.xlu0 %v962_v20 }
 0x338   :  { %v943_v23 = vpop.xlane.xlu1 %942 }
 0x339   :  { %v965_v59 = vmul.f32 0.125, %v943_v23 }
 0x33b   :  { %v973_v36 = vadd.f32 1e-05, %v965_v59 }
 0x33d   :  { %1190 = vrsqrt.f32 %v973_v36  ;;  %v946_v63 = vpop.xlane.xlu0 %945 }
 0x33e   :  { %v966_v47 = vmul.f32 0.125, %v946_v63 }
 0x340   :  { %v974_v24 = vadd.f32 1e-05, %v966_v47 }
 0x342   :  { %1192 = vrsqrt.f32 %v974_v24 }
 0x347   :  { %v1191_v41 = vpop.eup %1190 }
 0x348   :  { %v989_v62 = vmul.f32 %v1191_v41, %v925_v28 }
 0x34a   :  { %v1004_v6 = vmul.f32 %v1041_v61, %v989_v62 }
 0x34c   :  { %v1193_v7 = vpop.eup %1192  ;;  %v1019_v25 = vadd.f32 %v1042_v8, %v1004_v6 }
 0x34d   :  { %v990_v26 = vmul.f32 %v1193_v7, %v926_v37 }
 0x34e   :  { %1027 = vst.msk [vmem:[%s1814_s9] sm:$0xff] %vm891_vm7, %v1019_v25 }
 0x34f   :  { %v1005_v60 = vmul.f32 %v1041_v61, %v990_v26 }
 0x351   :  { %v1020_v2 = vadd.f32 %v1042_v8, %v1005_v60 }
 0x353   :  { %1028 = vst.msk [vmem:[%s1814_s9 + $0x8] sm:$0xff] %vm891_vm7, %v1020_v2 }
 0x35f   :  { %v949_v5 = vpop.xlane.xlu1 %948 }
 0x360   :  { %v967_v17 = vmul.f32 0.125, %v949_v5 }
 0x362   :  { %v975_v1 = vadd.f32 1e-05, %v967_v17 }
 0x363   :  { %v955_v12 = vpop.xlane.xlu1 %954  ;;  %v952_v16 = vpop.xlane.xlu0 %951 }
 0x364   :  { %1194 = vrsqrt.f32 %v975_v1  ;;  %v969_v29 = vmul.f32 0.125, %v955_v12  ;;  %v968_v30 = vmul.f32 0.125, %v952_v16 }
 0x366   :  { %v977_v31 = vadd.f32 1e-05, %v969_v29  ;;  %v976_v11 = vadd.f32 1e-05, %v968_v30 }
 0x367   :  { %v958_v22 = vpop.xlane.xlu0 %957 }
 0x368   :  { %1196 = vrsqrt.f32 %v977_v31  ;;  %v970_v28 = vmul.f32 0.125, %v958_v22 }
 0x369   :  { %1198 = vrsqrt.f32 %v976_v11 }
 0x36a   :  { %v978_v21 = vadd.f32 1e-05, %v970_v28 }
 0x36c   :  { %1200 = vrsqrt.f32 %v978_v21 }
 0x36e   :  { %v1195_v33 = vpop.eup %1194 }
 0x36f   :  { %v991_v32 = vmul.f32 %v1195_v33, %v1728_v49 }
 0x371   :  { %v1006_v39 = vmul.f32 %v1041_v61, %v991_v32 }
 0x372   :  { %v1197_v37 = vpop.eup %1196 }
 0x373   :  { %v1199_v40 = vpop.eup %1198  ;;  %v1021_v45 = vadd.f32 %v1042_v8, %v1006_v39  ;;  %v993_v43 = vmul.f32 %v1197_v37, %v1733_v54 }
 0x374   :  { %v992_v48 = vmul.f32 %v1199_v40, %v1736_v38 }
 0x375   :  { %1029 = vst.msk [vmem:[%s1814_s9 + $0x10] sm:$0xff] %vm891_vm7, %v1021_v45  ;;  %v1008_v50 = vmul.f32 %v1041_v61, %v993_v43 }
 0x376   :  { %v1201_v51 = vpop.eup %1200  ;;  %v1007_v27 = vmul.f32 %v1041_v61, %v992_v48 }
 0x377   :  { %v1023_v52 = vadd.f32 %v1042_v8, %v1008_v50  ;;  %v994_v53 = vmul.f32 %v1201_v51, %v1744_v4 }
 0x378   :  { %v1022_v49 = vadd.f32 %v1042_v8, %v1007_v27 }
 0x379   :  { %1031 = vst.msk [vmem:[%s1814_s9 + $0x20] sm:$0xff] %vm891_vm7, %v1023_v52  ;;  %v1009_v54 = vmul.f32 %v1041_v61, %v994_v53 }
 0x37a   :  { %1030 = vst.msk [vmem:[%s1814_s9 + $0x18] sm:$0xff] %vm891_vm7, %v1022_v49 }
 0x37b   :  { %v1024_v38 = vadd.f32 %v1042_v8, %v1009_v54 }
 0x37d   :  { %1032 = vst.msk [vmem:[%s1814_s9 + $0x28] sm:$0xff] %vm891_vm7, %v1024_v38 }
 0x38f   :  { %v961_v56 = vpop.xlane.xlu1 %960  ;;  %v964_v58 = vpop.xlane.xlu0 %963 }
 0x390   :  { %v971_v0 = vmul.f32 0.125, %v961_v56  ;;  %v972_v35 = vmul.f32 0.125, %v964_v58 }
 0x392   :  { %v979_v3 = vadd.f32 1e-05, %v971_v0  ;;  %v980_v4 = vadd.f32 1e-05, %v972_v35 }
 0x394   :  { %1202 = vrsqrt.f32 %v979_v3 }
 0x395   :  { %1204 = vrsqrt.f32 %v980_v4 }
 0x39e   :  { %v1203_v42 = vpop.eup %1202 }
 0x39f   :  { %v1205_v9 = vpop.eup %1204  ;;  %v995_v34 = vmul.f32 %v1203_v42, %v1751_v18 }
 0x3a0   :  { %v996_v10 = vmul.f32 %v1205_v9, %v1753_v44 }
 0x3a1   :  { %v1010_v14 = vmul.f32 %v1041_v61, %v995_v34 }
 0x3a2   :  { %v1011_v15 = vmul.f32 %v1041_v61, %v996_v10 }
 0x3a3   :  { %v1025_v13 = vadd.f32 %v1042_v8, %v1010_v14 }
 0x3a4   :  { %v1026_v55 = vadd.f32 %v1042_v8, %v1011_v15 }
 0x3a5   :  { %1033 = vst.msk [vmem:[%s1814_s9 + $0x30] sm:$0xff] %vm891_vm7, %v1025_v13 }
 0x3a6   :  { %1034 = vst.msk [vmem:[%s1814_s9 + $0x38] sm:$0xff] %vm891_vm7, %v1026_v55 }

// kernel: encoder_forward.25
= control target key start
LH: loop header
LB: loop body
LE: loop exit
PB: predicated region body
PF: predicated region fallthrough
CT: control target
= control target key end

     0   :  { %vm26_vm0 = vcmask 64512   ;;  %s533_s1 = inlined_call_operand.vmem [shape: f32[8,8], index: 1, kind: input, shape index: {}]   ;;  %s534_s0 = inlined_call_operand.vmem [shape: f32[64,8], index: 0, kind: input, shape index: {}]   ;;  %s535_s2 = inlined_call_operand.vmem [shape: f32[1,8], index: 2, kind: input, shape index: {}]   ;;  %s536_s3 = inlined_call_operand.vmem [shape: f32[1,8], index: 3, kind: input, shape index: {}]   ;;  %s537_s4 = inlined_call_operand.vmem [shape: f32[64,8], index: 4, kind: output, shape index: {}]  }
   0x1   :  { %v25_v0 = vld [vmem:[%s533_s1] sm:$0xff]  ;;  %v18_v3 = vld [vmem:[%s534_s0 + $0x8] sm:$0xff]  ;;  %v19_v5 = vld [vmem:[%s534_s0 + $0x10] sm:$0xff] }
   0x2   :  { %v17_v1 = vld [vmem:[%s534_s0] sm:$0xff]  ;;  %346 = vmatprep.subr.mxu0 %v25_v0  ;;  %360 = vmatprep.subr.mxu1 %v25_v0  ;;  %v22_v4 = vld [vmem:[%s534_s0 + $0x28] sm:$0xff]  ;;  %v23_v6 = vld [vmem:[%s534_s0 + $0x30] sm:$0xff] }
   0x3   :  { %v21_v2 = vld [vmem:[%s534_s0 + $0x20] sm:$0xff]  ;;  %347 = vmatpush3.msra.mxu0 %v25_v0  ;;  %361 = vmatpush3.msra.mxu1 %v25_v0  ;;  %v20_v7 = vld [vmem:[%s534_s0 + $0x18] sm:$0xff] }
   0x4   :  { %348 = vmatprep.mubr.msk.f32.mxu0 %vm26_vm0, %v17_v1  ;;  %354 = vmatprep.mubr.msk.f32.mxu1 %vm26_vm0, %v21_v2  ;;  %v24_v8 = vld [vmem:[%s534_s0 + $0x38] sm:$0xff] }
   0x5   :  { %349 = vmatmul.mubr.msk.f32.vlgmr.msra.gmra.mrb[0].mxu0 %vm26_vm0, %v18_v3  ;;  %355 = vmatmul.mubr.msk.f32.vlgmr.msra.gmra.mrb[0].mxu1 %vm26_vm0, %v22_v4 }
   0x6   :  { %351 = vmatprep.mubr.msk.f32.mxu0 %vm26_vm0, %v19_v5  ;;  %357 = vmatprep.mubr.msk.f32.mxu1 %vm26_vm0, %v23_v6 }
   0x9   :  { %352 = vmatmul.mubr.msk.f32.gmra.mrb[2].mxu0 %vm26_vm0, %v20_v7  ;;  %358 = vmatmul.mubr.msk.f32.gmra.mrb[2].mxu1 %vm26_vm0, %v24_v8 }
  0xd8   :  { %v350_v9 = vpop.f32.mrb[0].mxu0  ;;  %v356_v10 = vpop.f32.mrb[0].mxu1 }
  0xd9   :  { %v165_v11 = vmul.f32 0.2, %v350_v9  ;;  %v169_v12 = vmul.f32 0.2, %v356_v10  ;;  %v117_v13 = vpop.f32.mrb[1].mxu0  ;;  %v137_v14 = vpop.f32.mrb[1].mxu1 }
  0xda   :  { %v164_v15 = vmul.f32 0.2, %v117_v13  ;;  %vm156_vm1 = vcmp.ge.f32.partialorder %v117_v13, 0.0  ;;  %vm161_vm2 = vcmp.ge.f32.partialorder %v356_v10, 0.0  ;;  %vm157_vm3 = vcmp.ge.f32.partialorder %v350_v9, 0.0 }
  0xdb   :  { %v177_v17 = vsel %vm161_vm2, %v356_v10, %v169_v12  ;;  %v173_v18 = vsel %vm157_vm3, %v350_v9, %v165_v11  ;;  %v168_v24 = vmul.f32 0.2, %v137_v14  ;;  %vm160_vm5 = vcmp.ge.f32.partialorder %v137_v14, 0.0 }
  0xdc   :  { %v353_v16 = vpop.f32.mrb[2].mxu0  ;;  %v359_v19 = vpop.f32.mrb[2].mxu1  ;;  %v195_v21 = vsel %vm26_vm0, %v177_v17, 0.0  ;;  %v183_v22 = vsel %vm26_vm0, %v173_v18, 0.0  ;;  %v172_v26 = vsel %vm156_vm1, %v117_v13, %v164_v15 }
  0xdd   :  { %vm159_vm4 = vcmp.ge.f32.partialorder %v353_v16, 0.0  ;;  %v167_v20 = vmul.f32 0.2, %v353_v16  ;;  %v127_v23 = vpop.f32.mrb[3].mxu0  ;;  %196 = vadd.xlane.f32.xlu1 %v195_v21  ;;  %184 = vadd.xlane.f32.xlu0 %v183_v22  ;;  %v147_v27 = vpop.f32.mrb[3].mxu1  ;;  %v180_v32 = vsel %vm26_vm0, %v172_v26, 0.0  ;;  %v176_v33 = vsel %vm160_vm5, %v137_v14, %v168_v24 }
  0xde   :  { %v166_v25 = vmul.f32 0.2, %v127_v23  ;;  %vm158_vm6 = vcmp.ge.f32.partialorder %v127_v23, 0.0  ;;  %v171_v30 = vmul.f32 0.2, %v359_v19  ;;  %vm163_vm7 = vcmp.ge.f32.partialorder %v359_v19, 0.0 }
  0xdf   :  { %v175_v28 = vsel %vm159_vm4, %v353_v16, %v167_v20  ;;  %v170_v31 = vmul.f32 0.2, %v147_v27  ;;  %vm162_vm8 = vcmp.ge.f32.partialorder %v147_v27, 0.0  ;;  %v192_v37 = vsel %vm26_vm0, %v176_v33, 0.0 }
  0xe0   :  { %v189_v29 = vsel %vm26_vm0, %v175_v28, 0.0  ;;  %v174_v34 = vsel %vm158_vm6, %v127_v23, %v166_v25  ;;  %v179_v36 = vsel %vm163_vm7, %v359_v19, %v171_v30 }
  0xe1   :  { %181 = vadd.xlane.f32.xlu0 %v180_v32  ;;  %190 = vadd.xlane.f32.xlu1 %v189_v29  ;;  %v178_v35 = vsel %vm162_vm8, %v147_v27, %v170_v31  ;;  %v186_v38 = vsel %vm26_vm0, %v174_v34, 0.0  ;;  %v201_v40 = vsel %vm26_vm0, %v179_v36, 0.0 }
  0xe2   :  { %v198_v39 = vsel %vm26_vm0, %v178_v35, 0.0 }
  0xe5   :  { %193 = vadd.xlane.f32.xlu0 %v192_v37  ;;  %187 = vadd.xlane.f32.xlu1 %v186_v38  ;;  %v335_v37 = vld [vmem:[%s535_s2] ss:$0 sm:$0xff] }
  0xe9   :  { %199 = vadd.xlane.f32.xlu0 %v198_v39  ;;  %202 = vadd.xlane.f32.xlu1 %v201_v40 }
 0x16a   :  { %v197_v41 = vpop.xlane.xlu1 %196  ;;  %v185_v42 = vpop.xlane.xlu0 %184 }
 0x16b   :  { %v210_v43 = vmul.f32 0.125, %v197_v41  ;;  %v206_v44 = vmul.f32 0.125, %v185_v42  ;;  %v336_v42 = vld [vmem:[%s536_s3] ss:$0 sm:$0xff] }
 0x16d   :  { %v447_v45 = vsub.f32 %v177_v17, %v210_v43  ;;  %v449_v46 = vsub.f32 %v173_v18, %v206_v44 }
 0x16e   :  { %v182_v47 = vpop.xlane.xlu0 %181  ;;  %v191_v48 = vpop.xlane.xlu1 %190 }
 0x16f   :  { %v205_v49 = vmul.f32 0.125, %v182_v47  ;;  %v208_v50 = vmul.f32 0.125, %v191_v48  ;;  %v222_v51 = vmul.f32 %v449_v46, %v449_v46  ;;  %v226_v55 = vmul.f32 %v447_v45, %v447_v45 }
 0x171   :  { %v453_v52 = vsub.f32 %v172_v26, %v205_v49  ;;  %v455_v53 = vsub.f32 %v175_v28, %v208_v50  ;;  %v232_v54 = vsel %vm26_vm0, %v222_v51, 0.0  ;;  %v244_v1 = vsel %vm26_vm0, %v226_v55, 0.0 }
 0x172   :  { %v194_v56 = vpop.xlane.xlu0 %193  ;;  %233 = vadd.xlane.f32.xlu1 %v232_v54  ;;  %v188_v57 = vpop.xlane.xlu1 %187 }
 0x173   :  { %v209_v58 = vmul.f32 0.125, %v194_v56  ;;  %v207_v59 = vmul.f32 0.125, %v188_v57  ;;  %v221_v60 = vmul.f32 %v453_v52, %v453_v52  ;;  %v224_v61 = vmul.f32 %v455_v53, %v455_v53 }
 0x175   :  { %v464_v62 = vsub.f32 %v176_v33, %v209_v58  ;;  %v466_v63 = vsub.f32 %v174_v34, %v207_v59  ;;  %v229_v0 = vsel %vm26_vm0, %v221_v60, 0.0  ;;  %v238_v7 = vsel %vm26_vm0, %v224_v61, 0.0 }
 0x176   :  { %230 = vadd.xlane.f32.xlu0 %v229_v0  ;;  %v200_v2 = vpop.xlane.xlu0 %199  ;;  %245 = vadd.xlane.f32.xlu1 %v244_v1  ;;  %v203_v3 = vpop.xlane.xlu1 %202 }
 0x177   :  { %v211_v4 = vmul.f32 0.125, %v200_v2  ;;  %v212_v5 = vmul.f32 0.125, %v203_v3  ;;  %v225_v6 = vmul.f32 %v464_v62, %v464_v62  ;;  %v223_v11 = vmul.f32 %v466_v63, %v466_v63 }
 0x179   :  { %v473_v8 = vsub.f32 %v178_v35, %v211_v4  ;;  %v475_v9 = vsub.f32 %v179_v36, %v212_v5  ;;  %v241_v10 = vsel %vm26_vm0, %v225_v6, 0.0  ;;  %v235_v13 = vsel %vm26_vm0, %v223_v11, 0.0 }
 0x17a   :  { %242 = vadd.xlane.f32.xlu0 %v241_v10  ;;  %239 = vadd.xlane.f32.xlu1 %v238_v7 }
 0x17b   :  { %v228_v12 = vmul.f32 %v475_v9, %v475_v9  ;;  %v227_v15 = vmul.f32 %v473_v8, %v473_v8 }
 0x17d   :  { %v250_v14 = vsel %vm26_vm0, %v228_v12, 0.0  ;;  %v247_v16 = vsel %vm26_vm0, %v227_v15, 0.0 }
 0x17e   :  { %236 = vadd.xlane.f32.xlu0 %v235_v13  ;;  %251 = vadd.xlane.f32.xlu1 %v250_v14 }
 0x182   :  { %248 = vadd.xlane.f32.xlu0 %v247_v16 }
 0x1ff   :  { %v234_v17 = vpop.xlane.xlu1 %233 }
 0x200   :  { %v254_v18 = vmul.f32 0.125, %v234_v17 }
 0x202   :  { %v262_v19 = vadd.f32 1e-05, %v254_v18 }
 0x203   :  { %v231_v20 = vpop.xlane.xlu0 %230  ;;  %v246_v21 = vpop.xlane.xlu1 %245 }
 0x204   :  { %362 = vrsqrt.f32 %v262_v19  ;;  %v253_v22 = vmul.f32 0.125, %v231_v20  ;;  %v258_v23 = vmul.f32 0.125, %v246_v21 }
 0x206   :  { %v261_v24 = vadd.f32 1e-05, %v253_v22  ;;  %v266_v25 = vadd.f32 1e-05, %v258_v23 }
 0x207   :  { %v243_v26 = vpop.xlane.xlu0 %242  ;;  %v240_v27 = vpop.xlane.xlu1 %239 }
 0x208   :  { %364 = vrsqrt.f32 %v261_v24  ;;  %v257_v28 = vmul.f32 0.125, %v243_v26  ;;  %v256_v29 = vmul.f32 0.125, %v240_v27 }
 0x209   :  { %366 = vrsqrt.f32 %v266_v25 }
 0x20a   :  { %v265_v30 = vadd.f32 1e-05, %v257_v28  ;;  %v264_v31 = vadd.f32 1e-05, %v256_v29 }
 0x20b   :  { %v237_v32 = vpop.xlane.xlu0 %236  ;;  %v252_v33 = vpop.xlane.xlu1 %251 }
 0x20c   :  { %368 = vrsqrt.f32 %v265_v30  ;;  %v255_v34 = vmul.f32 0.125, %v237_v32  ;;  %v260_v35 = vmul.f32 0.125, %v252_v33 }
 0x20d   :  { %370 = vrsqrt.f32 %v264_v31 }
 0x20e   :  { %v363_v36 = vpop.eup %362  ;;  %v263_v38 = vadd.f32 1e-05, %v255_v34  ;;  %v268_v39 = vadd.f32 1e-05, %v260_v35 }
 0x20f   :  { %v278_v40 = vmul.f32 %v363_v36, %v449_v46  ;;  %v249_v41 = vpop.xlane.xlu0 %248 }
 0x210   :  { %372 = vrsqrt.f32 %v263_v38  ;;  %v259_v43 = vmul.f32 0.125, %v249_v41 }
 0x211   :  { %v293_v44 = vmul.f32 %v335_v37, %v278_v40  ;;  %374 = vrsqrt.f32 %v268_v39 }
 0x212   :  { %v365_v47 = vpop.eup %364  ;;  %v267_v48 = vadd.f32 1e-05, %v259_v43 }
 0x213   :  { %v367_v49 = vpop.eup %366  ;;  %v308_v50 = vadd.f32 %v336_v42, %v293_v44  ;;  %v277_v51 = vmul.f32 %v365_v47, %v453_v52 }
 0x214   :  { %v282_v54 = vmul.f32 %v367_v49, %v447_v45  ;;  %376 = vrsqrt.f32 %v267_v48 }
 0x215   :  { %316 = vst.msk [vmem:[%s537_s4 + $0x8] sm:$0xff] %vm26_vm0, %v308_v50  ;;  %v292_v46 = vmul.f32 %v335_v37, %v277_v51 }
 0x216   :  { %v369_v55 = vpop.eup %368  ;;  %v297_v56 = vmul.f32 %v335_v37, %v282_v54 }
 0x217   :  { %v371_v57 = vpop.eup %370  ;;  %v307_v58 = vadd.f32 %v336_v42, %v292_v46  ;;  %v281_v59 = vmul.f32 %v369_v55, %v464_v62 }
 0x218   :  { %v312_v60 = vadd.f32 %v336_v42, %v297_v56  ;;  %v280_v61 = vmul.f32 %v371_v57, %v455_v53 }
 0x219   :  { %315 = vst.msk [vmem:[%s537_s4] sm:$0xff] %vm26_vm0, %v307_v58  ;;  %v296_v45 = vmul.f32 %v335_v37, %v281_v59 }
 0x21a   :  { %v373_v52 = vpop.eup %372  ;;  %320 = vst.msk [vmem:[%s537_s4 + $0x28] sm:$0xff] %vm26_vm0, %v312_v60  ;;  %v295_v0 = vmul.f32 %v335_v37, %v280_v61 }
 0x21b   :  { %v375_v1 = vpop.eup %374  ;;  %v311_v2 = vadd.f32 %v336_v42, %v296_v45  ;;  %v279_v62 = vmul.f32 %v373_v52, %v466_v63 }
 0x21c   :  { %v310_v3 = vadd.f32 %v336_v42, %v295_v0  ;;  %v284_v53 = vmul.f32 %v375_v1, %v475_v9 }
 0x21d   :  { %319 = vst.msk [vmem:[%s537_s4 + $0x20] sm:$0xff] %vm26_vm0, %v311_v2  ;;  %v294_v4 = vmul.f32 %v335_v37, %v279_v62 }
 0x21e   :  { %v377_v5 = vpop.eup %376  ;;  %318 = vst.msk [vmem:[%s537_s4 + $0x18] sm:$0xff] %vm26_vm0, %v310_v3  ;;  %v299_v6 = vmul.f32 %v335_v37, %v284_v53 }
 0x21f   :  { %v309_v7 = vadd.f32 %v336_v42, %v294_v4  ;;  %v283_v10 = vmul.f32 %v377_v5, %v473_v8 }
 0x220   :  { %v314_v63 = vadd.f32 %v336_v42, %v299_v6 }
 0x221   :  { %317 = vst.msk [vmem:[%s537_s4 + $0x10] sm:$0xff] %vm26_vm0, %v309_v7  ;;  %v298_v9 = vmul.f32 %v335_v37, %v283_v10 }
 0x222   :  { %322 = vst.msk [vmem:[%s537_s4 + $0x38] sm:$0xff] %vm26_vm0, %v314_v63 }
 0x223   :  { %v313_v11 = vadd.f32 %v336_v42, %v298_v9 }
 0x225   :  { %321 = vst.msk [vmem:[%s537_s4 + $0x30] sm:$0xff] %vm26_vm0, %v313_v11 }

// kernel: encoder_forward.26
= control target key start
LH: loop header
LB: loop body
LE: loop exit
PB: predicated region body
PF: predicated region fallthrough
CT: control target
= control target key end

     0   :  { %vm23_vm0 = vcmask 64512   ;;  %vm179_vm3 = vcmask 130048   ;;  %s515_s1 = inlined_call_operand.vmem [shape: f32[8,16], index: 1, kind: input, shape index: {}]   ;;  %s516_s0 = inlined_call_operand.vmem [shape: f32[64,8], index: 0, kind: input, shape index: {}]   ;;  %s517_s2 = inlined_call_operand.vmem [shape: f32[16,8], index: 2, kind: input, shape index: {}]   ;;  %s518_s3 = inlined_call_operand.vmem [shape: f32[64,8], index: 3, kind: output, shape index: {}]  }
   0x1   :  { %v22_v0 = vld [vmem:[%s515_s1] sm:$0xff]  ;;  %v15_v2 = vld [vmem:[%s516_s0 + $0x8] sm:$0xff]  ;;  %v16_v3 = vld [vmem:[%s516_s0 + $0x10] sm:$0xff] }
   0x2   :  { %v14_v1 = vld [vmem:[%s516_s0] sm:$0xff]  ;;  %380 = vmatprep.subr.mxu0 %v22_v0  ;;  %v17_v4 = vld [vmem:[%s516_s0 + $0x18] sm:$0xff]  ;;  %v19_v6 = vld [vmem:[%s516_s0 + $0x28] sm:$0xff] }
   0x3   :  { %382 = vmatprep.mubr.msk.f32.mxu0 %vm23_vm0, %v14_v1  ;;  %381 = vmatpush3.msra.mxu0 %v22_v0  ;;  %v18_v5 = vld [vmem:[%s516_s0 + $0x20] sm:$0xff]  ;;  %v20_v7 = vld [vmem:[%s516_s0 + $0x30] sm:$0xff]  ;;  %v21_v8 = vld [vmem:[%s516_s0 + $0x38] sm:$0xff] }
   0x4   :  { %383 = vmatmul.mubr.msk.f32.vlgmr.msra.gmra.mrb[0].mxu0 %vm23_vm0, %v15_v2  ;;  %v177_v9 = vld [vmem:[%s517_s2] sm:$0xff]  ;;  %v178_v10 = vld [vmem:[%s517_s2 + $0x8] sm:$0xff] }
   0x5   :  { %385 = vmatprep.mubr.msk.f32.mxu0 %vm23_vm0, %v16_v3  ;;  %v410_v11 = vpack.c.bf16 %v178_v10, %v177_v9 }
   0x7   :  { %411 = vmatprep.subr.bf16.mxu1 %v410_v11 }
   0x8   :  { %386 = vmatmul.mubr.msk.f32.gmra.mrb[2].mxu0 %vm23_vm0, %v17_v4  ;;  %413 = vmatpush3.bf16.msra.mxu1 %v410_v11 }
   0x9   :  { %388 = vmatprep.mubr.msk.f32.mxu0 %vm23_vm0, %v18_v5 }
   0xc   :  { %389 = vmatmul.mubr.msk.f32.gmra.mrb[4].mxu0 %vm23_vm0, %v19_v6 }
   0xd   :  { %391 = vmatprep.mubr.msk.f32.mxu0 %vm23_vm0, %v20_v7 }
  0x10   :  { %392 = vmatmul.mubr.msk.f32.gmra.mrb[6].mxu0 %vm23_vm0, %v21_v8 }
  0xd7   :  { %v384_v12 = vpop.f32.mrb[0].mxu0 }
  0xd8   :  { %v162_v13 = vmul.f32 0.2, %v384_v12  ;;  %v114_v14 = vpop.f32.mrb[1].mxu0  ;;  %vm154_vm1 = vcmp.ge.f32.partialorder %v384_v12, 0.0 }
  0xd9   :  { %v161_v15 = vmul.f32 0.2, %v114_v14  ;;  %vm153_vm2 = vcmp.ge.f32.partialorder %v114_v14, 0.0 }
  0xda   :  { %v170_v20 = vsel %vm154_vm1, %v384_v12, %v162_v13 }
  0xdb   :  { %v387_v16 = vpop.f32.mrb[2].mxu0  ;;  %v169_v17 = vsel %vm153_vm2, %v114_v14, %v161_v15 }
  0xdc   :  { %v164_v18 = vmul.f32 0.2, %v387_v16  ;;  %v124_v19 = vpop.f32.mrb[3].mxu0  ;;  %398 = vmatprep.mubr.msk.f32.mxu1 %vm179_vm3, %v169_v17  ;;  %vm156_vm4 = vcmp.ge.f32.partialorder %v387_v16, 0.0 }
  0xdd   :  { %vm155_vm5 = vcmp.ge.f32.partialorder %v124_v19, 0.0  ;;  %v163_v21 = vmul.f32 0.2, %v124_v19  ;;  %399 = vmatmul.mubr.msk.f32.vlgmr.msra.gmra.mrb[0].mxu1 %vm179_vm3, %v170_v20 }
  0xde   :  { %v172_v26 = vsel %vm156_vm4, %v387_v16, %v164_v18 }
  0xdf   :  { %v390_v22 = vpop.f32.mrb[4].mxu0  ;;  %v171_v23 = vsel %vm155_vm5, %v124_v19, %v163_v21 }
  0xe0   :  { %v166_v24 = vmul.f32 0.2, %v390_v22  ;;  %v134_v25 = vpop.f32.mrb[5].mxu0  ;;  %401 = vmatprep.mubr.msk.f32.mxu1 %vm179_vm3, %v171_v23  ;;  %vm158_vm6 = vcmp.ge.f32.partialorder %v390_v22, 0.0 }
  0xe1   :  { %vm157_vm7 = vcmp.ge.f32.partialorder %v134_v25, 0.0  ;;  %v165_v27 = vmul.f32 0.2, %v134_v25  ;;  %402 = vmatmul.mubr.msk.f32.gmra.mrb[2].mxu1 %vm179_vm3, %v172_v26 }
  0xe2   :  { %v174_v32 = vsel %vm158_vm6, %v390_v22, %v166_v24 }
  0xe3   :  { %v393_v28 = vpop.f32.mrb[6].mxu0  ;;  %v173_v29 = vsel %vm157_vm7, %v134_v25, %v165_v27 }
  0xe4   :  { %v168_v30 = vmul.f32 0.2, %v393_v28  ;;  %v144_v31 = vpop.f32.mrb[7].mxu0  ;;  %404 = vmatprep.mubr.msk.f32.mxu1 %vm179_vm3, %v173_v29  ;;  %vm160_vm8 = vcmp.ge.f32.partialorder %v393_v28, 0.0 }
  0xe5   :  { %vm159_vm9 = vcmp.ge.f32.partialorder %v144_v31, 0.0  ;;  %v167_v33 = vmul.f32 0.2, %v144_v31  ;;  %405 = vmatmul.mubr.msk.f32.gmra.mrb[4].mxu1 %vm179_vm3, %v174_v32 }
  0xe6   :  { %v176_v35 = vsel %vm160_vm8, %v393_v28, %v168_v30 }
  0xe7   :  { %v175_v34 = vsel %vm159_vm9, %v144_v31, %v167_v33 }
  0xe8   :  { %407 = vmatprep.mubr.msk.f32.mxu1 %vm179_vm3, %v175_v34 }
  0xe9   :  { %408 = vmatmul.mubr.msk.f32.gmra.mrb[6].mxu1 %vm179_vm3, %v176_v35 }
 0x1b0   :  { %v400_v36 = vpop.f32.mrb[0].mxu1 }
 0x1b1   :  { %vm310_vm10 = vcmp.ge.f32.partialorder %v400_v36, 0.0  ;;  %v318_v37 = vmul.f32 0.2, %v400_v36  ;;  %v270_v38 = vpop.f32.mrb[1].mxu1 }
 0x1b2   :  { %vm309_vm11 = vcmp.ge.f32.partialorder %v270_v38, 0.0  ;;  %v317_v39 = vmul.f32 0.2, %v270_v38 }
 0x1b3   :  { %v326_v40 = vsel %vm310_vm10, %v400_v36, %v318_v37 }
 0x1b4   :  { %334 = vst.msk [vmem:[%s518_s3 + $0x8] sm:$0xff] %vm23_vm0, %v326_v40  ;;  %v325_v41 = vsel %vm309_vm11, %v270_v38, %v317_v39  ;;  %v403_v42 = vpop.f32.mrb[2].mxu1 }
 0x1b5   :  { %333 = vst.msk [vmem:[%s518_s3] sm:$0xff] %vm23_vm0, %v325_v41  ;;  %vm312_vm12 = vcmp.ge.f32.partialorder %v403_v42, 0.0  ;;  %v320_v43 = vmul.f32 0.2, %v403_v42  ;;  %v280_v44 = vpop.f32.mrb[3].mxu1 }
 0x1b6   :  { %vm311_vm13 = vcmp.ge.f32.partialorder %v280_v44, 0.0  ;;  %v319_v45 = vmul.f32 0.2, %v280_v44 }
 0x1b7   :  { %v328_v46 = vsel %vm312_vm12, %v403_v42, %v320_v43 }
 0x1b8   :  { %336 = vst.msk [vmem:[%s518_s3 + $0x18] sm:$0xff] %vm23_vm0, %v328_v46  ;;  %v327_v47 = vsel %vm311_vm13, %v280_v44, %v319_v45  ;;  %v406_v48 = vpop.f32.mrb[4].mxu1 }
 0x1b9   :  { %335 = vst.msk [vmem:[%s518_s3 + $0x10] sm:$0xff] %vm23_vm0, %v327_v47  ;;  %vm314_vm14 = vcmp.ge.f32.partialorder %v406_v48, 0.0  ;;  %v322_v49 = vmul.f32 0.2, %v406_v48  ;;  %v290_v50 = vpop.f32.mrb[5].mxu1 }
 0x1ba   :  { %vm313_vm15 = vcmp.ge.f32.partialorder %v290_v50, 0.0  ;;  %v321_v51 = vmul.f32 0.2, %v290_v50 }
 0x1bb   :  { %v330_v52 = vsel %vm314_vm14, %v406_v48, %v322_v49 }
 0x1bc   :  { %338 = vst.msk [vmem:[%s518_s3 + $0x28] sm:$0xff] %vm23_vm0, %v330_v52  ;;  %v329_v53 = vsel %vm313_vm15, %v290_v50, %v321_v51  ;;  %v409_v54 = vpop.f32.mrb[6].mxu1 }
 0x1bd   :  { %337 = vst.msk [vmem:[%s518_s3 + $0x20] sm:$0xff] %vm23_vm0, %v329_v53  ;;  %vm316_vm1 = vcmp.ge.f32.partialorder %v409_v54, 0.0  ;;  %v324_v55 = vmul.f32 0.2, %v409_v54  ;;  %v300_v56 = vpop.f32.mrb[7].mxu1 }
 0x1be   :  { %vm315_vm2 = vcmp.ge.f32.partialorder %v300_v56, 0.0  ;;  %v323_v57 = vmul.f32 0.2, %v300_v56 }
 0x1bf   :  { %v332_v58 = vsel %vm316_vm1, %v409_v54, %v324_v55 }
 0x1c0   :  { %340 = vst.msk [vmem:[%s518_s3 + $0x38] sm:$0xff] %vm23_vm0, %v332_v58  ;;  %v331_v59 = vsel %vm315_vm2, %v300_v56, %v323_v57 }
 0x1c1   :  { %339 = vst.msk [vmem:[%s518_s3 + $0x30] sm:$0xff] %vm23_vm0, %v331_v59 }

// kernel: encoder_forward.28
= control target key start
LH: loop header
LB: loop body
LE: loop exit
PB: predicated region body
PF: predicated region fallthrough
CT: control target
= control target key end

     0   :  { %vm30_vm0 = vcmask 64512   ;;  %vm184_vm1 = vcmask 785408   ;;  %s321_s1 = inlined_call_operand.vmem [shape: f32[8,96], index: 1, kind: input, shape index: {}]   ;;  %s322_s0 = inlined_call_operand.vmem [shape: f32[64,8], index: 0, kind: input, shape index: {}]   ;;  %s323_s2 = inlined_call_operand.vmem [shape: f32[1,96], index: 2, kind: input, shape index: {}]   ;;  %s324_s3 = inlined_call_operand.vmem [shape: f32[64,96], index: 3, kind: output, shape index: {}]  }
   0x1   :  { %v22_v0 = vld [vmem:[%s321_s1] sm:$0xff]  ;;  %v15_v3 = vld [vmem:[%s322_s0 + $0x8] sm:$0xff]  ;;  %v16_v5 = vld [vmem:[%s322_s0 + $0x10] sm:$0xff] }
   0x2   :  { %v14_v1 = vld [vmem:[%s322_s0] sm:$0xff]  ;;  %215 = vmatprep.subr.mxu0 %v22_v0  ;;  %229 = vmatprep.subr.mxu1 %v22_v0  ;;  %v19_v4 = vld [vmem:[%s322_s0 + $0x28] sm:$0xff]  ;;  %v20_v6 = vld [vmem:[%s322_s0 + $0x30] sm:$0xff] }
   0x3   :  { %v18_v2 = vld [vmem:[%s322_s0 + $0x20] sm:$0xff]  ;;  %216 = vmatpush3.msra.mxu0 %v22_v0  ;;  %230 = vmatpush3.msra.mxu1 %v22_v0  ;;  %v17_v7 = vld [vmem:[%s322_s0 + $0x18] sm:$0xff] }
   0x4   :  { %217 = vmatprep.mubr.msk.f32.mxu0 %vm30_vm0, %v14_v1  ;;  %223 = vmatprep.mubr.msk.f32.mxu1 %vm30_vm0, %v18_v2  ;;  %v21_v8 = vld [vmem:[%s322_s0 + $0x38] sm:$0xff]  ;;  %v197_v9 = vld [vmem:[%s323_s2] ss:$0 sm:$0xff] }
   0x5   :  { %218 = vmatmul.mubr.msk.f32.vlgmr.msra.gmra.mrb[0].mxu0 %vm30_vm0, %v15_v3  ;;  %224 = vmatmul.mubr.msk.f32.vlgmr.msra.gmra.mrb[0].mxu1 %vm30_vm0, %v19_v4 }
   0x6   :  { %220 = vmatprep.mubr.msk.f32.mxu0 %vm30_vm0, %v16_v5  ;;  %226 = vmatprep.mubr.msk.f32.mxu1 %vm30_vm0, %v20_v6 }
   0x9   :  { %221 = vmatmul.mubr.msk.f32.gmra.mrb[2].mxu0 %vm30_vm0, %v17_v7  ;;  %227 = vmatmul.mubr.msk.f32.gmra.mrb[2].mxu1 %vm30_vm0, %v21_v8 }
  0xd8   :  { %v219_v10 = vpop.f32.mrb[0].mxu0  ;;  %v225_v11 = vpop.f32.mrb[0].mxu1 }
  0xd9   :  { %v127_v12 = vadd.f32 %v219_v10, %v197_v9  ;;  %v147_v13 = vadd.f32 %v225_v11, %v197_v9  ;;  %v121_v14 = vpop.f32.mrb[1].mxu0  ;;  %v141_v15 = vpop.f32.mrb[1].mxu1 }
  0xda   :  { %v122_v16 = vadd.f32 %v197_v9, %v121_v14  ;;  %v142_v17 = vadd.f32 %v197_v9, %v141_v15 }
  0xdb   :  { %vm161_vm2 = vcmp.ge.f32.partialorder %v127_v12, 0.0  ;;  %v169_v18 = vmul.f32 4.0, %v127_v12  ;;  %vm165_vm3 = vcmp.ge.f32.partialorder %v147_v13, 0.0  ;;  %v173_v19 = vmul.f32 4.0, %v147_v13 }
  0xdc   :  { %vm160_vm4 = vcmp.ge.f32.partialorder %v122_v16, 0.0  ;;  %v168_v20 = vmul.f32 4.0, %v122_v16  ;;  %vm164_vm5 = vcmp.ge.f32.partialorder %v142_v17, 0.0  ;;  %v172_v21 = vmul.f32 4.0, %v142_v17  ;;  %v222_v22 = vpop.f32.mrb[2].mxu0  ;;  %v228_v23 = vpop.f32.mrb[2].mxu1 }
  0xdd   :  { %v177_v24 = vsel %vm161_vm2, %v127_v12, %v169_v18  ;;  %v181_v25 = vsel %vm165_vm3, %v147_v13, %v173_v19  ;;  %v137_v26 = vadd.f32 %v222_v22, %v197_v9  ;;  %v157_v27 = vadd.f32 %v228_v23, %v197_v9  ;;  %v131_v28 = vpop.f32.mrb[3].mxu0  ;;  %v151_v29 = vpop.f32.mrb[3].mxu1 }
  0xde   :  { %186 = vst.msk [vmem:[%s324_s3 + $0x8] sm:$0xff] %vm184_vm1, %v177_v24  ;;  %190 = vst.msk [vmem:[%s324_s3 + $0x28] sm:$0xff] %vm184_vm1, %v181_v25  ;;  %v176_v30 = vsel %vm160_vm4, %v122_v16, %v168_v20  ;;  %v180_v31 = vsel %vm164_vm5, %v142_v17, %v172_v21  ;;  %v132_v32 = vadd.f32 %v197_v9, %v131_v28 }
  0xdf   :  { %v152_v33 = vadd.f32 %v197_v9, %v151_v29  ;;  %185 = vst.msk [vmem:[%s324_s3] sm:$0xff] %vm184_vm1, %v176_v30  ;;  %189 = vst.msk [vmem:[%s324_s3 + $0x20] sm:$0xff] %vm184_vm1, %v180_v31  ;;  %vm163_vm6 = vcmp.ge.f32.partialorder %v137_v26, 0.0  ;;  %v171_v34 = vmul.f32 4.0, %v137_v26  ;;  %vm167_vm7 = vcmp.ge.f32.partialorder %v157_v27, 0.0 }
  0xe0   :  { %v175_v35 = vmul.f32 4.0, %v157_v27  ;;  %vm162_vm8 = vcmp.ge.f32.partialorder %v132_v32, 0.0  ;;  %v170_v36 = vmul.f32 4.0, %v132_v32 }
  0xe1   :  { %vm166_vm9 = vcmp.ge.f32.partialorder %v152_v33, 0.0  ;;  %v174_v37 = vmul.f32 4.0, %v152_v33  ;;  %v179_v38 = vsel %vm163_vm6, %v137_v26, %v171_v34 }
  0xe2   :  { %v183_v39 = vsel %vm167_vm7, %v157_v27, %v175_v35  ;;  %188 = vst.msk [vmem:[%s324_s3 + $0x18] sm:$0xff] %vm184_vm1, %v179_v38  ;;  %v178_v40 = vsel %vm162_vm8, %v132_v32, %v170_v36 }
  0xe3   :  { %192 = vst.msk [vmem:[%s324_s3 + $0x38] sm:$0xff] %vm184_vm1, %v183_v39  ;;  %v182_v41 = vsel %vm166_vm9, %v152_v33, %v174_v37  ;;  %187 = vst.msk [vmem:[%s324_s3 + $0x10] sm:$0xff] %vm184_vm1, %v178_v40 }
  0xe4   :  { %191 = vst.msk [vmem:[%s324_s3 + $0x30] sm:$0xff] %vm184_vm1, %v182_v41 }

// kernel: encoder_forward.27
= control target key start
LH: loop header
LB: loop body
LE: loop exit
PB: predicated region body
PF: predicated region fallthrough
CT: control target
= control target key end

     0   :  { %v246_v0 = vmov 0.0|0.0   ;;  %vm247_vm0 = vmmov 0   ;;  %v248_v4 = vmov 0.0   ;;  %vm23_vm1 = vcmask 523264   ;;  %s305_s1 = inlined_call_operand.vmem [shape: f32[64,6], index: 1, kind: input, shape index: {}]   ;;  %s306_s0 = inlined_call_operand.vmem [shape: f32[8,64], index: 0, kind: input, shape index: {}]   ;;  %s307_s2 = inlined_call_operand.vmem [shape: f32[6,6], index: 2, kind: input, shape index: {}]   ;;  %s308_s3 = inlined_call_operand.vmem [shape: f32[8,6], index: 3, kind: output, shape index: {}]  }
   0x1   :  { %227 = vmatprep.subr.bf16.mxu0 %v246_v0  ;;  %v15_v1 = vld [vmem:[%s305_s1] sm:$0xff]  ;;  %v16_v2 = vld [vmem:[%s305_s1 + $0x8] sm:$0xff]  ;;  %v17_v3 = vld [vmem:[%s305_s1 + $0x10] sm:$0xff]  ;;  %219 = vmatprep.mubr.msk.f32.mxu0 %vm247_vm0, %v248_v4  ;;  %vm97_vm2 = vcmask 48128   ;;  %vm108_vm3 = vcmask 1045504  }
   0x2   :  { %v228_v5 = vpack.c.bf16 %v16_v2, %v15_v1  ;;  %v18_v6 = vld [vmem:[%s305_s1 + $0x18] sm:$0xff]  ;;  %222 = vmatprep.subr.mxu1 %v248_v4  ;;  %224 = vmatprep.mubr.msk.f32.mxu1 %vm247_vm0, %v248_v4  ;;  %v19_v8 = vld [vmem:[%s305_s1 + $0x20] sm:$0xff]  ;;  %v20_v9 = vld [vmem:[%s305_s1 + $0x28] sm:$0xff] }
   0x3   :  { %v231_v7 = vpack.c.bf16 %v18_v6, %v17_v3  ;;  %v234_v10 = vpack.c.bf16 %v20_v9, %v19_v8  ;;  %v21_v11 = vld [vmem:[%s305_s1 + $0x30] sm:$0xff]  ;;  %v22_v12 = vld [vmem:[%s305_s1 + $0x38] sm:$0xff]  ;;  %v14_v14 = vld [vmem:[%s306_s0] sm:$0xff] }
   0x4   :  { %229 = vmatpush3.bf16.msra.mxu0 %v228_v5  ;;  %v237_v13 = vpack.c.bf16 %v22_v12, %v21_v11  ;;  %v104_v18 = vld [vmem:[%s307_s2] sm:$0x3f] }
   0x5   :  { %230 = vmatprep.subr.bf16.mxu0 %v246_v0  ;;  %223 = vmatpush3.msk.msra.mxu1 %vm108_vm3, %v104_v18 }
   0x8   :  { %232 = vmatpush3.bf16.msra.mxu0 %v231_v7 }
   0x9   :  { %233 = vmatprep.subr.bf16.mxu0 %v246_v0 }
   0xc   :  { %235 = vmatpush3.bf16.msra.mxu0 %v234_v10 }
   0xd   :  { %236 = vmatprep.subr.bf16.mxu0 %v246_v0 }
  0x10   :  { %238 = vmatpush3.bf16.msra.mxu0 %v237_v13 }
  0x13   :  { %220 = vmatmul.mubr.msk.f32.vlgmr.msra.gmra.mrb[0].mxu0 %vm23_vm1, %v14_v14 }
  0xe6   :  { %v93_v15 = vpop.f32.mrb[0].mxu0 }
  0xe7   :  { %v221_v16 = vpop.f32.mrb[1].mxu0  ;;  %v98_v17 = vsel %vm97_vm2, %v93_v15, -inf }
  0xe8   :  { %99 = vmax.xlane.f32.xlu0 %v98_v17 }
 0x175   :  { %v100_v19 = vpop.xlane.xlu0 %99 }
 0x176   :  { %v101_v20 = vsub.f32 %v93_v15, %v100_v19 }
 0x178   :  { %v102_v21 = vmul.f32 1.442695, %v101_v20 }
 0x17a   :  { %242 = vpow2.f32 %v102_v21 }
 0x184   :  { %v243_v22 = vpop.eup %242 }
 0x185   :  { %225 = vmatmul.mubr.msk.f32.vlgmr.msra.gmra.mrb[0].mxu1 %vm97_vm2, %v243_v22 }
 0x258   :  { %v178_v23 = vpop.f32.mrb[0].mxu1 }
 0x259   :  { %244 = vrcp.f32 %v178_v23  ;;  %v226_v24 = vpop.f32.mrb[1].mxu1 }
 0x263   :  { %v245_v25 = vpop.eup %244 }
 0x264   :  { %v183_v26 = vmul.f32 %v245_v25, %v243_v22 }
 0x266   :  { %184 = vst.msk [vmem:[%s308_s3] sm:$0xff] %vm97_vm2, %v183_v26 }

// kernel: encoder_forward.35
= control target key start
LH: loop header
LB: loop body
LE: loop exit
PB: predicated region body
PF: predicated region fallthrough
CT: control target
= control target key end

     0   :  { %vm24_vm0 = vcmask 64512   ;;  %s546_s0 = inlined_call_operand.vmem [shape: f32[64,8], index: 0, kind: input, shape index: {}]   ;;  %s547_s1 = inlined_call_operand.vmem [shape: f32[8,16], index: 1, kind: input, shape index: {}]   ;;  %s548_s2 = inlined_call_operand.vmem [shape: f32[16,8], index: 2, kind: input, shape index: {}]   ;;  %s549_s3 = inlined_call_operand.hbm [shape: f32[64,8], index: 3, kind: output, shape index: {}]  }
   0x1   :  { %v23_v0 = vld [vmem:[%s547_s1] sm:$0xff]  ;;  %v16_v2 = vld [vmem:[%s546_s0 + $0x8] sm:$0xff]  ;;  %v17_v3 = vld [vmem:[%s546_s0 + $0x10] sm:$0xff] }
   0x2   :  { %v15_v1 = vld [vmem:[%s546_s0] sm:$0xff]  ;;  %393 = vmatprep.subr.mxu0 %v23_v0 }
   0x3   :  { %395 = vmatprep.mubr.msk.f32.mxu0 %vm24_vm0, %v15_v1  ;;  %394 = vmatpush3.msra.mxu0 %v23_v0 }
   0x4   :  { %396 = vmatmul.mubr.msk.f32.vlgmr.msra.gmra.mrb[0].mxu0 %vm24_vm0, %v16_v2 }
   0x5   :  { %8 = vsyncpa [#allocation3], 0  ;;  %398 = vmatprep.mubr.msk.f32.mxu0 %vm24_vm0, %v17_v3  ;;  %v18_v4 = vld [vmem:[%s546_s0 + $0x18] sm:$0xff]  ;;  %v19_v5 = vld [vmem:[%s546_s0 + $0x20] sm:$0xff]  ;;  %vm180_vm3 = vcmask 130048  }
   0x6   :  { %v20_v6 = vld [vmem:[%s546_s0 + $0x28] sm:$0xff]  ;;  %v21_v7 = vld [vmem:[%s546_s0 + $0x30] sm:$0xff]  ;;  %v22_v8 = vld [vmem:[%s546_s0 + $0x38] sm:$0xff]  ;;  %s454_s0 = smov [#allocation2]  }
   0x7   :  { %v178_v9 = vld [vmem:[%s548_s2] sm:$0xff]  ;;  %v179_v10 = vld [vmem:[%s548_s2 + $0x8] sm:$0xff]  ;;  %s347_s2 = sshll.u32 %s454_s0, 4  ;;  %s348_s2 = int_to_ptr.vmem [resolvable:$true] %s347_s2 }
   0x8   :  { %399 = vmatmul.mubr.msk.f32.gmra.mrb[2].mxu0 %vm24_vm0, %v18_v4  ;;  %v423_v11 = vpack.c.bf16 %v179_v10, %v178_v9  ;;  %s430_s6 = scalar_lea.vmem %s348_s2, 1024  ;;  %p435_p1 = scmp.lt.s32.totalorder %s348_s2, %s348_s2 }
   0x9   :  { %401 = vmatprep.mubr.msk.f32.mxu0 %vm24_vm0, %v19_v5  ;;  %p431_p0 = scmp.ne.s32.totalorder %s348_s2, %s430_s6  ;;  %p436_p2 = scmp.lt.s32.totalorder %s430_s6, %s430_s6 }
   0xa   :  { %424 = vmatprep.subr.bf16.mxu1 %v423_v11 }
   0xb   :  { %426 = vmatpush3.bf16.msra.mxu1 %v423_v11  ;;  %p437_p3 = por %p436_p2, %p435_p1 }
   0xc   :  { %402 = vmatmul.mubr.msk.f32.gmra.mrb[4].mxu0 %vm24_vm0, %v20_v6 }
   0xd   :  { %404 = vmatprep.mubr.msk.f32.mxu0 %vm24_vm0, %v21_v7  ;;  %p438_p4 = pnand %p437_p3, %p431_p0 }
  0x10   :  { %405 = vmatmul.mubr.msk.f32.gmra.mrb[6].mxu0 %vm24_vm0, %v22_v8 }
  0xd7   :  { %v397_v12 = vpop.f32.mrb[0].mxu0 }
  0xd8   :  { %v163_v13 = vmul.f32 0.2, %v397_v12  ;;  %v115_v14 = vpop.f32.mrb[1].mxu0  ;;  %vm155_vm1 = vcmp.ge.f32.partialorder %v397_v12, 0.0 }
  0xd9   :  { %v162_v15 = vmul.f32 0.2, %v115_v14  ;;  %vm154_vm2 = vcmp.ge.f32.partialorder %v115_v14, 0.0 }
  0xda   :  { %v171_v20 = vsel %vm155_vm1, %v397_v12, %v163_v13 }
  0xdb   :  { %v400_v16 = vpop.f32.mrb[2].mxu0  ;;  %v170_v17 = vsel %vm154_vm2, %v115_v14, %v162_v15 }
  0xdc   :  { %v165_v18 = vmul.f32 0.2, %v400_v16  ;;  %v125_v19 = vpop.f32.mrb[3].mxu0  ;;  %411 = vmatprep.mubr.msk.f32.mxu1 %vm180_vm3, %v170_v17  ;;  %vm157_vm4 = vcmp.ge.f32.partialorder %v400_v16, 0.0 }
  0xdd   :  { %vm156_vm5 = vcmp.ge.f32.partialorder %v125_v19, 0.0  ;;  %v164_v21 = vmul.f32 0.2, %v125_v19  ;;  %412 = vmatmul.mubr.msk.f32.vlgmr.msra.gmra.mrb[0].mxu1 %vm180_vm3, %v171_v20 }
  0xde   :  { %v173_v26 = vsel %vm157_vm4, %v400_v16, %v165_v18 }
  0xdf   :  { %v403_v22 = vpop.f32.mrb[4].mxu0  ;;  %v172_v23 = vsel %vm156_vm5, %v125_v19, %v164_v21 }
  0xe0   :  { %v167_v24 = vmul.f32 0.2, %v403_v22  ;;  %v135_v25 = vpop.f32.mrb[5].mxu0  ;;  %414 = vmatprep.mubr.msk.f32.mxu1 %vm180_vm3, %v172_v23  ;;  %vm159_vm6 = vcmp.ge.f32.partialorder %v403_v22, 0.0 }
  0xe1   :  { %vm158_vm7 = vcmp.ge.f32.partialorder %v135_v25, 0.0  ;;  %v166_v27 = vmul.f32 0.2, %v135_v25  ;;  %415 = vmatmul.mubr.msk.f32.gmra.mrb[2].mxu1 %vm180_vm3, %v173_v26 }
  0xe2   :  { %v175_v32 = vsel %vm159_vm6, %v403_v22, %v167_v24 }
  0xe3   :  { %v406_v28 = vpop.f32.mrb[6].mxu0  ;;  %v174_v29 = vsel %vm158_vm7, %v135_v25, %v166_v27 }
  0xe4   :  { %v169_v30 = vmul.f32 0.2, %v406_v28  ;;  %v145_v31 = vpop.f32.mrb[7].mxu0  ;;  %417 = vmatprep.mubr.msk.f32.mxu1 %vm180_vm3, %v174_v29  ;;  %vm161_vm8 = vcmp.ge.f32.partialorder %v406_v28, 0.0 }
  0xe5   :  { %vm160_vm9 = vcmp.ge.f32.partialorder %v145_v31, 0.0  ;;  %v168_v33 = vmul.f32 0.2, %v145_v31  ;;  %418 = vmatmul.mubr.msk.f32.gmra.mrb[4].mxu1 %vm180_vm3, %v175_v32 }
  0xe6   :  { %v177_v35 = vsel %vm161_vm8, %v406_v28, %v169_v30 }
  0xe7   :  { %v176_v34 = vsel %vm160_vm9, %v145_v31, %v168_v33 }
  0xe8   :  { %420 = vmatprep.mubr.msk.f32.mxu1 %vm180_vm3, %v176_v34 }
  0xe9   :  { %421 = vmatmul.mubr.msk.f32.gmra.mrb[6].mxu1 %vm180_vm3, %v177_v35 }
 0x1b0   :  { %v413_v36 = vpop.f32.mrb[0].mxu1 }
 0x1b1   :  { %vm311_vm10 = vcmp.ge.f32.partialorder %v413_v36, 0.0  ;;  %v319_v37 = vmul.f32 0.2, %v413_v36  ;;  %v271_v38 = vpop.f32.mrb[1].mxu1 }
 0x1b2   :  { %vm310_vm11 = vcmp.ge.f32.partialorder %v271_v38, 0.0  ;;  %v318_v39 = vmul.f32 0.2, %v271_v38 }
 0x1b3   :  { %v327_v40 = vsel %vm311_vm10, %v413_v36, %v319_v37 }
 0x1b4   :  { %335 = vst.msk [vmem:[#allocation2 + $0x8] sm:$0xff] %vm24_vm0, %v327_v40  ;;  %v326_v41 = vsel %vm310_vm11, %v271_v38, %v318_v39  ;;  %v416_v42 = vpop.f32.mrb[2].mxu1 }
 0x1b5   :  { %334 = vst.msk [vmem:[#allocation2] sm:$0xff] %vm24_vm0, %v326_v41  ;;  %vm313_vm12 = vcmp.ge.f32.partialorder %v416_v42, 0.0  ;;  %v321_v43 = vmul.f32 0.2, %v416_v42  ;;  %v281_v44 = vpop.f32.mrb[3].mxu1 }
 0x1b6   :  { %vm312_vm13 = vcmp.ge.f32.partialorder %v281_v44, 0.0  ;;  %v320_v45 = vmul.f32 0.2, %v281_v44 }
 0x1b7   :  { %v329_v46 = vsel %vm313_vm12, %v416_v42, %v321_v43 }
 0x1b8   :  { %337 = vst.msk [vmem:[#allocation2 + $0x18] sm:$0xff] %vm24_vm0, %v329_v46  ;;  %v328_v47 = vsel %vm312_vm13, %v281_v44, %v320_v45  ;;  %v419_v48 = vpop.f32.mrb[4].mxu1 }
 0x1b9   :  { %336 = vst.msk [vmem:[#allocation2 + $0x10] sm:$0xff] %vm24_vm0, %v328_v47  ;;  %vm315_vm14 = vcmp.ge.f32.partialorder %v419_v48, 0.0  ;;  %v323_v49 = vmul.f32 0.2, %v419_v48  ;;  %v291_v50 = vpop.f32.mrb[5].mxu1 }
 0x1ba   :  { %vm314_vm15 = vcmp.ge.f32.partialorder %v291_v50, 0.0  ;;  %v322_v51 = vmul.f32 0.2, %v291_v50 }
 0x1bb   :  { %v331_v52 = vsel %vm315_vm14, %v419_v48, %v323_v49 }
 0x1bc   :  { %339 = vst.msk [vmem:[#allocation2 + $0x28] sm:$0xff] %vm24_vm0, %v331_v52  ;;  %v330_v53 = vsel %vm314_vm15, %v291_v50, %v322_v51  ;;  %v422_v54 = vpop.f32.mrb[6].mxu1 }
 0x1bd   :  { %338 = vst.msk [vmem:[#allocation2 + $0x20] sm:$0xff] %vm24_vm0, %v330_v53  ;;  %vm317_vm1 = vcmp.ge.f32.partialorder %v422_v54, 0.0  ;;  %v325_v55 = vmul.f32 0.2, %v422_v54  ;;  %v301_v56 = vpop.f32.mrb[7].mxu1 }
 0x1be   :  { %vm316_vm2 = vcmp.ge.f32.partialorder %v301_v56, 0.0  ;;  %v324_v57 = vmul.f32 0.2, %v301_v56 }
 0x1bf   :  { %v333_v58 = vsel %vm317_vm1, %v422_v54, %v325_v55 }
 0x1c0   :  { %341 = vst.msk [vmem:[#allocation2 + $0x38] sm:$0xff] %vm24_vm0, %v333_v58  ;;  %v332_v59 = vsel %vm316_vm2, %v301_v56, %v324_v57 }
 0x1c1   :  { %340 = vst.msk [vmem:[#allocation2 + $0x30] sm:$0xff] %vm24_vm0, %v332_v59 }
 0x1c2   :  { %441 = shalt.err (!%p438_p4)
}
 0x1c3   :  { %s442_s9 = scalar_lea.hbm %s549_s3, 1024 }
 0x1c4   :  { %p443_p5 = scmp.ne.s32.totalorder %s549_s3, %s442_s9  ;;  %p446_p6 = scmp.lt.u32.totalorder %s442_s9, %s549_s3 }
 0x1c6   :  { %p448_p7 = pnand %p446_p6, %p443_p5 }
 0x1c8   :  { %451 = shalt.err (!%p448_p7)
}
 0x1c9   :  { %s455_s14 = smov 128   ;;  %s456_s15 = smov 8  }
 0x1ca   :  { %353 = dma.vmem_to_hbm [thread:$0]  %s348_s2, 1024, %s549_s3, [#allocation3], %s455_s14, %s455_s14, %s456_s15  }
 0x1cb   :  { %452 = dma.done.wait [#allocation3], 1024  }
 0x1cc   :  { %453 = vsyncadd [#allocation3], 4294966272 }
 0x1cd   :  { %357 = vsyncpa [#allocation3], 1 }

</bundles_post_ra>
